<compile_context>
chip_gen: v6e
topology: v6e:2x2x1
jax: 0.10.0
libtpu: 0.0.40
codegen_flags: <defaults>
</compile_context>

<pallas_src>
import numpy as np
import jax
import jax.numpy as jnp
from jax import lax
from jax.experimental import pallas as pl
from jax.experimental.pallas import tpu as pltpu

EPS = 1e-5          # PSBatchNorm2d eps
ALPHA = 0.1         # PSBatchNorm2d alpha (added to BN output)
_VMEM_LIMIT = 48 * 1024 * 1024
_ROW_TILE = 512


# ---------------------------------------------------------------------------
# small helpers
# ---------------------------------------------------------------------------
def _round_up(x, m):
    return ((x + m - 1) // m) * m


def _tile_rows(m):
    t = _ROW_TILE if m >= _ROW_TILE else _round_up(m, 16)
    return t, _round_up(m, t)


def _pad_rows(a, m_pad):
    if a.shape[0] == m_pad:
        return a
    return jnp.pad(a, ((0, m_pad - a.shape[0]), (0, 0)))


# ---------------------------------------------------------------------------
# in-kernel math (traced inside Pallas kernels)
# ---------------------------------------------------------------------------
def _mish(x):
    # mish(x) = x * tanh(softplus(x)) = x * (t - 1) / (t + 1), t = (1 + e^x)^2.
    # One EUP exp + one approx reciprocal; clamp keeps t finite in f32
    # (for x > 20 the exact value is 1.0 to f32 precision anyway).
    e = jnp.exp(jnp.minimum(x, 20.0))
    t = (1.0 + e) * (1.0 + e)
    return x * (t - 1.0) * pl.reciprocal(t + 1.0, approx=True)


def _bn_from_stats(v, s, ss, g, b, inv_m):
    # training-mode BN (biased variance) from precomputed per-channel sum / sumsq,
    # plus the PSBatchNorm2d "+ alpha" shift.
    mean = s * inv_m
    var = jnp.maximum(ss * inv_m - mean * mean, 0.0)
    return (v - mean) * (g * lax.rsqrt(var + EPS)) + b + ALPHA


# ---------------------------------------------------------------------------
# Pallas kernels / wrappers
# ---------------------------------------------------------------------------
def _gemm_stats_kernel(x_ref, w_ref, h_ref, sum_ref, sq_ref):
    # tiled GEMM (bf16 in, f32 acc) + per-channel sum / sumsq reduction.
    i = pl.program_id(0)
    h = jnp.dot(x_ref[...], w_ref[...], preferred_element_type=jnp.float32)
    h_ref[...] = h

    @pl.when(i == 0)
    def _():
        sum_ref[...] = jnp.zeros_like(sum_ref)
        sq_ref[...] = jnp.zeros_like(sq_ref)

    sum_ref[...] += jnp.sum(h, axis=0, keepdims=True)
    sq_ref[...] += jnp.sum(h * h, axis=0, keepdims=True)


def _gemm_stats(x, w, tile_m):
    m_pad, k = x.shape
    c = w.shape[1]
    nt = m_pad // tile_m
    return pl.pallas_call(
        _gemm_stats_kernel,
        out_shape=(jax.ShapeDtypeStruct((m_pad, c), jnp.float32),
                   jax.ShapeDtypeStruct((1, c), jnp.float32),
                   jax.ShapeDtypeStruct((1, c), jnp.float32)),
        grid=(nt,),
        in_specs=[pl.BlockSpec((tile_m, k), lambda i: (i, 0)),
                  pl.BlockSpec((k, c), lambda i: (0, 0))],
        out_specs=(pl.BlockSpec((tile_m, c), lambda i: (i, 0)),
                   pl.BlockSpec((1, c), lambda i: (0, 0)),
                   pl.BlockSpec((1, c), lambda i: (0, 0))),
        compiler_params=pltpu.CompilerParams(
            dimension_semantics=("arbitrary",),
            vmem_limit_bytes=_VMEM_LIMIT),
    )(x, w)


def _bn_mish_apply(h, s, ss, g, b, m_true, tile_m, out_dtype):
    m_pad, c = h.shape
    nt = m_pad // tile_m
    inv_m = 1.0 / float(m_true)

    def kernel(h_ref, s_ref, ss_ref, g_ref, b_ref, o_ref):
        y = _bn_from_stats(h_ref[...], s_ref[...], ss_ref[...],
                           g_ref[...], b_ref[...], inv_m)
        o_ref[...] = _mish(y).astype(o_ref.dtype)

    row_spec = pl.BlockSpec((tile_m, c), lambda i: (i, 0))
    vec_spec = pl.BlockSpec((1, c), lambda i: (0, 0))
    return pl.pallas_call(
        kernel,
        out_shape=jax.ShapeDtypeStruct((m_pad, c), out_dtype),
        grid=(nt,),
        in_specs=[row_spec, vec_spec, vec_spec, vec_spec, vec_spec],
        out_specs=pl.BlockSpec((tile_m, c), lambda i: (i, 0)),
        compiler_params=pltpu.CompilerParams(
            dimension_semantics=("parallel",),
            vmem_limit_bytes=_VMEM_LIMIT),
    )(h, s, ss, g, b)


def _bn_mish_gemm_stats(h, s, ss, g, b, w, m_true, tile_m):
    # fused: BN+mish of the previous stage + next GEMM + next per-channel stats.
    m_pad, c = h.shape
    c2 = w.shape[1]
    nt = m_pad // tile_m
    inv_m = 1.0 / float(m_true)

    def kernel(h_ref, s_ref, ss_ref, g_ref, b_ref, w_ref,
               o_ref, osum_ref, osq_ref):
        i = pl.program_id(0)
        tm = h_ref.shape[0]
        a = _mish(_bn_from_stats(h_ref[...], s_ref[...], ss_ref[...],
                                 g_ref[...], b_ref[...], inv_m))
        # zero padded rows so they do not pollute the next stage's BN statistics
        row = lax.broadcasted_iota(jnp.int32, (tm, 1), 0) + i * tm
        a = jnp.where(row < m_true, a, 0.0)
        hn = jnp.dot(a.astype(jnp.bfloat16), w_ref[...],
                     preferred_element_type=jnp.float32)
        o_ref[...] = hn

        @pl.when(i == 0)
        def _():
            osum_ref[...] = jnp.zeros_like(osum_ref)
            osq_ref[...] = jnp.zeros_like(osq_ref)

        osum_ref[...] += jnp.sum(hn, axis=0, keepdims=True)
        osq_ref[...] += jnp.sum(hn * hn, axis=0, keepdims=True)

    row_spec = pl.BlockSpec((tile_m, c), lambda i: (i, 0))
    vec_spec = pl.BlockSpec((1, c), lambda i: (0, 0))
    return pl.pallas_call(
        kernel,
        out_shape=(jax.ShapeDtypeStruct((m_pad, c2), jnp.float32),
                   jax.ShapeDtypeStruct((1, c2), jnp.float32),
                   jax.ShapeDtypeStruct((1, c2), jnp.float32)),
        grid=(nt,),
        in_specs=[row_spec, vec_spec, vec_spec, vec_spec, vec_spec,
                  pl.BlockSpec((c, c2), lambda i: (0, 0))],
        out_specs=(pl.BlockSpec((tile_m, c2), lambda i: (i, 0)),
                   pl.BlockSpec((1, c2), lambda i: (0, 0)),
                   pl.BlockSpec((1, c2), lambda i: (0, 0))),
        compiler_params=pltpu.CompilerParams(
            dimension_semantics=("arbitrary",),
            vmem_limit_bytes=_VMEM_LIMIT),
    )(h, s, ss, g, b, w)


def _bn2_add_mish(h, hsum, hsq, ge, be, r, rsum, rsq, gs, bs, m_true, tile_m):
    # bn_expand(h) + bn_shortcut(r), add, mish.
    m_pad, c = h.shape
    nt = m_pad // tile_m
    inv_m = 1.0 / float(m_true)

    def kernel(h_ref, hs_ref, hss_ref, ge_ref, be_ref,
               r_ref, rs_ref, rss_ref, gs_ref, bs_ref, o_ref):
        y = _bn_from_stats(h_ref[...], hs_ref[...], hss_ref[...],
                           ge_ref[...], be_ref[...], inv_m)
        z = _bn_from_stats(r_ref[...], rs_ref[...], rss_ref[...],
                           gs_ref[...], bs_ref[...], inv_m)
        o_ref[...] = _mish(y + z)

    row_spec = pl.BlockSpec((tile_m, c), lambda i: (i, 0))
    vec_spec = pl.BlockSpec((1, c), lambda i: (0, 0))
    return pl.pallas_call(
        kernel,
        out_shape=jax.ShapeDtypeStruct((m_pad, c), jnp.float32),
        grid=(nt,),
        in_specs=[row_spec, vec_spec, vec_spec, vec_spec, vec_spec,
                  row_spec, vec_spec, vec_spec, vec_spec, vec_spec],
        out_specs=pl.BlockSpec((tile_m, c), lambda i: (i, 0)),
        compiler_params=pltpu.CompilerParams(
            dimension_semantics=("parallel",),
            vmem_limit_bytes=_VMEM_LIMIT),
    )(h, hsum, hsq, ge, be, r, rsum, rsq, gs, bs)


def _bn_add_mish(h, hsum, hsq, ge, be, r, m_true, tile_m):
    # bn_expand(h) + identity residual, mish.
    m_pad, c = h.shape
    nt = m_pad // tile_m
    inv_m = 1.0 / float(m_true)

    def kernel(h_ref, hs_ref, hss_ref, ge_ref, be_ref, r_ref, o_ref):
        y = _bn_from_stats(h_ref[...], hs_ref[...], hss_ref[...],
                           ge_ref[...], be_ref[...], inv_m)
        o_ref[...] = _mish(y + r_ref[...])

    row_spec = pl.BlockSpec((tile_m, c), lambda i: (i, 0))
    vec_spec = pl.BlockSpec((1, c), lambda i: (0, 0))
    return pl.pallas_call(
        kernel,
        out_shape=jax.ShapeDtypeStruct((m_pad, c), jnp.float32),
        grid=(nt,),
        in_specs=[row_spec, vec_spec, vec_spec, vec_spec, vec_spec, row_spec],
        out_specs=pl.BlockSpec((tile_m, c), lambda i: (i, 0)),
        compiler_params=pltpu.CompilerParams(
            dimension_semantics=("parallel",),
            vmem_limit_bytes=_VMEM_LIMIT),
    )(h, hsum, hsq, ge, be, r)


# ---------------------------------------------------------------------------
# Module wrapper
# ---------------------------------------------------------------------------
class ResNeXtBottleneckPallas:
    def __init__(self, in_channels, out_channels, stride, cardinality,
                 base_width, widen_factor, key):
        width_ratio = out_channels / (widen_factor * 64.0)
        D = cardinality * int(base_width * width_ratio)
        Dg = D // cardinality

        self.in_channels = in_channels
        self.out_channels = out_channels
        self.stride = stride
        self.cardinality = cardinality
        self.D, self.Dg = D, Dg
        self.has_shortcut = in_channels != out_channels

        # lane-dense (multiple-of-128) padded channel counts
        self.Dp = _round_up(D, 128)
        self.Cout_p = _round_up(out_channels, 128)

        ks = jax.random.split(key, 4)
        # Deterministic synthetic weights in PyTorch OIHW layouts (f32 masters).
        self.w_reduce = (jax.random.normal(ks[0], (D, in_channels, 1, 1), jnp.float32)
                         / np.sqrt(in_channels))
        self.w_conv = (jax.random.normal(ks[1], (D, Dg, 3, 3), jnp.float32)
                       / np.sqrt(Dg * 9))
        self.w_expand = (jax.random.normal(ks[2], (out_channels, D, 1, 1), jnp.float32)
                         / np.sqrt(D))
        if self.has_shortcut:
            self.w_short = (jax.random.normal(ks[3], (out_channels, in_channels, 1, 1),
                                              jnp.float32) / np.sqrt(in_channels))

        # BN affine params at PyTorch init (weight=1, bias=0), channel-padded.
        def _pad_gb(c, cp):
            g = jnp.zeros((1, cp), jnp.float32).at[:, :c].set(1.0)
            b = jnp.zeros((1, cp), jnp.float32)
            return g, b

        self.g_reduce, self.b_reduce = _pad_gb(D, self.Dp)
        self.g_bn, self.b_bn = _pad_gb(D, self.Dp)
        self.g_expand, self.b_expand = _pad_gb(out_channels, self.Cout_p)
        if self.has_shortcut:
            self.g_short, self.b_short = _pad_gb(out_channels, self.Cout_p)

        # Matmul-form weights (bf16, output-channel dims padded to 128 lanes).
        wr = jnp.transpose(self.w_reduce[:, :, 0, 0])                       # (Cin, D)
        self.w_reduce_mat = (jnp.zeros((in_channels, self.Dp), jnp.float32)
                             .at[:, :D].set(wr).astype(jnp.bfloat16))
        we = jnp.transpose(self.w_expand[:, :, 0, 0])                       # (D, Cout)
        self.w_expand_mat = (jnp.zeros((self.Dp, self.Cout_p), jnp.float32)
                             .at[:D, :out_channels].set(we).astype(jnp.bfloat16))
        if self.has_shortcut:
            wsh = jnp.transpose(self.w_short[:, :, 0, 0])                   # (Cin, Cout)
            self.w_short_mat = (jnp.zeros((in_channels, self.Cout_p), jnp.float32)
                                .at[:, :out_channels].set(wsh).astype(jnp.bfloat16))

        # Grouped 3x3 conv as ONE long-K block-diagonal matrix (9*Dp, Dp):
        # row index = (tap_k * Dp + c_in), matching the tap concatenation below.
        wd = jnp.zeros((3, 3, self.Dp, self.Dp), jnp.float32)
        for g in range(cardinality):
            blk = self.w_conv[g * Dg:(g + 1) * Dg]        # (Dg_out, Dg_in, 3, 3)
            blk = jnp.transpose(blk, (2, 3, 1, 0))        # (3, 3, Dg_in, Dg_out)
            wd = wd.at[:, :, g * Dg:(g + 1) * Dg, g * Dg:(g + 1) * Dg].set(blk)
        self.w_conv_mat = wd.reshape(9 * self.Dp, self.Dp).astype(jnp.bfloat16)

    def __call__(self, x_nchw):
        N, Cin, H, W = x_nchw.shape
        s = self.stride
        Dp, Coutp, Cout = self.Dp, self.Cout_p, self.out_channels

        x = jnp.transpose(x_nchw, (0, 2, 3, 1)).astype(jnp.float32)   # NHWC
        Hout = (H + 2 - 3) // s + 1
        Wout = (W + 2 - 3) // s + 1
        M1, M2 = N * H * W, N * Hout * Wout
        t1, Mp1 = _tile_rows(M1)
        t2, Mp2 = _tile_rows(M2)

        # ---- stage 1: conv_reduce (1x1) GEMM + BN stats, then BN + mish apply
        x2d = _pad_rows(x.reshape(M1, Cin), Mp1).astype(jnp.bfloat16)
        h1, s1, ss1 = _gemm_stats(x2d, self.w_reduce_mat, t1)
        b1 = _bn_mish_apply(h1, s1, ss1, self.g_reduce, self.b_reduce,
                            M1, t1, jnp.bfloat16)

        # ---- XLA glue: im2col for the grouped 3x3 conv (stride s, pad 1),
        #      taps concatenated along the K axis -> one long-K GEMM input.
        b1 = b1[:M1].reshape(N, H, W, Dp)
        b1p = jnp.pad(b1, ((0, 0), (1, 1), (1, 1), (0, 0)))
        taps = []
        for dy in range(3):
            for dx in range(3):
                t = b1p[:, dy:dy + s * (Hout - 1) + 1:s,
                        dx:dx + s * (Wout - 1) + 1:s, :]
                taps.append(t.reshape(M2, Dp))
        taps2d = _pad_rows(jnp.concatenate(taps, axis=1), Mp2)        # (Mp2, 9*Dp) bf16

        # ---- stage 2: grouped 3x3 conv GEMM + BN stats
        h2, s2, ss2 = _gemm_stats(taps2d, self.w_conv_mat, t2)
        # ---- stage 2 BN+mish apply fused with stage-3 expand GEMM + BN stats
        h3, s3, ss3 = _bn_mish_gemm_stats(h2, s2, ss2, self.g_bn, self.b_bn,
                                          self.w_expand_mat, M2, t2)

        # ---- shortcut branch + final add + mish
        xs = x[:, ::s, ::s, :].reshape(M2, Cin)
        if self.has_shortcut:
            xs_b = _pad_rows(xs, Mp2).astype(jnp.bfloat16)
            hs, s_s, ss_s = _gemm_stats(xs_b, self.w_short_mat, t2)
            out2d = _bn2_add_mish(h3, s3, ss3, self.g_expand, self.b_expand,
                                  hs, s_s, ss_s, self.g_short, self.b_short,
                                  M2, t2)
        else:
            r = jnp.zeros((Mp2, Coutp), jnp.float32).at[:M2, :Cin].set(xs)
            out2d = _bn_add_mish(h3, s3, ss3, self.g_expand, self.b_expand,
                                 r, M2, t2)

        out = out2d[:M2, :Cout].reshape(N, Hout, Wout, Cout)
        return jnp.transpose(out, (0, 3, 1, 2))  # back to NCHW


# ---------------------------------------------------------------------------
# Pure-JAX reference (mirrors the PyTorch forward, NCHW, f32 HIGHEST precision)
# ---------------------------------------------------------------------------
def _mish_ref(x):
    sp = jnp.maximum(x, 0.0) + jnp.log1p(jnp.exp(-jnp.abs(x)))
    return x * jnp.tanh(sp)


def _ref_bn(x_nchw, gamma, beta):
    mean = jnp.mean(x_nchw, axis=(0, 2, 3), keepdims=True)
    var = jnp.mean(jnp.square(x_nchw - mean), axis=(0, 2, 3), keepdims=True)
    return ((x_nchw - mean) / jnp.sqrt(var + EPS) * gamma.reshape(1, -1, 1, 1)
            + beta.reshape(1, -1, 1, 1) + ALPHA)


def reference_forward(m, x):
    dn = ('NCHW', 'OIHW', 'NCHW')
    hp = lax.Precision.HIGHEST
    D, Cout = m.D, m.out_channels
    b = lax.conv_general_dilated(x, m.w_reduce, (1, 1), 'VALID',
                                 dimension_numbers=dn, precision=hp)
    b = _mish_ref(_ref_bn(b, m.g_reduce[0, :D], m.b_reduce[0, :D]))
    b = lax.conv_general_dilated(b, m.w_conv, (m.stride, m.stride),
                                 ((1, 1), (1, 1)), dimension_numbers=dn,
                                 feature_group_count=m.cardinality, precision=hp)
    b = _mish_ref(_ref_bn(b, m.g_bn[0, :D], m.b_bn[0, :D]))
    b = lax.conv_general_dilated(b, m.w_expand, (1, 1), 'VALID',
                                 dimension_numbers=dn, precision=hp)
    b = _ref_bn(b, m.g_expand[0, :Cout], m.b_expand[0, :Cout])
    if m.has_shortcut:
        r = lax.conv_general_dilated(x, m.w_short, (m.stride, m.stride), 'VALID',
                                     dimension_numbers=dn, precision=hp)
        r = _ref_bn(r, m.g_short[0, :Cout], m.b_short[0, :Cout])
    else:
        r = x
    return _mish_ref(r + b)


if __name__ == "__main__":
    key = jax.random.PRNGKey(0)
    kx1, kp1, kx2, kp2 = jax.random.split(key, 4)

    # Tolerances account for bf16 MXU inputs + approx-reciprocal mish in the Pallas
    # path vs. an all-f32 HIGHEST-precision reference.
    RTOL, ATOL = 5e-2, 8e-2

    # Case 1: projection shortcut (Cin != Cout), stride 2. Cin=32 -> Cout=64, D=64.
    N, Cin, H, W = 2, 32, 16, 16
    Cout, stride, card, bw, wf = 64, 2, 4, 16, 1
    x1 = jax.random.normal(kx1, (N, Cin, H, W), jnp.float32)
    blk1 = ResNeXtBottleneckPallas(Cin, Cout, stride, card, bw, wf, kp1)
    out1 = jax.block_until_ready(jax.jit(blk1.__call__)(x1))
    ref1 = jax.block_until_ready(reference_forward(blk1, x1))
    assert out1.shape == (N, Cout, H // stride, W // stride), out1.shape
    np.testing.assert_allclose(np.asarray(out1), np.asarray(ref1), rtol=RTOL, atol=ATOL)

    # Case 2: identity shortcut (Cin == Cout), stride 1. Cin=Cout=64, D=64.
    x2 = jax.random.normal(kx2, (N, 64, H, W), jnp.float32)
    blk2 = ResNeXtBottleneckPallas(64, 64, 1, card, bw, wf, kp2)
    out2 = jax.block_until_ready(jax.jit(blk2.__call__)(x2))
    ref2 = jax.block_until_ready(reference_forward(blk2, x2))
    assert out2.shape == (N, 64, H, W), out2.shape
    np.testing.assert_allclose(np.asarray(out2), np.asarray(ref2), rtol=RTOL, atol=ATOL)

    print("KERNEL_OK")
</pallas_src>

<mosaic_0001>
module attributes {stable_mosaic.version = 11 : i64} {
  func.func @_gemm_stats_kernel(%arg0: i32, %arg1: memref<512x32xbf16, #tpu.memory_space<vmem>>, %arg2: memref<32x128xbf16, #tpu.memory_space<vmem>>, %arg3: memref<512x128xf32, #tpu.memory_space<vmem>>, %arg4: memref<1x128xf32, #tpu.memory_space<vmem>>, %arg5: memref<1x128xf32, #tpu.memory_space<vmem>>) attributes {dimension_semantics = [#tpu.dimension_semantics<arbitrary>], iteration_bounds = array<i64: 1>, scalar_prefetch = 0 : i64, scratch_operands = 0 : i64, tpu.core_type = #tpu.core_type<tc>, window_params = [{transform_indices = @transform_0, window_bounds = array<i64: 512, 32>}, {pipeline_mode = #tpu.pipeline_mode<synchronous>, transform_indices = @transform_1, window_bounds = array<i64: 32, 128>}, {transform_indices = @transform_2, window_bounds = array<i64: 512, 128>}, {pipeline_mode = #tpu.pipeline_mode<synchronous>, transform_indices = @transform_3, window_bounds = array<i64: 1, 128>}, {pipeline_mode = #tpu.pipeline_mode<synchronous>, transform_indices = @transform_4, window_bounds = array<i64: 1, 128>}]} {
    %c0 = arith.constant 0 : index
    %c0_0 = arith.constant 0 : index
    %0 = vector.load %arg1[%c0, %c0_0] : memref<512x32xbf16, #tpu.memory_space<vmem>>, vector<512x32xbf16>
    %c0_1 = arith.constant 0 : index
    %c0_2 = arith.constant 0 : index
    %1 = vector.load %arg2[%c0_1, %c0_2] : memref<32x128xbf16, #tpu.memory_space<vmem>>, vector<32x128xbf16>
    %cst = arith.constant dense<0.000000e+00> : vector<512x128xf32>
    %2 = tpu.matmul %0, %1, %cst {dimension_numbers = #tpu.dot_dimension_numbers<[1], [0], [0], [1], [0, 0, 1, 1], [], []>} : vector<512x32xbf16>, vector<32x128xbf16>, vector<512x128xf32> -> vector<512x128xf32>
    %c0_3 = arith.constant 0 : index
    %c0_4 = arith.constant 0 : index
    %3 = vector.load %arg3[%c0_3, %c0_4] : memref<512x128xf32, #tpu.memory_space<vmem>>, vector<512x128xf32>
    tpu.vector_store %arg3[%c0_3, %c0_4], %2 {strides = array<i32>} : memref<512x128xf32, #tpu.memory_space<vmem>>, vector<512x128xf32>,
    %c0_i32 = arith.constant 0 : i32
    %4 = arith.cmpi eq, %arg0, %c0_i32 : i32
    %5 = arith.extui %4 : i1 to i32
    %c0_i32_5 = arith.constant 0 : i32
    %6 = arith.cmpi ne, %5, %c0_i32_5 : i32
    scf.if %6 {
      %cst_16 = arith.constant 0.000000e+00 : f32
      %18 = vector.broadcast %cst_16 : f32 to vector<1x128xf32>
      %c0_17 = arith.constant 0 : index
      %c0_18 = arith.constant 0 : index
      %19 = vector.load %arg4[%c0_17, %c0_18] : memref<1x128xf32, #tpu.memory_space<vmem>>, vector<1x128xf32>
      tpu.vector_store %arg4[%c0_17, %c0_18], %18 {strides = array<i32>} : memref<1x128xf32, #tpu.memory_space<vmem>>, vector<1x128xf32>,
      %cst_19 = arith.constant 0.000000e+00 : f32
      %20 = vector.broadcast %cst_19 : f32 to vector<1x128xf32>
      %c0_20 = arith.constant 0 : index
      %c0_21 = arith.constant 0 : index
      %21 = vector.load %arg5[%c0_20, %c0_21] : memref<1x128xf32, #tpu.memory_space<vmem>>, vector<1x128xf32>
      tpu.vector_store %arg5[%c0_20, %c0_21], %20 {strides = array<i32>} : memref<1x128xf32, #tpu.memory_space<vmem>>, vector<1x128xf32>,
    } else {
    }
    %c0_6 = arith.constant 0 : index
    %c0_7 = arith.constant 0 : index
    %7 = vector.load %arg4[%c0_6, %c0_7] : memref<1x128xf32, #tpu.memory_space<vmem>>, vector<1x128xf32>
    %cst_8 = arith.constant dense<0.000000e+00> : vector<128xf32>
    %8 = vector.multi_reduction <add>, %2, %cst_8 [0] : vector<512x128xf32> to vector<128xf32>
    %9 = vector.shape_cast %8 : vector<128xf32> to vector<1x128xf32>
    %10 = arith.addf %7, %9 : vector<1x128xf32>
    %c0_9 = arith.constant 0 : index
    %c0_10 = arith.constant 0 : index
    %11 = vector.load %arg4[%c0_9, %c0_10] : memref<1x128xf32, #tpu.memory_space<vmem>>, vector<1x128xf32>
    tpu.vector_store %arg4[%c0_9, %c0_10], %10 {strides = array<i32>} : memref<1x128xf32, #tpu.memory_space<vmem>>, vector<1x128xf32>,
    %c0_11 = arith.constant 0 : index
    %c0_12 = arith.constant 0 : index
    %12 = vector.load %arg5[%c0_11, %c0_12] : memref<1x128xf32, #tpu.memory_space<vmem>>, vector<1x128xf32>
    %13 = arith.mulf %2, %2 : vector<512x128xf32>
    %cst_13 = arith.constant dense<0.000000e+00> : vector<128xf32>
    %14 = vector.multi_reduction <add>, %13, %cst_13 [0] : vector<512x128xf32> to vector<128xf32>
    %15 = vector.shape_cast %14 : vector<128xf32> to vector<1x128xf32>
    %16 = arith.addf %12, %15 : vector<1x128xf32>
    %c0_14 = arith.constant 0 : index
    %c0_15 = arith.constant 0 : index
    %17 = vector.load %arg5[%c0_14, %c0_15] : memref<1x128xf32, #tpu.memory_space<vmem>>, vector<1x128xf32>
    tpu.vector_store %arg5[%c0_14, %c0_15], %16 {strides = array<i32>} : memref<1x128xf32, #tpu.memory_space<vmem>>, vector<1x128xf32>,
    return
  }
  func.func @transform_0(%arg0: i32) -> (i32, i32) {
    %c0_i32 = arith.constant 0 : i32
    %c0_i32_0 = arith.constant 0 : i32
    return %arg0, %c0_i32 : i32, i32
  }
  func.func @transform_1(%arg0: i32) -> (i32, i32) {
    %c0_i32 = arith.constant 0 : i32
    %c0_i32_0 = arith.constant 0 : i32
    %c0_i32_1 = arith.constant 0 : i32
    return %c0_i32, %c0_i32_0 : i32, i32
  }
  func.func @transform_2(%arg0: i32) -> (i32, i32) {
    %c0_i32 = arith.constant 0 : i32
    %c0_i32_0 = arith.constant 0 : i32
    return %arg0, %c0_i32 : i32, i32
  }
  func.func @transform_3(%arg0: i32) -> (i32, i32) {
    %c0_i32 = arith.constant 0 : i32
    %c0_i32_0 = arith.constant 0 : i32
    %c0_i32_1 = arith.constant 0 : i32
    return %c0_i32, %c0_i32_0 : i32, i32
  }
  func.func @transform_4(%arg0: i32) -> (i32, i32) {
    %c0_i32 = arith.constant 0 : i32
    %c0_i32_0 = arith.constant 0 : i32
    %c0_i32_1 = arith.constant 0 : i32
    return %c0_i32, %c0_i32_0 : i32, i32
  }
}

module attributes {stable_mosaic.version = 11 : i64} {
  func.func @kernel(%arg0: i32, %arg1: memref<512x128xf32, #tpu.memory_space<vmem>>, %arg2: memref<1x128xf32, #tpu.memory_space<vmem>>, %arg3: memref<1x128xf32, #tpu.memory_space<vmem>>, %arg4: memref<1x128xf32, #tpu.memory_space<vmem>>, %arg5: memref<1x128xf32, #tpu.memory_space<vmem>>, %arg6: memref<512x128xbf16, #tpu.memory_space<vmem>>) attributes {dimension_semantics = [#tpu.dimension_semantics<parallel>], iteration_bounds = array<i64: 1>, scalar_prefetch = 0 : i64, scratch_operands = 0 : i64, tpu.core_type = #tpu.core_type<tc>, window_params = [{transform_indices = @transform_0, window_bounds = array<i64: 512, 128>}, {pipeline_mode = #tpu.pipeline_mode<synchronous>, transform_indices = @transform_1, window_bounds = array<i64: 1, 128>}, {pipeline_mode = #tpu.pipeline_mode<synchronous>, transform_indices = @transform_2, window_bounds = array<i64: 1, 128>}, {pipeline_mode = #tpu.pipeline_mode<synchronous>, transform_indices = @transform_3, window_bounds = array<i64: 1, 128>}, {pipeline_mode = #tpu.pipeline_mode<synchronous>, transform_indices = @transform_4, window_bounds = array<i64: 1, 128>}, {transform_indices = @transform_5, window_bounds = array<i64: 512, 128>}]} {
    %c0 = arith.constant 0 : index
    %c0_0 = arith.constant 0 : index
    %0 = vector.load %arg1[%c0, %c0_0] : memref<512x128xf32, #tpu.memory_space<vmem>>, vector<512x128xf32>
    %c0_1 = arith.constant 0 : index
    %c0_2 = arith.constant 0 : index
    %1 = vector.load %arg2[%c0_1, %c0_2] : memref<1x128xf32, #tpu.memory_space<vmem>>, vector<1x128xf32>
    %c0_3 = arith.constant 0 : index
    %c0_4 = arith.constant 0 : index
    %2 = vector.load %arg3[%c0_3, %c0_4] : memref<1x128xf32, #tpu.memory_space<vmem>>, vector<1x128xf32>
    %c0_5 = arith.constant 0 : index
    %c0_6 = arith.constant 0 : index
    %3 = vector.load %arg4[%c0_5, %c0_6] : memref<1x128xf32, #tpu.memory_space<vmem>>, vector<1x128xf32>
    %c0_7 = arith.constant 0 : index
    %c0_8 = arith.constant 0 : index
    %4 = vector.load %arg5[%c0_7, %c0_8] : memref<1x128xf32, #tpu.memory_space<vmem>>, vector<1x128xf32>
    %cst = arith.constant 0.001953125 : f32
    %5 = vector.broadcast %cst : f32 to vector<1x128xf32>
    %6 = arith.mulf %1, %5 : vector<1x128xf32>
    %cst_9 = arith.constant 0.001953125 : f32
    %7 = vector.broadcast %cst_9 : f32 to vector<1x128xf32>
    %8 = arith.mulf %2, %7 : vector<1x128xf32>
    %9 = arith.mulf %6, %6 : vector<1x128xf32>
    %10 = arith.subf %8, %9 : vector<1x128xf32>
    %cst_10 = arith.constant 0.000000e+00 : f32
    %11 = vector.broadcast %cst_10 : f32 to vector<1x128xf32>
    %12 = arith.maximumf %10, %11 : vector<1x128xf32>
    %13 = vector.broadcast %6 : vector<1x128xf32> to vector<512x128xf32>
    %14 = arith.subf %0, %13 : vector<512x128xf32>
    %cst_11 = arith.constant 9.99999974E-6 : f32
    %15 = vector.broadcast %cst_11 : f32 to vector<1x128xf32>
    %16 = arith.addf %12, %15 : vector<1x128xf32>
    %17 = math.rsqrt %16 : vector<1x128xf32>
    %18 = arith.mulf %3, %17 : vector<1x128xf32>
    %19 = vector.broadcast %18 : vector<1x128xf32> to vector<512x128xf32>
    %20 = arith.mulf %14, %19 : vector<512x128xf32>
    %21 = vector.broadcast %4 : vector<1x128xf32> to vector<512x128xf32>
    %22 = arith.addf %20, %21 : vector<512x128xf32>
    %cst_12 = arith.constant 1.000000e-01 : f32
    %23 = vector.broadcast %cst_12 : f32 to vector<512x128xf32>
    %24 = arith.addf %22, %23 : vector<512x128xf32>
    %cst_13 = arith.constant 2.000000e+01 : f32
    %25 = vector.broadcast %cst_13 : f32 to vector<512x128xf32>
    %26 = arith.minimumf %24, %25 : vector<512x128xf32>
    %27 = math.exp %26 : vector<512x128xf32>
    %cst_14 = arith.constant 1.000000e+00 : f32
    %28 = vector.broadcast %cst_14 : f32 to vector<512x128xf32>
    %29 = arith.addf %28, %27 : vector<512x128xf32>
    %cst_15 = arith.constant 1.000000e+00 : f32
    %30 = vector.broadcast %cst_15 : f32 to vector<512x128xf32>
    %31 = arith.addf %30, %27 : vector<512x128xf32>
    %32 = arith.mulf %29, %31 : vector<512x128xf32>
    %cst_16 = arith.constant 1.000000e+00 : f32
    %33 = vector.broadcast %cst_16 : f32 to vector<512x128xf32>
    %34 = arith.subf %32, %33 : vector<512x128xf32>
    %35 = arith.mulf %24, %34 : vector<512x128xf32>
    %cst_17 = arith.constant 1.000000e+00 : f32
    %36 = vector.broadcast %cst_17 : f32 to vector<512x128xf32>
    %37 = arith.addf %32, %36 : vector<512x128xf32>
    %38 = tpu.reciprocal %37 {approx = true} : vector<512x128xf32> -> vector<512x128xf32>
    %39 = arith.mulf %35, %38 : vector<512x128xf32>
    %40 = arith.truncf %39 : vector<512x128xf32> to vector<512x128xbf16>
    %c0_18 = arith.constant 0 : index
    %c0_19 = arith.constant 0 : index
    %41 = vector.load %arg6[%c0_18, %c0_19] : memref<512x128xbf16, #tpu.memory_space<vmem>>, vector<512x128xbf16>
    tpu.vector_store %arg6[%c0_18, %c0_19], %40 {strides = array<i32>} : memref<512x128xbf16, #tpu.memory_space<vmem>>, vector<512x128xbf16>,
    return
  }
  func.func @transform_0(%arg0: i32) -> (i32, i32) {
    %c0_i32 = arith.constant 0 : i32
    %c0_i32_0 = arith.constant 0 : i32
    return %arg0, %c0_i32 : i32, i32
  }
  func.func @transform_1(%arg0: i32) -> (i32, i32) {
    %c0_i32 = arith.constant 0 : i32
    %c0_i32_0 = arith.constant 0 : i32
    %c0_i32_1 = arith.constant 0 : i32
    return %c0_i32, %c0_i32_0 : i32, i32
  }
  func.func @transform_2(%arg0: i32) -> (i32, i32) {
    %c0_i32 = arith.constant 0 : i32
    %c0_i32_0 = arith.constant 0 : i32
    %c0_i32_1 = arith.constant 0 : i32
    return %c0_i32, %c0_i32_0 : i32, i32
  }
  func.func @transform_3(%arg0: i32) -> (i32, i32) {
    %c0_i32 = arith.constant 0 : i32
    %c0_i32_0 = arith.constant 0 : i32
    %c0_i32_1 = arith.constant 0 : i32
    return %c0_i32, %c0_i32_0 : i32, i32
  }
  func.func @transform_4(%arg0: i32) -> (i32, i32) {
    %c0_i32 = arith.constant 0 : i32
    %c0_i32_0 = arith.constant 0 : i32
    %c0_i32_1 = arith.constant 0 : i32
    return %c0_i32, %c0_i32_0 : i32, i32
  }
  func.func @transform_5(%arg0: i32) -> (i32, i32) {
    %c0_i32 = arith.constant 0 : i32
    %c0_i32_0 = arith.constant 0 : i32
    return %arg0, %c0_i32 : i32, i32
  }
}

module attributes {stable_mosaic.version = 11 : i64} {
  func.func @_gemm_stats_kernel(%arg0: i32, %arg1: memref<128x1152xbf16, #tpu.memory_space<vmem>>, %arg2: memref<1152x128xbf16, #tpu.memory_space<vmem>>, %arg3: memref<128x128xf32, #tpu.memory_space<vmem>>, %arg4: memref<1x128xf32, #tpu.memory_space<vmem>>, %arg5: memref<1x128xf32, #tpu.memory_space<vmem>>) attributes {dimension_semantics = [#tpu.dimension_semantics<arbitrary>], iteration_bounds = array<i64: 1>, scalar_prefetch = 0 : i64, scratch_operands = 0 : i64, tpu.core_type = #tpu.core_type<tc>, window_params = [{transform_indices = @transform_0, window_bounds = array<i64: 128, 1152>}, {pipeline_mode = #tpu.pipeline_mode<synchronous>, transform_indices = @transform_1, window_bounds = array<i64: 1152, 128>}, {transform_indices = @transform_2, window_bounds = array<i64: 128, 128>}, {pipeline_mode = #tpu.pipeline_mode<synchronous>, transform_indices = @transform_3, window_bounds = array<i64: 1, 128>}, {pipeline_mode = #tpu.pipeline_mode<synchronous>, transform_indices = @transform_4, window_bounds = array<i64: 1, 128>}]} {
    %c0 = arith.constant 0 : index
    %c0_0 = arith.constant 0 : index
    %0 = vector.load %arg1[%c0, %c0_0] : memref<128x1152xbf16, #tpu.memory_space<vmem>>, vector<128x1152xbf16>
    %c0_1 = arith.constant 0 : index
    %c0_2 = arith.constant 0 : index
    %1 = vector.load %arg2[%c0_1, %c0_2] : memref<1152x128xbf16, #tpu.memory_space<vmem>>, vector<1152x128xbf16>
    %cst = arith.constant dense<0.000000e+00> : vector<128x128xf32>
    %2 = tpu.matmul %0, %1, %cst {dimension_numbers = #tpu.dot_dimension_numbers<[1], [0], [0], [1], [0, 0, 1, 1], [], []>} : vector<128x1152xbf16>, vector<1152x128xbf16>, vector<128x128xf32> -> vector<128x128xf32>
    %c0_3 = arith.constant 0 : index
    %c0_4 = arith.constant 0 : index
    %3 = vector.load %arg3[%c0_3, %c0_4] : memref<128x128xf32, #tpu.memory_space<vmem>>, vector<128x128xf32>
    tpu.vector_store %arg3[%c0_3, %c0_4], %2 {strides = array<i32>} : memref<128x128xf32, #tpu.memory_space<vmem>>, vector<128x128xf32>,
    %c0_i32 = arith.constant 0 : i32
    %4 = arith.cmpi eq, %arg0, %c0_i32 : i32
    %5 = arith.extui %4 : i1 to i32
    %c0_i32_5 = arith.constant 0 : i32
    %6 = arith.cmpi ne, %5, %c0_i32_5 : i32
    scf.if %6 {
      %cst_16 = arith.constant 0.000000e+00 : f32
      %18 = vector.broadcast %cst_16 : f32 to vector<1x128xf32>
      %c0_17 = arith.constant 0 : index
      %c0_18 = arith.constant 0 : index
      %19 = vector.load %arg4[%c0_17, %c0_18] : memref<1x128xf32, #tpu.memory_space<vmem>>, vector<1x128xf32>
      tpu.vector_store %arg4[%c0_17, %c0_18], %18 {strides = array<i32>} : memref<1x128xf32, #tpu.memory_space<vmem>>, vector<1x128xf32>,
      %cst_19 = arith.constant 0.000000e+00 : f32
      %20 = vector.broadcast %cst_19 : f32 to vector<1x128xf32>
      %c0_20 = arith.constant 0 : index
      %c0_21 = arith.constant 0 : index
      %21 = vector.load %arg5[%c0_20, %c0_21] : memref<1x128xf32, #tpu.memory_space<vmem>>, vector<1x128xf32>
      tpu.vector_store %arg5[%c0_20, %c0_21], %20 {strides = array<i32>} : memref<1x128xf32, #tpu.memory_space<vmem>>, vector<1x128xf32>,
    } else {
    }
    %c0_6 = arith.constant 0 : index
    %c0_7 = arith.constant 0 : index
    %7 = vector.load %arg4[%c0_6, %c0_7] : memref<1x128xf32, #tpu.memory_space<vmem>>, vector<1x128xf32>
    %cst_8 = arith.constant dense<0.000000e+00> : vector<128xf32>
    %8 = vector.multi_reduction <add>, %2, %cst_8 [0] : vector<128x128xf32> to vector<128xf32>
    %9 = vector.shape_cast %8 : vector<128xf32> to vector<1x128xf32>
    %10 = arith.addf %7, %9 : vector<1x128xf32>
    %c0_9 = arith.constant 0 : index
    %c0_10 = arith.constant 0 : index
    %11 = vector.load %arg4[%c0_9, %c0_10] : memref<1x128xf32, #tpu.memory_space<vmem>>, vector<1x128xf32>
    tpu.vector_store %arg4[%c0_9, %c0_10], %10 {strides = array<i32>} : memref<1x128xf32, #tpu.memory_space<vmem>>, vector<1x128xf32>,
    %c0_11 = arith.constant 0 : index
    %c0_12 = arith.constant 0 : index
    %12 = vector.load %arg5[%c0_11, %c0_12] : memref<1x128xf32, #tpu.memory_space<vmem>>, vector<1x128xf32>
    %13 = arith.mulf %2, %2 : vector<128x128xf32>
    %cst_13 = arith.constant dense<0.000000e+00> : vector<128xf32>
    %14 = vector.multi_reduction <add>, %13, %cst_13 [0] : vector<128x128xf32> to vector<128xf32>
    %15 = vector.shape_cast %14 : vector<128xf32> to vector<1x128xf32>
    %16 = arith.addf %12, %15 : vector<1x128xf32>
    %c0_14 = arith.constant 0 : index
    %c0_15 = arith.constant 0 : index
    %17 = vector.load %arg5[%c0_14, %c0_15] : memref<1x128xf32, #tpu.memory_space<vmem>>, vector<1x128xf32>
    tpu.vector_store %arg5[%c0_14, %c0_15], %16 {strides = array<i32>} : memref<1x128xf32, #tpu.memory_space<vmem>>, vector<1x128xf32>,
    return
  }
  func.func @transform_0(%arg0: i32) -> (i32, i32) {
    %c0_i32 = arith.constant 0 : i32
    %c0_i32_0 = arith.constant 0 : i32
    return %arg0, %c0_i32 : i32, i32
  }
  func.func @transform_1(%arg0: i32) -> (i32, i32) {
    %c0_i32 = arith.constant 0 : i32
    %c0_i32_0 = arith.constant 0 : i32
    %c0_i32_1 = arith.constant 0 : i32
    return %c0_i32, %c0_i32_0 : i32, i32
  }
  func.func @transform_2(%arg0: i32) -> (i32, i32) {
    %c0_i32 = arith.constant 0 : i32
    %c0_i32_0 = arith.constant 0 : i32
    return %arg0, %c0_i32 : i32, i32
  }
  func.func @transform_3(%arg0: i32) -> (i32, i32) {
    %c0_i32 = arith.constant 0 : i32
    %c0_i32_0 = arith.constant 0 : i32
    %c0_i32_1 = arith.constant 0 : i32
    return %c0_i32, %c0_i32_0 : i32, i32
  }
  func.func @transform_4(%arg0: i32) -> (i32, i32) {
    %c0_i32 = arith.constant 0 : i32
    %c0_i32_0 = arith.constant 0 : i32
    %c0_i32_1 = arith.constant 0 : i32
    return %c0_i32, %c0_i32_0 : i32, i32
  }
}

module attributes {stable_mosaic.version = 11 : i64} {
  func.func @kernel(%arg0: i32, %arg1: memref<128x128xf32, #tpu.memory_space<vmem>>, %arg2: memref<1x128xf32, #tpu.memory_space<vmem>>, %arg3: memref<1x128xf32, #tpu.memory_space<vmem>>, %arg4: memref<1x128xf32, #tpu.memory_space<vmem>>, %arg5: memref<1x128xf32, #tpu.memory_space<vmem>>, %arg6: memref<128x128xbf16, #tpu.memory_space<vmem>>, %arg7: memref<128x128xf32, #tpu.memory_space<vmem>>, %arg8: memref<1x128xf32, #tpu.memory_space<vmem>>, %arg9: memref<1x128xf32, #tpu.memory_space<vmem>>) attributes {dimension_semantics = [#tpu.dimension_semantics<arbitrary>], iteration_bounds = array<i64: 1>, scalar_prefetch = 0 : i64, scratch_operands = 0 : i64, tpu.core_type = #tpu.core_type<tc>, window_params = [{transform_indices = @transform_0, window_bounds = array<i64: 128, 128>}, {pipeline_mode = #tpu.pipeline_mode<synchronous>, transform_indices = @transform_1, window_bounds = array<i64: 1, 128>}, {pipeline_mode = #tpu.pipeline_mode<synchronous>, transform_indices = @transform_2, window_bounds = array<i64: 1, 128>}, {pipeline_mode = #tpu.pipeline_mode<synchronous>, transform_indices = @transform_3, window_bounds = array<i64: 1, 128>}, {pipeline_mode = #tpu.pipeline_mode<synchronous>, transform_indices = @transform_4, window_bounds = array<i64: 1, 128>}, {pipeline_mode = #tpu.pipeline_mode<synchronous>, transform_indices = @transform_5, window_bounds = array<i64: 128, 128>}, {transform_indices = @transform_6, window_bounds = array<i64: 128, 128>}, {pipeline_mode = #tpu.pipeline_mode<synchronous>, transform_indices = @transform_7, window_bounds = array<i64: 1, 128>}, {pipeline_mode = #tpu.pipeline_mode<synchronous>, transform_indices = @transform_8, window_bounds = array<i64: 1, 128>}]} {
    %c0 = arith.constant 0 : index
    %c0_0 = arith.constant 0 : index
    %0 = vector.load %arg1[%c0, %c0_0] : memref<128x128xf32, #tpu.memory_space<vmem>>, vector<128x128xf32>
    %c0_1 = arith.constant 0 : index
    %c0_2 = arith.constant 0 : index
    %1 = vector.load %arg2[%c0_1, %c0_2] : memref<1x128xf32, #tpu.memory_space<vmem>>, vector<1x128xf32>
    %c0_3 = arith.constant 0 : index
    %c0_4 = arith.constant 0 : index
    %2 = vector.load %arg3[%c0_3, %c0_4] : memref<1x128xf32, #tpu.memory_space<vmem>>, vector<1x128xf32>
    %c0_5 = arith.constant 0 : index
    %c0_6 = arith.constant 0 : index
    %3 = vector.load %arg4[%c0_5, %c0_6] : memref<1x128xf32, #tpu.memory_space<vmem>>, vector<1x128xf32>
    %c0_7 = arith.constant 0 : index
    %c0_8 = arith.constant 0 : index
    %4 = vector.load %arg5[%c0_7, %c0_8] : memref<1x128xf32, #tpu.memory_space<vmem>>, vector<1x128xf32>
    %cst = arith.constant 7.812500e-03 : f32
    %5 = vector.broadcast %cst : f32 to vector<1x128xf32>
    %6 = arith.mulf %1, %5 : vector<1x128xf32>
    %cst_9 = arith.constant 7.812500e-03 : f32
    %7 = vector.broadcast %cst_9 : f32 to vector<1x128xf32>
    %8 = arith.mulf %2, %7 : vector<1x128xf32>
    %9 = arith.mulf %6, %6 : vector<1x128xf32>
    %10 = arith.subf %8, %9 : vector<1x128xf32>
    %cst_10 = arith.constant 0.000000e+00 : f32
    %11 = vector.broadcast %cst_10 : f32 to vector<1x128xf32>
    %12 = arith.maximumf %10, %11 : vector<1x128xf32>
    %13 = vector.broadcast %6 : vector<1x128xf32> to vector<128x128xf32>
    %14 = arith.subf %0, %13 : vector<128x128xf32>
    %cst_11 = arith.constant 9.99999974E-6 : f32
    %15 = vector.broadcast %cst_11 : f32 to vector<1x128xf32>
    %16 = arith.addf %12, %15 : vector<1x128xf32>
    %17 = math.rsqrt %16 : vector<1x128xf32>
    %18 = arith.mulf %3, %17 : vector<1x128xf32>
    %19 = vector.broadcast %18 : vector<1x128xf32> to vector<128x128xf32>
    %20 = arith.mulf %14, %19 : vector<128x128xf32>
    %21 = vector.broadcast %4 : vector<1x128xf32> to vector<128x128xf32>
    %22 = arith.addf %20, %21 : vector<128x128xf32>
    %cst_12 = arith.constant 1.000000e-01 : f32
    %23 = vector.broadcast %cst_12 : f32 to vector<128x128xf32>
    %24 = arith.addf %22, %23 : vector<128x128xf32>
    %cst_13 = arith.constant 2.000000e+01 : f32
    %25 = vector.broadcast %cst_13 : f32 to vector<128x128xf32>
    %26 = arith.minimumf %24, %25 : vector<128x128xf32>
    %27 = math.exp %26 : vector<128x128xf32>
    %cst_14 = arith.constant 1.000000e+00 : f32
    %28 = vector.broadcast %cst_14 : f32 to vector<128x128xf32>
    %29 = arith.addf %28, %27 : vector<128x128xf32>
    %cst_15 = arith.constant 1.000000e+00 : f32
    %30 = vector.broadcast %cst_15 : f32 to vector<128x128xf32>
    %31 = arith.addf %30, %27 : vector<128x128xf32>
    %32 = arith.mulf %29, %31 : vector<128x128xf32>
    %cst_16 = arith.constant 1.000000e+00 : f32
    %33 = vector.broadcast %cst_16 : f32 to vector<128x128xf32>
    %34 = arith.subf %32, %33 : vector<128x128xf32>
    %35 = arith.mulf %24, %34 : vector<128x128xf32>
    %cst_17 = arith.constant 1.000000e+00 : f32
    %36 = vector.broadcast %cst_17 : f32 to vector<128x128xf32>
    %37 = arith.addf %32, %36 : vector<128x128xf32>
    %38 = tpu.reciprocal %37 {approx = true} : vector<128x128xf32> -> vector<128x128xf32>
    %39 = arith.mulf %35, %38 : vector<128x128xf32>
    %40 = tpu.iota {dimensions = array<i32: 0>} : vector<128x1xi32>
    %c128_i32 = arith.constant 128 : i32
    %41 = arith.muli %arg0, %c128_i32 : i32
    %42 = vector.broadcast %41 : i32 to vector<128x1xi32>
    %43 = arith.addi %40, %42 : vector<128x1xi32>
    %c128_i32_18 = arith.constant 128 : i32
    %44 = vector.broadcast %c128_i32_18 : i32 to vector<128x1xi32>
    %45 = arith.cmpi slt, %43, %44 : vector<128x1xi32>
    %cst_19 = arith.constant 0.000000e+00 : f32
    %46 = vector.shape_cast %45 : vector<128x1xi1> to vector<128x1xi1>
    %47 = vector.broadcast %46 : vector<128x1xi1> to vector<128x128xi1>
    %48 = vector.broadcast %cst_19 : f32 to vector<128x128xf32>
    %49 = arith.select %47, %39, %48 : vector<128x128xi1>, vector<128x128xf32>
    %50 = arith.truncf %49 : vector<128x128xf32> to vector<128x128xbf16>
    %c0_20 = arith.constant 0 : index
    %c0_21 = arith.constant 0 : index
    %51 = vector.load %arg6[%c0_20, %c0_21] : memref<128x128xbf16, #tpu.memory_space<vmem>>, vector<128x128xbf16>
    %cst_22 = arith.constant dense<0.000000e+00> : vector<128x128xf32>
    %52 = tpu.matmul %50, %51, %cst_22 {dimension_numbers = #tpu.dot_dimension_numbers<[1], [0], [0], [1], [0, 0, 1, 1], [], []>} : vector<128x128xbf16>, vector<128x128xbf16>, vector<128x128xf32> -> vector<128x128xf32>
    %c0_23 = arith.constant 0 : index
    %c0_24 = arith.constant 0 : index
    %53 = vector.load %arg7[%c0_23, %c0_24] : memref<128x128xf32, #tpu.memory_space<vmem>>, vector<128x128xf32>
    tpu.vector_store %arg7[%c0_23, %c0_24], %52 {strides = array<i32>} : memref<128x128xf32, #tpu.memory_space<vmem>>, vector<128x128xf32>,
    %c0_i32 = arith.constant 0 : i32
    %54 = arith.cmpi eq, %arg0, %c0_i32 : i32
    %55 = arith.extui %54 : i1 to i32
    %c0_i32_25 = arith.constant 0 : i32
    %56 = arith.cmpi ne, %55, %c0_i32_25 : i32
    scf.if %56 {
      %cst_36 = arith.constant 0.000000e+00 : f32
      %68 = vector.broadcast %cst_36 : f32 to vector<1x128xf32>
      %c0_37 = arith.constant 0 : index
      %c0_38 = arith.constant 0 : index
      %69 = vector.load %arg8[%c0_37, %c0_38] : memref<1x128xf32, #tpu.memory_space<vmem>>, vector<1x128xf32>
      tpu.vector_store %arg8[%c0_37, %c0_38], %68 {strides = array<i32>} : memref<1x128xf32, #tpu.memory_space<vmem>>, vector<1x128xf32>,
      %cst_39 = arith.constant 0.000000e+00 : f32
      %70 = vector.broadcast %cst_39 : f32 to vector<1x128xf32>
      %c0_40 = arith.constant 0 : index
      %c0_41 = arith.constant 0 : index
      %71 = vector.load %arg9[%c0_40, %c0_41] : memref<1x128xf32, #tpu.memory_space<vmem>>, vector<1x128xf32>
      tpu.vector_store %arg9[%c0_40, %c0_41], %70 {strides = array<i32>} : memref<1x128xf32, #tpu.memory_space<vmem>>, vector<1x128xf32>,
    } else {
    }
    %c0_26 = arith.constant 0 : index
    %c0_27 = arith.constant 0 : index
    %57 = vector.load %arg8[%c0_26, %c0_27] : memref<1x128xf32, #tpu.memory_space<vmem>>, vector<1x128xf32>
    %cst_28 = arith.constant dense<0.000000e+00> : vector<128xf32>
    %58 = vector.multi_reduction <add>, %52, %cst_28 [0] : vector<128x128xf32> to vector<128xf32>
    %59 = vector.shape_cast %58 : vector<128xf32> to vector<1x128xf32>
    %60 = arith.addf %57, %59 : vector<1x128xf32>
    %c0_29 = arith.constant 0 : index
    %c0_30 = arith.constant 0 : index
    %61 = vector.load %arg8[%c0_29, %c0_30] : memref<1x128xf32, #tpu.memory_space<vmem>>, vector<1x128xf32>
    tpu.vector_store %arg8[%c0_29, %c0_30], %60 {strides = array<i32>} : memref<1x128xf32, #tpu.memory_space<vmem>>, vector<1x128xf32>,
    %c0_31 = arith.constant 0 : index
    %c0_32 = arith.constant 0 : index
    %62 = vector.load %arg9[%c0_31, %c0_32] : memref<1x128xf32, #tpu.memory_space<vmem>>, vector<1x128xf32>
    %63 = arith.mulf %52, %52 : vector<128x128xf32>
    %cst_33 = arith.constant dense<0.000000e+00> : vector<128xf32>
    %64 = vector.multi_reduction <add>, %63, %cst_33 [0] : vector<128x128xf32> to vector<128xf32>
    %65 = vector.shape_cast %64 : vector<128xf32> to vector<1x128xf32>
    %66 = arith.addf %62, %65 : vector<1x128xf32>
    %c0_34 = arith.constant 0 : index
    %c0_35 = arith.constant 0 : index
    %67 = vector.load %arg9[%c0_34, %c0_35] : memref<1x128xf32, #tpu.memory_space<vmem>>, vector<1x128xf32>
    tpu.vector_store %arg9[%c0_34, %c0_35], %66 {strides = array<i32>} : memref<1x128xf32, #tpu.memory_space<vmem>>, vector<1x128xf32>,
    return
  }
  func.func @transform_0(%arg0: i32) -> (i32, i32) {
    %c0_i32 = arith.constant 0 : i32
    %c0_i32_0 = arith.constant 0 : i32
    return %arg0, %c0_i32 : i32, i32
  }
  func.func @transform_1(%arg0: i32) -> (i32, i32) {
    %c0_i32 = arith.constant 0 : i32
    %c0_i32_0 = arith.constant 0 : i32
    %c0_i32_1 = arith.constant 0 : i32
    return %c0_i32, %c0_i32_0 : i32, i32
  }
  func.func @transform_2(%arg0: i32) -> (i32, i32) {
    %c0_i32 = arith.constant 0 : i32
    %c0_i32_0 = arith.constant 0 : i32
    %c0_i32_1 = arith.constant 0 : i32
    return %c0_i32, %c0_i32_0 : i32, i32
  }
  func.func @transform_3(%arg0: i32) -> (i32, i32) {
    %c0_i32 = arith.constant 0 : i32
    %c0_i32_0 = arith.constant 0 : i32
    %c0_i32_1 = arith.constant 0 : i32
    return %c0_i32, %c0_i32_0 : i32, i32
  }
  func.func @transform_4(%arg0: i32) -> (i32, i32) {
    %c0_i32 = arith.constant 0 : i32
    %c0_i32_0 = arith.constant 0 : i32
    %c0_i32_1 = arith.constant 0 : i32
    return %c0_i32, %c0_i32_0 : i32, i32
  }
  func.func @transform_5(%arg0: i32) -> (i32, i32) {
    %c0_i32 = arith.constant 0 : i32
    %c0_i32_0 = arith.constant 0 : i32
    %c0_i32_1 = arith.constant 0 : i32
    return %c0_i32, %c0_i32_0 : i32, i32
  }
  func.func @transform_6(%arg0: i32) -> (i32, i32) {
    %c0_i32 = arith.constant 0 : i32
    %c0_i32_0 = arith.constant 0 : i32
    return %arg0, %c0_i32 : i32, i32
  }
  func.func @transform_7(%arg0: i32) -> (i32, i32) {
    %c0_i32 = arith.constant 0 : i32
    %c0_i32_0 = arith.constant 0 : i32
    %c0_i32_1 = arith.constant 0 : i32
    return %c0_i32, %c0_i32_0 : i32, i32
  }
  func.func @transform_8(%arg0: i32) -> (i32, i32) {
    %c0_i32 = arith.constant 0 : i32
    %c0_i32_0 = arith.constant 0 : i32
    %c0_i32_1 = arith.constant 0 : i32
    return %c0_i32, %c0_i32_0 : i32, i32
  }
}

module attributes {stable_mosaic.version = 11 : i64} {
  func.func @_gemm_stats_kernel(%arg0: i32, %arg1: memref<128x32xbf16, #tpu.memory_space<vmem>>, %arg2: memref<32x128xbf16, #tpu.memory_space<vmem>>, %arg3: memref<128x128xf32, #tpu.memory_space<vmem>>, %arg4: memref<1x128xf32, #tpu.memory_space<vmem>>, %arg5: memref<1x128xf32, #tpu.memory_space<vmem>>) attributes {dimension_semantics = [#tpu.dimension_semantics<arbitrary>], iteration_bounds = array<i64: 1>, scalar_prefetch = 0 : i64, scratch_operands = 0 : i64, tpu.core_type = #tpu.core_type<tc>, window_params = [{transform_indices = @transform_0, window_bounds = array<i64: 128, 32>}, {pipeline_mode = #tpu.pipeline_mode<synchronous>, transform_indices = @transform_1, window_bounds = array<i64: 32, 128>}, {transform_indices = @transform_2, window_bounds = array<i64: 128, 128>}, {pipeline_mode = #tpu.pipeline_mode<synchronous>, transform_indices = @transform_3, window_bounds = array<i64: 1, 128>}, {pipeline_mode = #tpu.pipeline_mode<synchronous>, transform_indices = @transform_4, window_bounds = array<i64: 1, 128>}]} {
    %c0 = arith.constant 0 : index
    %c0_0 = arith.constant 0 : index
    %0 = vector.load %arg1[%c0, %c0_0] : memref<128x32xbf16, #tpu.memory_space<vmem>>, vector<128x32xbf16>
    %c0_1 = arith.constant 0 : index
    %c0_2 = arith.constant 0 : index
    %1 = vector.load %arg2[%c0_1, %c0_2] : memref<32x128xbf16, #tpu.memory_space<vmem>>, vector<32x128xbf16>
    %cst = arith.constant dense<0.000000e+00> : vector<128x128xf32>
    %2 = tpu.matmul %0, %1, %cst {dimension_numbers = #tpu.dot_dimension_numbers<[1], [0], [0], [1], [0, 0, 1, 1], [], []>} : vector<128x32xbf16>, vector<32x128xbf16>, vector<128x128xf32> -> vector<128x128xf32>
    %c0_3 = arith.constant 0 : index
    %c0_4 = arith.constant 0 : index
    %3 = vector.load %arg3[%c0_3, %c0_4] : memref<128x128xf32, #tpu.memory_space<vmem>>, vector<128x128xf32>
    tpu.vector_store %arg3[%c0_3, %c0_4], %2 {strides = array<i32>} : memref<128x128xf32, #tpu.memory_space<vmem>>, vector<128x128xf32>,
    %c0_i32 = arith.constant 0 : i32
    %4 = arith.cmpi eq, %arg0, %c0_i32 : i32
    %5 = arith.extui %4 : i1 to i32
    %c0_i32_5 = arith.constant 0 : i32
    %6 = arith.cmpi ne, %5, %c0_i32_5 : i32
    scf.if %6 {
      %cst_16 = arith.constant 0.000000e+00 : f32
      %18 = vector.broadcast %cst_16 : f32 to vector<1x128xf32>
      %c0_17 = arith.constant 0 : index
      %c0_18 = arith.constant 0 : index
      %19 = vector.load %arg4[%c0_17, %c0_18] : memref<1x128xf32, #tpu.memory_space<vmem>>, vector<1x128xf32>
      tpu.vector_store %arg4[%c0_17, %c0_18], %18 {strides = array<i32>} : memref<1x128xf32, #tpu.memory_space<vmem>>, vector<1x128xf32>,
      %cst_19 = arith.constant 0.000000e+00 : f32
      %20 = vector.broadcast %cst_19 : f32 to vector<1x128xf32>
      %c0_20 = arith.constant 0 : index
      %c0_21 = arith.constant 0 : index
      %21 = vector.load %arg5[%c0_20, %c0_21] : memref<1x128xf32, #tpu.memory_space<vmem>>, vector<1x128xf32>
      tpu.vector_store %arg5[%c0_20, %c0_21], %20 {strides = array<i32>} : memref<1x128xf32, #tpu.memory_space<vmem>>, vector<1x128xf32>,
    } else {
    }
    %c0_6 = arith.constant 0 : index
    %c0_7 = arith.constant 0 : index
    %7 = vector.load %arg4[%c0_6, %c0_7] : memref<1x128xf32, #tpu.memory_space<vmem>>, vector<1x128xf32>
    %cst_8 = arith.constant dense<0.000000e+00> : vector<128xf32>
    %8 = vector.multi_reduction <add>, %2, %cst_8 [0] : vector<128x128xf32> to vector<128xf32>
    %9 = vector.shape_cast %8 : vector<128xf32> to vector<1x128xf32>
    %10 = arith.addf %7, %9 : vector<1x128xf32>
    %c0_9 = arith.constant 0 : index
    %c0_10 = arith.constant 0 : index
    %11 = vector.load %arg4[%c0_9, %c0_10] : memref<1x128xf32, #tpu.memory_space<vmem>>, vector<1x128xf32>
    tpu.vector_store %arg4[%c0_9, %c0_10], %10 {strides = array<i32>} : memref<1x128xf32, #tpu.memory_space<vmem>>, vector<1x128xf32>,
    %c0_11 = arith.constant 0 : index
    %c0_12 = arith.constant 0 : index
    %12 = vector.load %arg5[%c0_11, %c0_12] : memref<1x128xf32, #tpu.memory_space<vmem>>, vector<1x128xf32>
    %13 = arith.mulf %2, %2 : vector<128x128xf32>
    %cst_13 = arith.constant dense<0.000000e+00> : vector<128xf32>
    %14 = vector.multi_reduction <add>, %13, %cst_13 [0] : vector<128x128xf32> to vector<128xf32>
    %15 = vector.shape_cast %14 : vector<128xf32> to vector<1x128xf32>
    %16 = arith.addf %12, %15 : vector<1x128xf32>
    %c0_14 = arith.constant 0 : index
    %c0_15 = arith.constant 0 : index
    %17 = vector.load %arg5[%c0_14, %c0_15] : memref<1x128xf32, #tpu.memory_space<vmem>>, vector<1x128xf32>
    tpu.vector_store %arg5[%c0_14, %c0_15], %16 {strides = array<i32>} : memref<1x128xf32, #tpu.memory_space<vmem>>, vector<1x128xf32>,
    return
  }
  func.func @transform_0(%arg0: i32) -> (i32, i32) {
    %c0_i32 = arith.constant 0 : i32
    %c0_i32_0 = arith.constant 0 : i32
    return %arg0, %c0_i32 : i32, i32
  }
  func.func @transform_1(%arg0: i32) -> (i32, i32) {
    %c0_i32 = arith.constant 0 : i32
    %c0_i32_0 = arith.constant 0 : i32
    %c0_i32_1 = arith.constant 0 : i32
    return %c0_i32, %c0_i32_0 : i32, i32
  }
  func.func @transform_2(%arg0: i32) -> (i32, i32) {
    %c0_i32 = arith.constant 0 : i32
    %c0_i32_0 = arith.constant 0 : i32
    return %arg0, %c0_i32 : i32, i32
  }
  func.func @transform_3(%arg0: i32) -> (i32, i32) {
    %c0_i32 = arith.constant 0 : i32
    %c0_i32_0 = arith.constant 0 : i32
    %c0_i32_1 = arith.constant 0 : i32
    return %c0_i32, %c0_i32_0 : i32, i32
  }
  func.func @transform_4(%arg0: i32) -> (i32, i32) {
    %c0_i32 = arith.constant 0 : i32
    %c0_i32_0 = arith.constant 0 : i32
    %c0_i32_1 = arith.constant 0 : i32
    return %c0_i32, %c0_i32_0 : i32, i32
  }
}

module attributes {stable_mosaic.version = 11 : i64} {
  func.func @kernel(%arg0: i32, %arg1: memref<128x128xf32, #tpu.memory_space<vmem>>, %arg2: memref<1x128xf32, #tpu.memory_space<vmem>>, %arg3: memref<1x128xf32, #tpu.memory_space<vmem>>, %arg4: memref<1x128xf32, #tpu.memory_space<vmem>>, %arg5: memref<1x128xf32, #tpu.memory_space<vmem>>, %arg6: memref<128x128xf32, #tpu.memory_space<vmem>>, %arg7: memref<1x128xf32, #tpu.memory_space<vmem>>, %arg8: memref<1x128xf32, #tpu.memory_space<vmem>>, %arg9: memref<1x128xf32, #tpu.memory_space<vmem>>, %arg10: memref<1x128xf32, #tpu.memory_space<vmem>>, %arg11: memref<128x128xf32, #tpu.memory_space<vmem>>) attributes {dimension_semantics = [#tpu.dimension_semantics<parallel>], iteration_bounds = array<i64: 1>, scalar_prefetch = 0 : i64, scratch_operands = 0 : i64, tpu.core_type = #tpu.core_type<tc>, window_params = [{transform_indices = @transform_0, window_bounds = array<i64: 128, 128>}, {pipeline_mode = #tpu.pipeline_mode<synchronous>, transform_indices = @transform_1, window_bounds = array<i64: 1, 128>}, {pipeline_mode = #tpu.pipeline_mode<synchronous>, transform_indices = @transform_2, window_bounds = array<i64: 1, 128>}, {pipeline_mode = #tpu.pipeline_mode<synchronous>, transform_indices = @transform_3, window_bounds = array<i64: 1, 128>}, {pipeline_mode = #tpu.pipeline_mode<synchronous>, transform_indices = @transform_4, window_bounds = array<i64: 1, 128>}, {transform_indices = @transform_5, window_bounds = array<i64: 128, 128>}, {pipeline_mode = #tpu.pipeline_mode<synchronous>, transform_indices = @transform_6, window_bounds = array<i64: 1, 128>}, {pipeline_mode = #tpu.pipeline_mode<synchronous>, transform_indices = @transform_7, window_bounds = array<i64: 1, 128>}, {pipeline_mode = #tpu.pipeline_mode<synchronous>, transform_indices = @transform_8, window_bounds = array<i64: 1, 128>}, {pipeline_mode = #tpu.pipeline_mode<synchronous>, transform_indices = @transform_9, window_bounds = array<i64: 1, 128>}, {transform_indices = @transform_10, window_bounds = array<i64: 128, 128>}]} {
    %c0 = arith.constant 0 : index
    %c0_0 = arith.constant 0 : index
    %0 = vector.load %arg1[%c0, %c0_0] : memref<128x128xf32, #tpu.memory_space<vmem>>, vector<128x128xf32>
    %c0_1 = arith.constant 0 : index
    %c0_2 = arith.constant 0 : index
    %1 = vector.load %arg2[%c0_1, %c0_2] : memref<1x128xf32, #tpu.memory_space<vmem>>, vector<1x128xf32>
    %c0_3 = arith.constant 0 : index
    %c0_4 = arith.constant 0 : index
    %2 = vector.load %arg3[%c0_3, %c0_4] : memref<1x128xf32, #tpu.memory_space<vmem>>, vector<1x128xf32>
    %c0_5 = arith.constant 0 : index
    %c0_6 = arith.constant 0 : index
    %3 = vector.load %arg4[%c0_5, %c0_6] : memref<1x128xf32, #tpu.memory_space<vmem>>, vector<1x128xf32>
    %c0_7 = arith.constant 0 : index
    %c0_8 = arith.constant 0 : index
    %4 = vector.load %arg5[%c0_7, %c0_8] : memref<1x128xf32, #tpu.memory_space<vmem>>, vector<1x128xf32>
    %cst = arith.constant 7.812500e-03 : f32
    %5 = vector.broadcast %cst : f32 to vector<1x128xf32>
    %6 = arith.mulf %1, %5 : vector<1x128xf32>
    %cst_9 = arith.constant 7.812500e-03 : f32
    %7 = vector.broadcast %cst_9 : f32 to vector<1x128xf32>
    %8 = arith.mulf %2, %7 : vector<1x128xf32>
    %9 = arith.mulf %6, %6 : vector<1x128xf32>
    %10 = arith.subf %8, %9 : vector<1x128xf32>
    %cst_10 = arith.constant 0.000000e+00 : f32
    %11 = vector.broadcast %cst_10 : f32 to vector<1x128xf32>
    %12 = arith.maximumf %10, %11 : vector<1x128xf32>
    %13 = vector.broadcast %6 : vector<1x128xf32> to vector<128x128xf32>
    %14 = arith.subf %0, %13 : vector<128x128xf32>
    %cst_11 = arith.constant 9.99999974E-6 : f32
    %15 = vector.broadcast %cst_11 : f32 to vector<1x128xf32>
    %16 = arith.addf %12, %15 : vector<1x128xf32>
    %17 = math.rsqrt %16 : vector<1x128xf32>
    %18 = arith.mulf %3, %17 : vector<1x128xf32>
    %19 = vector.broadcast %18 : vector<1x128xf32> to vector<128x128xf32>
    %20 = arith.mulf %14, %19 : vector<128x128xf32>
    %21 = vector.broadcast %4 : vector<1x128xf32> to vector<128x128xf32>
    %22 = arith.addf %20, %21 : vector<128x128xf32>
    %cst_12 = arith.constant 1.000000e-01 : f32
    %23 = vector.broadcast %cst_12 : f32 to vector<128x128xf32>
    %24 = arith.addf %22, %23 : vector<128x128xf32>
    %c0_13 = arith.constant 0 : index
    %c0_14 = arith.constant 0 : index
    %25 = vector.load %arg6[%c0_13, %c0_14] : memref<128x128xf32, #tpu.memory_space<vmem>>, vector<128x128xf32>
    %c0_15 = arith.constant 0 : index
    %c0_16 = arith.constant 0 : index
    %26 = vector.load %arg7[%c0_15, %c0_16] : memref<1x128xf32, #tpu.memory_space<vmem>>, vector<1x128xf32>
    %c0_17 = arith.constant 0 : index
    %c0_18 = arith.constant 0 : index
    %27 = vector.load %arg8[%c0_17, %c0_18] : memref<1x128xf32, #tpu.memory_space<vmem>>, vector<1x128xf32>
    %c0_19 = arith.constant 0 : index
    %c0_20 = arith.constant 0 : index
    %28 = vector.load %arg9[%c0_19, %c0_20] : memref<1x128xf32, #tpu.memory_space<vmem>>, vector<1x128xf32>
    %c0_21 = arith.constant 0 : index
    %c0_22 = arith.constant 0 : index
    %29 = vector.load %arg10[%c0_21, %c0_22] : memref<1x128xf32, #tpu.memory_space<vmem>>, vector<1x128xf32>
    %cst_23 = arith.constant 7.812500e-03 : f32
    %30 = vector.broadcast %cst_23 : f32 to vector<1x128xf32>
    %31 = arith.mulf %26, %30 : vector<1x128xf32>
    %cst_24 = arith.constant 7.812500e-03 : f32
    %32 = vector.broadcast %cst_24 : f32 to vector<1x128xf32>
    %33 = arith.mulf %27, %32 : vector<1x128xf32>
    %34 = arith.mulf %31, %31 : vector<1x128xf32>
    %35 = arith.subf %33, %34 : vector<1x128xf32>
    %cst_25 = arith.constant 0.000000e+00 : f32
    %36 = vector.broadcast %cst_25 : f32 to vector<1x128xf32>
    %37 = arith.maximumf %35, %36 : vector<1x128xf32>
    %38 = vector.broadcast %31 : vector<1x128xf32> to vector<128x128xf32>
    %39 = arith.subf %25, %38 : vector<128x128xf32>
    %cst_26 = arith.constant 9.99999974E-6 : f32
    %40 = vector.broadcast %cst_26 : f32 to vector<1x128xf32>
    %41 = arith.addf %37, %40 : vector<1x128xf32>
    %42 = math.rsqrt %41 : vector<1x128xf32>
    %43 = arith.mulf %28, %42 : vector<1x128xf32>
    %44 = vector.broadcast %43 : vector<1x128xf32> to vector<128x128xf32>
    %45 = arith.mulf %39, %44 : vector<128x128xf32>
    %46 = vector.broadcast %29 : vector<1x128xf32> to vector<128x128xf32>
    %47 = arith.addf %45, %46 : vector<128x128xf32>
    %cst_27 = arith.constant 1.000000e-01 : f32
    %48 = vector.broadcast %cst_27 : f32 to vector<128x128xf32>
    %49 = arith.addf %47, %48 : vector<128x128xf32>
    %50 = arith.addf %24, %49 : vector<128x128xf32>
    %cst_28 = arith.constant 2.000000e+01 : f32
    %51 = vector.broadcast %cst_28 : f32 to vector<128x128xf32>
    %52 = arith.minimumf %50, %51 : vector<128x128xf32>
    %53 = math.exp %52 : vector<128x128xf32>
    %cst_29 = arith.constant 1.000000e+00 : f32
    %54 = vector.broadcast %cst_29 : f32 to vector<128x128xf32>
    %55 = arith.addf %54, %53 : vector<128x128xf32>
    %cst_30 = arith.constant 1.000000e+00 : f32
    %56 = vector.broadcast %cst_30 : f32 to vector<128x128xf32>
    %57 = arith.addf %56, %53 : vector<128x128xf32>
    %58 = arith.mulf %55, %57 : vector<128x128xf32>
    %cst_31 = arith.constant 1.000000e+00 : f32
    %59 = vector.broadcast %cst_31 : f32 to vector<128x128xf32>
    %60 = arith.subf %58, %59 : vector<128x128xf32>
    %61 = arith.mulf %50, %60 : vector<128x128xf32>
    %cst_32 = arith.constant 1.000000e+00 : f32
    %62 = vector.broadcast %cst_32 : f32 to vector<128x128xf32>
    %63 = arith.addf %58, %62 : vector<128x128xf32>
    %64 = tpu.reciprocal %63 {approx = true} : vector<128x128xf32> -> vector<128x128xf32>
    %65 = arith.mulf %61, %64 : vector<128x128xf32>
    %c0_33 = arith.constant 0 : index
    %c0_34 = arith.constant 0 : index
    %66 = vector.load %arg11[%c0_33, %c0_34] : memref<128x128xf32, #tpu.memory_space<vmem>>, vector<128x128xf32>
    tpu.vector_store %arg11[%c0_33, %c0_34], %65 {strides = array<i32>} : memref<128x128xf32, #tpu.memory_space<vmem>>, vector<128x128xf32>,
    return
  }
  func.func @transform_0(%arg0: i32) -> (i32, i32) {
    %c0_i32 = arith.constant 0 : i32
    %c0_i32_0 = arith.constant 0 : i32
    return %arg0, %c0_i32 : i32, i32
  }
  func.func @transform_1(%arg0: i32) -> (i32, i32) {
    %c0_i32 = arith.constant 0 : i32
    %c0_i32_0 = arith.constant 0 : i32
    %c0_i32_1 = arith.constant 0 : i32
    return %c0_i32, %c0_i32_0 : i32, i32
  }
  func.func @transform_2(%arg0: i32) -> (i32, i32) {
    %c0_i32 = arith.constant 0 : i32
    %c0_i32_0 = arith.constant 0 : i32
    %c0_i32_1 = arith.constant 0 : i32
    return %c0_i32, %c0_i32_0 : i32, i32
  }
  func.func @transform_3(%arg0: i32) -> (i32, i32) {
    %c0_i32 = arith.constant 0 : i32
    %c0_i32_0 = arith.constant 0 : i32
    %c0_i32_1 = arith.constant 0 : i32
    return %c0_i32, %c0_i32_0 : i32, i32
  }
  func.func @transform_4(%arg0: i32) -> (i32, i32) {
    %c0_i32 = arith.constant 0 : i32
    %c0_i32_0 = arith.constant 0 : i32
    %c0_i32_1 = arith.constant 0 : i32
    return %c0_i32, %c0_i32_0 : i32, i32
  }
  func.func @transform_5(%arg0: i32) -> (i32, i32) {
    %c0_i32 = arith.constant 0 : i32
    %c0_i32_0 = arith.constant 0 : i32
    return %arg0, %c0_i32 : i32, i32
  }
  func.func @transform_6(%arg0: i32) -> (i32, i32) {
    %c0_i32 = arith.constant 0 : i32
    %c0_i32_0 = arith.constant 0 : i32
    %c0_i32_1 = arith.constant 0 : i32
    return %c0_i32, %c0_i32_0 : i32, i32
  }
  func.func @transform_7(%arg0: i32) -> (i32, i32) {
    %c0_i32 = arith.constant 0 : i32
    %c0_i32_0 = arith.constant 0 : i32
    %c0_i32_1 = arith.constant 0 : i32
    return %c0_i32, %c0_i32_0 : i32, i32
  }
  func.func @transform_8(%arg0: i32) -> (i32, i32) {
    %c0_i32 = arith.constant 0 : i32
    %c0_i32_0 = arith.constant 0 : i32
    %c0_i32_1 = arith.constant 0 : i32
    return %c0_i32, %c0_i32_0 : i32, i32
  }
  func.func @transform_9(%arg0: i32) -> (i32, i32) {
    %c0_i32 = arith.constant 0 : i32
    %c0_i32_0 = arith.constant 0 : i32
    %c0_i32_1 = arith.constant 0 : i32
    return %c0_i32, %c0_i32_0 : i32, i32
  }
  func.func @transform_10(%arg0: i32) -> (i32, i32) {
    %c0_i32 = arith.constant 0 : i32
    %c0_i32_0 = arith.constant 0 : i32
    return %arg0, %c0_i32 : i32, i32
  }
}

</mosaic_0001>

<bundles_post_ra>
// kernel: a_call__.7
= control target key start
LH: loop header
LB: loop body
LE: loop exit
PB: predicated region body
PF: predicated region fallthrough
CT: control target
= control target key end

     0   :  { %v94_v4 = vlaneseq  ;;  %s3117_s1 = inlined_call_operand.vmem [shape: f32[1,128], index: 1, kind: input, shape index: {}]   ;;  %s3118_s2 = inlined_call_operand.vmem [shape: f32[1,128], index: 2, kind: input, shape index: {}]   ;;  %s3119_s0 = inlined_call_operand.vmem [shape: f32[512,128], index: 0, kind: input, shape index: {}]   ;;  %s3120_s3 = inlined_call_operand.vmem [shape: f32[1,128], index: 3, kind: input, shape index: {}]   ;;  %s3121_s4 = inlined_call_operand.vmem [shape: f32[1,128], index: 4, kind: input, shape index: {}]   ;;  %s3122_s5 = inlined_call_operand.vmem [shape: bf16[512,128], index: 5, kind: output, shape index: {}]  }
   0x1   :  { %v84_v0 = vld [vmem:[%s3117_s1] sm:$0x1]  ;;  %v2024_v12 = vld [vmem:[%s3119_s0 + $0x8] sm:$0xff]  ;;  %v2033_v14 = vld [vmem:[%s3119_s0 + $0x10] sm:$0xff] }
   0x2   :  { %v85_v1 = vld [vmem:[%s3118_s2] sm:$0x1]  ;;  %v88_v2 = vmul.f32 0.001953125, %v84_v0  ;;  %v2013_v7 = vshrl.u32 %v94_v4, 7  ;;  %v2038_v15 = vld [vmem:[%s3119_s0 + $0x18] sm:$0xff]  ;;  %v2048_v17 = vld [vmem:[%s3119_s0 + $0x28] sm:$0xff] }
   0x3   :  { %v89_v3 = vmul.f32 0.001953125, %v85_v1  ;;  %v2019_v11 = vld [vmem:[%s3119_s0] sm:$0xff]  ;;  %v2053_v18 = vld [vmem:[%s3119_s0 + $0x30] sm:$0xff]  ;;  %v2058_v19 = vld [vmem:[%s3119_s0 + $0x38] sm:$0xff] }
   0x4   :  { %v90_v5 = vmul.f32 %v88_v2, %v88_v2  ;;  %v96_v9 = vsub.s32 0, %v2013_v7  ;;  %v2043_v16 = vld [vmem:[%s3119_s0 + $0x20] sm:$0xff]  ;;  %v2068_v21 = vld [vmem:[%s3119_s0 + $0x48] sm:$0xff]  ;;  %v2073_v22 = vld [vmem:[%s3119_s0 + $0x50] sm:$0xff] }
   0x5   :  { %v2063_v20 = vld [vmem:[%s3119_s0 + $0x40] sm:$0xff]  ;;  %v2078_v23 = vld [vmem:[%s3119_s0 + $0x58] sm:$0xff]  ;;  %v2088_v25 = vld [vmem:[%s3119_s0 + $0x68] sm:$0xff] }
   0x6   :  { %v91_v6 = vsub.f32 %v89_v3, %v90_v5  ;;  %v2028_v13 = vrot.slane %v88_v2, %v96_v9  ;;  %v2083_v24 = vld [vmem:[%s3119_s0 + $0x60] sm:$0xff]  ;;  %v2093_v26 = vld [vmem:[%s3119_s0 + $0x70] sm:$0xff]  ;;  %v2098_v27 = vld [vmem:[%s3119_s0 + $0x78] sm:$0xff] }
   0x7   :  { %v2103_v28 = vld [vmem:[%s3119_s0 + $0x80] sm:$0xff]  ;;  %v2112_v31 = vld [vmem:[%s3119_s0 + $0x88] sm:$0xff]  ;;  %v2117_v32 = vld [vmem:[%s3119_s0 + $0x90] sm:$0xff] }
   0x8   :  { %v92_v8 = vmax.f32 %v91_v6, 0.0  ;;  %v99_v29 = vsub.f32 %v2019_v11, %v2028_v13  ;;  %v100_v30 = vsub.f32 %v2024_v12, %v2028_v13  ;;  %v2122_v33 = vld [vmem:[%s3119_s0 + $0x98] sm:$0xff]  ;;  %v101_v34 = vsub.f32 %v2033_v14, %v2028_v13  ;;  %v2135_v38 = vld [vmem:[%s3119_s0 + $0xa0] sm:$0xff]  ;;  %v2140_v39 = vld [vmem:[%s3119_s0 + $0xa8] sm:$0xff] }
   0x9   :  { %v102_v35 = vsub.f32 %v2038_v15, %v2028_v13  ;;  %v103_v36 = vsub.f32 %v2043_v16, %v2028_v13  ;;  %v104_v37 = vsub.f32 %v2048_v17, %v2028_v13  ;;  %v2145_v40 = vld [vmem:[%s3119_s0 + $0xb0] sm:$0xff]  ;;  %v105_v41 = vsub.f32 %v2053_v18, %v2028_v13  ;;  %v2158_v45 = vld [vmem:[%s3119_s0 + $0xb8] sm:$0xff]  ;;  %v2163_v46 = vld [vmem:[%s3119_s0 + $0xc0] sm:$0xff] }
   0xa   :  { %v163_v10 = vadd.f32 1e-05, %v92_v8  ;;  %v106_v42 = vsub.f32 %v2058_v19, %v2028_v13  ;;  %v107_v43 = vsub.f32 %v2063_v20, %v2028_v13  ;;  %v2168_v47 = vld [vmem:[%s3119_s0 + $0xc8] sm:$0xff]  ;;  %v86_v48 = vld [vmem:[%s3120_s3] sm:$0x1]  ;;  %v2184_v53 = vld [vmem:[%s3119_s0 + $0xd0] sm:$0xff] }
   0xb   :  { %v2189_v54 = vld [vmem:[%s3119_s0 + $0xd8] sm:$0xff]  ;;  %v2194_v55 = vld [vmem:[%s3119_s0 + $0xe0] sm:$0xff]  ;;  %v2207_v60 = vld [vmem:[%s3119_s0 + $0xe8] sm:$0xff] }
   0xc   :  { %1718 = vrsqrt.f32 %v163_v10  ;;  %v2212_v61 = vld [vmem:[%s3119_s0 + $0xf0] sm:$0xff]  ;;  %v2217_v62 = vld [vmem:[%s3119_s0 + $0xf8] sm:$0xff]  ;;  %v2230_v3 = vld [vmem:[%s3119_s0 + $0x100] sm:$0xff] }
   0xd   :  { %v2235_v4 = vld [vmem:[%s3119_s0 + $0x108] sm:$0xff]  ;;  %v2240_v5 = vld [vmem:[%s3119_s0 + $0x110] sm:$0xff]  ;;  %v2253_v1 = vld [vmem:[%s3119_s0 + $0x118] sm:$0xff] }
   0xe   :  { %v2258_v0 = vld [vmem:[%s3119_s0 + $0x120] sm:$0xff]  ;;  %v2263_v8 = vld [vmem:[%s3119_s0 + $0x128] sm:$0xff]  ;;  %v2276_v58 = vld [vmem:[%s3119_s0 + $0x130] sm:$0xff] }
   0xf   :  { %3131 = vst [vmem:[#allocation2_spill] sm:$0xff] %v2258_v0  ;;  %3132 = vst [vmem:[#allocation3_spill] sm:$0xff] %v2263_v8  ;;  %v2281_v57 = vld [vmem:[%s3119_s0 + $0x138] sm:$0xff]  ;;  %v2286_v2 = vld [vmem:[%s3119_s0 + $0x140] sm:$0xff] }
  0x10   :  { %3133 = vst [vmem:[#allocation4_spill] sm:$0xff] %v2276_v58  ;;  %3134 = vst [vmem:[#allocation5_spill] sm:$0xff] %v2281_v57  ;;  %v2297_v52 = vld [vmem:[%s3119_s0 + $0x148] sm:$0xff]  ;;  %v2302_v51 = vld [vmem:[%s3119_s0 + $0x150] sm:$0xff] }
  0x11   :  { %3135 = vst [vmem:[#allocation6_spill] sm:$0xff] %v2286_v2  ;;  %3136 = vst [vmem:[#allocation7_spill] sm:$0xff] %v2297_v52  ;;  %v2330_v59 = vld [vmem:[%s3121_s4] ss:$0 sm:$0xff] }
  0x12   :  { %3137 = vst [vmem:[#allocation8_spill] sm:$0xff] %v2302_v51 }
  0x19   :  { %v1719_v6 = vpop.eup %1718 }
  0x1a   :  { %v165_v10 = vmul.f32 %v1719_v6, %v86_v48  ;;  %v2307_v48 = vld [vmem:[%s3119_s0 + $0x158] sm:$0xff] }
  0x1b   :  { %3138 = vst [vmem:[#allocation9_spill] sm:$0xff] %v2307_v48 }
  0x1c   :  { %v2319_v50 = vrot.slane %v165_v10, %v96_v9 }
  0x1e   :  { %v172_v6 = vmul.f32 %v2319_v50, %v99_v29  ;;  %v173_v44 = vmul.f32 %v2319_v50, %v100_v30  ;;  %v174_v7 = vmul.f32 %v2319_v50, %v101_v34  ;;  %v175_v10 = vmul.f32 %v2319_v50, %v102_v35 }
  0x1f   :  { %v176_v11 = vmul.f32 %v2319_v50, %v103_v36  ;;  %v177_v12 = vmul.f32 %v2319_v50, %v104_v37  ;;  %v178_v14 = vmul.f32 %v2319_v50, %v105_v41  ;;  %v179_v15 = vmul.f32 %v2319_v50, %v106_v42 }
  0x20   :  { %v242_v29 = vadd.f32 %v2330_v59, %v172_v6  ;;  %v243_v16 = vadd.f32 %v2330_v59, %v173_v44  ;;  %v244_v30 = vadd.f32 %v2330_v59, %v174_v7  ;;  %v245_v17 = vadd.f32 %v2330_v59, %v175_v10 }
  0x21   :  { %v246_v34 = vadd.f32 %v2330_v59, %v176_v11  ;;  %v247_v35 = vadd.f32 %v2330_v59, %v177_v12  ;;  %v248_v18 = vadd.f32 %v2330_v59, %v178_v14  ;;  %v249_v36 = vadd.f32 %v2330_v59, %v179_v15 }
  0x22   :  { %v2380_v37 = vadd.f32 0.1, %v242_v29  ;;  %v2382_v19 = vadd.f32 0.1, %v243_v16  ;;  %v2384_v41 = vadd.f32 0.1, %v244_v30  ;;  %v180_v42 = vmul.f32 %v2319_v50, %v107_v43 }
  0x23   :  { %v2390_v44 = vadd.f32 0.1, %v245_v17  ;;  %v2392_v6 = vadd.f32 0.1, %v246_v34  ;;  %v2394_v7 = vadd.f32 0.1, %v247_v35  ;;  %v3139_v10 = vsub.f32 %v2068_v21, %v2028_v13 }
  0x24   :  { %v370_v12 = vmin.f32 %v2380_v37, 20.0  ;;  %v371_v14 = vmin.f32 %v2382_v19, 20.0  ;;  %v372_v15 = vmin.f32 %v2384_v41, 20.0  ;;  %v2403_v20 = vadd.f32 0.1, %v248_v18 }
  0x25   :  { %v181_v11 = vmul.f32 %v2319_v50, %v3139_v10  ;;  %v373_v43 = vmin.f32 %v2390_v44, 20.0  ;;  %v374_v29 = vmin.f32 %v2392_v6, 20.0  ;;  %v375_v16 = vmin.f32 %v2394_v7, 20.0 }
  0x26   :  { %v2408_v30 = vadd.f32 0.1, %v249_v36  ;;  %v434_v17 = vmul.f32 1.442695, %v370_v12  ;;  %v436_v21 = vmul.f32 1.442695, %v371_v14  ;;  %v250_v35 = vadd.f32 %v2330_v59, %v180_v42 }
  0x27   :  { %v438_v34 = vmul.f32 1.442695, %v372_v15  ;;  %v440_v10 = vmul.f32 1.442695, %v373_v43  ;;  %v442_v9 = vmul.f32 1.442695, %v374_v29  ;;  %v251_v49 = vadd.f32 %v2330_v59, %v181_v11 }
  0x28   :  { %v444_v63 = vmul.f32 1.442695, %v375_v16  ;;  %1720 = vpow2.f32 %v434_v17  ;;  %v376_v18 = vmin.f32 %v2403_v20, 20.0  ;;  %v377_v56 = vmin.f32 %v2408_v30, 20.0 }
  0x29   :  { %v2414_v48 = vadd.f32 0.1, %v250_v35  ;;  %1722 = vpow2.f32 %v436_v21  ;;  %v2416_v36 = vadd.f32 0.1, %v251_v49  ;;  %v3140_v12 = vsub.f32 %v2073_v22, %v2028_v13 }
  0x2a   :  { %v3141_v14 = vsub.f32 %v2078_v23, %v2028_v13  ;;  %1724 = vpow2.f32 %v438_v34  ;;  %v446_v15 = vmul.f32 1.442695, %v376_v18  ;;  %v448_v43 = vmul.f32 1.442695, %v377_v56 }
  0x2b   :  { %v182_v42 = vmul.f32 %v2319_v50, %v3140_v12  ;;  %v378_v29 = vmin.f32 %v2414_v48, 20.0  ;;  %1726 = vpow2.f32 %v440_v10  ;;  %v379_v16 = vmin.f32 %v2416_v36, 20.0 }
  0x2c   :  { %v183_v11 = vmul.f32 %v2319_v50, %v3141_v14  ;;  %1728 = vpow2.f32 %v442_v9  ;;  %v3142_v21 = vsub.f32 %v2083_v24, %v2028_v13  ;;  %v3143_v34 = vsub.f32 %v2088_v25, %v2028_v13 }
  0x2d   :  { %v252_v49 = vadd.f32 %v2330_v59, %v182_v42  ;;  %v450_v22 = vmul.f32 1.442695, %v378_v29  ;;  %1730 = vpow2.f32 %v444_v63  ;;  %v452_v35 = vmul.f32 1.442695, %v379_v16 }
  0x2e   :  { %v253_v17 = vadd.f32 %v2330_v59, %v183_v11  ;;  %v184_v23 = vmul.f32 %v2319_v50, %v3142_v21  ;;  %v185_v56 = vmul.f32 %v2319_v50, %v3143_v34  ;;  %1732 = vpow2.f32 %v446_v15 }
  0x2f   :  { %v2438_v10 = vadd.f32 0.1, %v252_v49  ;;  %v3144_v24 = vsub.f32 %v2093_v26, %v2028_v13  ;;  %1734 = vpow2.f32 %v448_v43  ;;  %v3145_v14 = vsub.f32 %v2098_v27, %v2028_v13 }
  0x30   :  { %v2440_v18 = vadd.f32 0.1, %v253_v17  ;;  %v254_v9 = vadd.f32 %v2330_v59, %v184_v23  ;;  %v255_v12 = vadd.f32 %v2330_v59, %v185_v56  ;;  %1736 = vpow2.f32 %v450_v22 }
  0x31   :  { %v186_v42 = vmul.f32 %v2319_v50, %v3144_v24  ;;  %v380_v25 = vmin.f32 %v2438_v10, 20.0  ;;  %v187_v11 = vmul.f32 %v2319_v50, %v3145_v14  ;;  %1738 = vpow2.f32 %v452_v35 }
  0x32   :  { %v381_v63 = vmin.f32 %v2440_v18, 20.0  ;;  %v2454_v15 = vadd.f32 0.1, %v254_v9  ;;  %v2456_v29 = vadd.f32 0.1, %v255_v12  ;;  %v3146_v27 = vsub.f32 %v2103_v28, %v2028_v13 }
  0x33   :  { %v256_v16 = vadd.f32 %v2330_v59, %v186_v42  ;;  %v454_v26 = vmul.f32 1.442695, %v380_v25  ;;  %v257_v43 = vadd.f32 %v2330_v59, %v187_v11  ;;  %v3147_v56 = vsub.f32 %v2112_v31, %v2028_v13 }
  0x34   :  { %v456_v49 = vmul.f32 1.442695, %v381_v63  ;;  %v382_v17 = vmin.f32 %v2454_v15, 20.0  ;;  %v383_v21 = vmin.f32 %v2456_v29, 20.0  ;;  %v188_v22 = vmul.f32 %v2319_v50, %v3146_v27 }
  0x35   :  { %v2462_v23 = vadd.f32 0.1, %v256_v16  ;;  %1740 = vpow2.f32 %v454_v26  ;;  %v2468_v34 = vadd.f32 0.1, %v257_v43  ;;  %v189_v35 = vmul.f32 %v2319_v50, %v3147_v56  ;;  %v1721_v25 = vpop.eup %1720 }
  0x36   :  { %v3148_v9 = vsub.f32 %v2117_v32, %v2028_v13  ;;  %1742 = vpow2.f32 %v456_v49  ;;  %v458_v24 = vmul.f32 1.442695, %v382_v17  ;;  %v460_v42 = vmul.f32 1.442695, %v383_v21  ;;  %v1723_v32 = vpop.eup %1722 }
  0x37   :  { %v384_v28 = vmin.f32 %v2462_v23, 20.0  ;;  %v385_v63 = vmin.f32 %v2468_v34, 20.0  ;;  %v258_v14 = vadd.f32 %v2330_v59, %v188_v22  ;;  %v259_v11 = vadd.f32 %v2330_v59, %v189_v35  ;;  %v1725_v17 = vpop.eup %1724 }
  0x38   :  { %v190_v12 = vmul.f32 %v2319_v50, %v3148_v9  ;;  %v3149_v31 = vsub.f32 %v2122_v33, %v2028_v13  ;;  %v562_v26 = vadd.f32 1.0, %v1721_v25  ;;  %1744 = vpow2.f32 %v458_v24  ;;  %v1727_v56 = vpop.eup %1726 }
  0x39   :  { %v462_v49 = vmul.f32 1.442695, %v384_v28  ;;  %v563_v21 = vadd.f32 1.0, %v1723_v32  ;;  %1746 = vpow2.f32 %v460_v42  ;;  %v464_v27 = vmul.f32 1.442695, %v385_v63 }
  0x3a   :  { %v2486_v16 = vmul.f32 %v2319_v50, %v3149_v31  ;;  %v2489_v43 = vadd.f32 %v2330_v59, %v190_v12  ;;  %v2491_v22 = vadd.f32 0.1, %v258_v14  ;;  %v626_v35 = vmul.f32 %v562_v26, %v562_v26  ;;  %v1729_v31 = vpop.eup %1728 }
  0x3b   :  { %v564_v9 = vadd.f32 1.0, %v1725_v17  ;;  %1748 = vpow2.f32 %v462_v49  ;;  %v2493_v33 = vadd.f32 0.1, %v259_v11  ;;  %v627_v51 = vmul.f32 %v563_v21, %v563_v21  ;;  %v1731_v12 = vpop.eup %1730 }
  0x3c   :  { %v565_v25 = vadd.f32 1.0, %v1727_v56  ;;  %1750 = vpow2.f32 %v464_v27  ;;  %v1335_v28 = vadd.f32 -1.0, %v626_v35  ;;  %v818_v52 = vadd.f32 1.0, %v626_v35  ;;  %v1733_v63 = vpop.eup %1732 }
  0x3d   :  { %v628_v32 = vmul.f32 %v564_v9, %v564_v9  ;;  %v566_v42 = vadd.f32 1.0, %v1729_v31  ;;  %v1336_v14 = vadd.f32 -1.0, %v627_v51  ;;  %v819_v2 = vadd.f32 1.0, %v627_v51  ;;  %v1735_v17 = vpop.eup %1734 }
  0x3e   :  { %v629_v57 = vmul.f32 %v565_v25, %v565_v25  ;;  %v567_v26 = vadd.f32 1.0, %v1731_v12  ;;  %v2497_v11 = vmul.f32 %v1335_v28, %v2380_v37  ;;  %1752 = vrcp.f32 %v818_v52  ;;  %v1737_v27 = vpop.eup %1736 }
  0x3f   :  { %v1337_v49 = vadd.f32 -1.0, %v628_v32  ;;  %v820_v21 = vadd.f32 1.0, %v628_v32  ;;  %v2500_v56 = vmul.f32 %v1336_v14, %v2382_v19  ;;  %1754 = vrcp.f32 %v819_v2  ;;  %v1739_v31 = vpop.eup %1738 }
  0x40   :  { %v1338_v35 = vadd.f32 -1.0, %v629_v57  ;;  %v821_v9 = vadd.f32 1.0, %v629_v57  ;;  %v630_v51 = vmul.f32 %v566_v42, %v566_v42  ;;  %v631_v25 = vmul.f32 %v567_v26, %v567_v26 }
  0x41   :  { %v2503_v24 = vmul.f32 %v1337_v49, %v2384_v41  ;;  %1756 = vrcp.f32 %v820_v21  ;;  %v568_v52 = vadd.f32 1.0, %v1733_v63  ;;  %v569_v12 = vadd.f32 1.0, %v1735_v17 }
  0x42   :  { %v2506_v37 = vmul.f32 %v1338_v35, %v2390_v44  ;;  %1758 = vrcp.f32 %v821_v9  ;;  %v1741_v28 = vpop.eup %1740  ;;  %v1339_v32 = vadd.f32 -1.0, %v630_v51  ;;  %v1340_v19 = vadd.f32 -1.0, %v631_v25 }
  0x43   :  { %v822_v14 = vadd.f32 1.0, %v630_v51  ;;  %v823_v2 = vadd.f32 1.0, %v631_v25  ;;  %v1743_v58 = vpop.eup %1742  ;;  %v632_v57 = vmul.f32 %v568_v52, %v568_v52  ;;  %v633_v8 = vmul.f32 %v569_v12, %v569_v12 }
  0x44   :  { %v570_v0 = vadd.f32 1.0, %v1737_v27  ;;  %v571_v41 = vadd.f32 1.0, %v1739_v31  ;;  %v2509_v49 = vmul.f32 %v1339_v32, %v2392_v6  ;;  %v2512_v42 = vmul.f32 %v1340_v19, %v2394_v7 }
  0x45   :  { %1760 = vrcp.f32 %v822_v14  ;;  %v572_v44 = vadd.f32 1.0, %v1741_v28  ;;  %v1745_v63 = vpop.eup %1744  ;;  %v1341_v26 = vadd.f32 -1.0, %v632_v57  ;;  %v1342_v17 = vadd.f32 -1.0, %v633_v8 }
  0x46   :  { %1762 = vrcp.f32 %v823_v2  ;;  %v824_v21 = vadd.f32 1.0, %v632_v57  ;;  %v1747_v35 = vpop.eup %1746  ;;  %v825_v9 = vadd.f32 1.0, %v633_v8  ;;  %v634_v51 = vmul.f32 %v570_v0, %v570_v0 }
  0x47   :  { %v635_v25 = vmul.f32 %v571_v41, %v571_v41  ;;  %v573_v52 = vadd.f32 1.0, %v1743_v58  ;;  %v2515_v31 = vmul.f32 %v1341_v26, %v2403_v20  ;;  %v2518_v6 = vmul.f32 %v1342_v17, %v2408_v30 }
  0x48   :  { %v1749_v27 = vpop.eup %1748  ;;  %1764 = vrcp.f32 %v824_v21  ;;  %v636_v7 = vmul.f32 %v572_v44, %v572_v44  ;;  %v1343_v28 = vadd.f32 -1.0, %v634_v51  ;;  %v826_v19 = vadd.f32 1.0, %v634_v51 }
  0x49   :  { %v1751_v12 = vpop.eup %1750  ;;  %1766 = vrcp.f32 %v825_v9  ;;  %v1344_v32 = vadd.f32 -1.0, %v635_v25  ;;  %v827_v14 = vadd.f32 1.0, %v635_v25  ;;  %v637_v2 = vmul.f32 %v573_v52, %v573_v52 }
  0x4a   :  { %v1345_v8 = vadd.f32 -1.0, %v636_v7  ;;  %v828_v0 = vadd.f32 1.0, %v636_v7  ;;  %v2521_v58 = vmul.f32 %v1343_v28, %v2414_v48  ;;  %1768 = vrcp.f32 %v826_v19 }
  0x4b   :  { %v2524_v20 = vmul.f32 %v1344_v32, %v2416_v36  ;;  %v574_v30 = vadd.f32 1.0, %v1745_v63  ;;  %v1753_v57 = vpop.eup %1752  ;;  %1770 = vrcp.f32 %v827_v14  ;;  %v1346_v41 = vadd.f32 -1.0, %v637_v2 }
  0x4c   :  { %v2527_v44 = vmul.f32 %v1345_v8, %v2438_v10  ;;  %v829_v26 = vadd.f32 1.0, %v637_v2  ;;  %v1755_v17 = vpop.eup %1754  ;;  %v946_v21 = vmul.f32 %v1753_v57, %v2497_v11  ;;  %1772 = vrcp.f32 %v828_v0 }
  0x4d   :  { %v575_v9 = vadd.f32 1.0, %v1747_v35  ;;  %v638_v51 = vmul.f32 %v574_v30, %v574_v30  ;;  %v947_v25 = vmul.f32 %v1755_v17, %v2500_v56  ;;  %v2532_v36 = vmul.f32 %v1346_v41, %v2440_v18 }
  0x4e   :  { %v1757_v48 = vpop.eup %1756  ;;  %1774 = vrcp.f32 %v829_v26  ;;  %v576_v63 = vadd.f32 1.0, %v1749_v27  ;;  %v577_v14 = vadd.f32 1.0, %v1751_v12 }
  0x4f   :  { %v1759_v52 = vpop.eup %1758  ;;  %v948_v7 = vmul.f32 %v1757_v48, %v2503_v24  ;;  %v639_v10 = vmul.f32 %v575_v9, %v575_v9  ;;  %v1347_v28 = vadd.f32 -1.0, %v638_v51  ;;  %v830_v32 = vadd.f32 1.0, %v638_v51 }
  0x50   :  { %v1530_v19 = vpack.c.bf16 %v947_v25, %v946_v21  ;;  %v949_v11 = vmul.f32 %v1759_v52, %v2506_v37  ;;  %v640_v35 = vmul.f32 %v576_v63, %v576_v63  ;;  %v641_v27 = vmul.f32 %v577_v14, %v577_v14 }
  0x51   :  { %v1348_v2 = vadd.f32 -1.0, %v639_v10  ;;  %v2537_v8 = vmul.f32 %v1347_v28, %v2454_v15  ;;  %v831_v56 = vadd.f32 1.0, %v639_v10  ;;  %1776 = vrcp.f32 %v830_v32 }
  0x52   :  { %v1761_v18 = vpop.eup %1760  ;;  %1531 = vst [vmem:[%s3122_s5] sm:$0xff] %v1530_v19   ;;  %v1535_v24 = vpack.c.bf16 %v949_v11, %v948_v7  ;;  %v1349_v0 = vadd.f32 -1.0, %v640_v35  ;;  %v832_v30 = vadd.f32 1.0, %v640_v35  ;;  %v387_v15 = vmin.f32 %v2493_v33, 20.0 }
  0x53   :  { %v1763_v57 = vpop.eup %1762  ;;  %v950_v37 = vmul.f32 %v1761_v18, %v2509_v49  ;;  %v2544_v12 = vmul.f32 %v1348_v2, %v2456_v29  ;;  %1778 = vrcp.f32 %v831_v56  ;;  %v1350_v26 = vadd.f32 -1.0, %v641_v27 }
  0x54   :  { %1687 = vst [vmem:[%s3122_s5 + $0x8] sm:$0xff] %v1535_v24   ;;  %v951_v41 = vmul.f32 %v1763_v57, %v2512_v42  ;;  %v2552_v17 = vmul.f32 %v1349_v0, %v2462_v23  ;;  %v833_v21 = vadd.f32 1.0, %v641_v27  ;;  %1780 = vrcp.f32 %v832_v30 }
  0x55   :  { %v1765_v9 = vpop.eup %1764  ;;  %v3150_v49 = vmin.f32 %v2491_v22, 20.0  ;;  %v468_v51 = vmul.f32 1.442695, %v387_v15  ;;  %v261_v48 = vadd.f32 %v2330_v59, %v2486_v16  ;;  %v2560_v42 = vmul.f32 %v1350_v26, %v2468_v34 }
  0x56   :  { %v1767_v25 = vpop.eup %1766  ;;  %v1540_v63 = vpack.c.bf16 %v951_v41, %v950_v37  ;;  %v952_v52 = vmul.f32 %v1765_v9, %v2515_v31  ;;  %1782 = vrcp.f32 %v833_v21  ;;  %v2564_v7 = vadd.f32 0.1, %v2489_v43 }
  0x57   :  { %v466_v29 = vmul.f32 1.442695, %v3150_v49  ;;  %v953_v23 = vmul.f32 %v1767_v25, %v2518_v6  ;;  %v2566_v10 = vadd.f32 0.1, %v261_v48  ;;  %v1769_v28 = vpop.eup %1768  ;;  %v3151_v16 = vsub.f32 %v2135_v38, %v2028_v13 }
  0x58   :  { %1688 = vst [vmem:[%s3122_s5 + $0x10] sm:$0xff] %v1540_v63   ;;  %v3152_v31 = vsub.f32 %v2140_v39, %v2028_v13  ;;  %v3153_v43 = vsub.f32 %v2145_v40, %v2028_v13  ;;  %v1771_v19 = vpop.eup %1770  ;;  %v954_v14 = vmul.f32 %v1769_v28, %v2521_v58  ;;  %v388_v35 = vmin.f32 %v2564_v7, 20.0 }
  0x59   :  { %1784 = vpow2.f32 %v466_v29  ;;  %v192_v34 = vmul.f32 %v2319_v50, %v3151_v16  ;;  %v1545_v11 = vpack.c.bf16 %v953_v23, %v952_v52  ;;  %v389_v38 = vmin.f32 %v2566_v10, 20.0  ;;  %v1773_v2 = vpop.eup %1772 }
  0x5a   :  { %1786 = vpow2.f32 %v468_v51  ;;  %v193_v6 = vmul.f32 %v2319_v50, %v3152_v31  ;;  %v194_v32 = vmul.f32 %v2319_v50, %v3153_v43  ;;  %v955_v56 = vmul.f32 %v1771_v19, %v2524_v20 }
  0x5b   :  { %v262_v39 = vadd.f32 %v2330_v59, %v192_v34  ;;  %v3154_v40 = vsub.f32 %v2158_v45, %v2028_v13  ;;  %v1775_v27 = vpop.eup %1774  ;;  %1689 = vst [vmem:[%s3122_s5 + $0x18] sm:$0xff] %v1545_v11   ;;  %v956_v58 = vmul.f32 %v1773_v2, %v2527_v44  ;;  %v470_v0 = vmul.f32 1.442695, %v388_v35 }
  0x5c   :  { %v263_v18 = vadd.f32 %v2330_v59, %v193_v6  ;;  %v472_v30 = vmul.f32 1.442695, %v389_v38  ;;  %v264_v20 = vadd.f32 %v2330_v59, %v194_v32  ;;  %v1550_v57 = vpack.c.bf16 %v955_v56, %v954_v14 }
  0x5d   :  { %v195_v24 = vmul.f32 %v2319_v50, %v3154_v40  ;;  %v957_v37 = vmul.f32 %v1775_v27, %v2532_v36  ;;  %v2599_v15 = vadd.f32 0.1, %v262_v39  ;;  %1788 = vpow2.f32 %v470_v0 }
  0x5e   :  { %v2601_v41 = vadd.f32 0.1, %v263_v18  ;;  %v2604_v26 = vadd.f32 0.1, %v264_v20  ;;  %v3155_v21 = vsub.f32 %v2163_v46, %v2028_v13  ;;  %v1777_v9 = vpop.eup %1776  ;;  %1690 = vst [vmem:[%s3122_s5 + $0x20] sm:$0xff] %v1550_v57   ;;  %1790 = vpow2.f32 %v472_v30  ;;  %v2656_v20 = vld [vmem:[%s3119_s0 + $0x160] sm:$0xff] }
  0x5f   :  { %v265_v45 = vadd.f32 %v2330_v59, %v195_v24  ;;  %v1555_v36 = vpack.c.bf16 %v957_v37, %v956_v58  ;;  %v390_v49 = vmin.f32 %v2599_v15, 20.0  ;;  %v958_v51 = vmul.f32 %v1777_v9, %v2537_v8 }
  0x60   :  { %v196_v44 = vmul.f32 %v2319_v50, %v3155_v21  ;;  %v391_v29 = vmin.f32 %v2601_v41, 20.0  ;;  %v392_v25 = vmin.f32 %v2604_v26, 20.0  ;;  %v3156_v46 = vsub.f32 %v2168_v47, %v2028_v13  ;;  %v1779_v52 = vpop.eup %1778 }
  0x61   :  { %v2616_v48 = vadd.f32 0.1, %v265_v45  ;;  %1691 = vst [vmem:[%s3122_s5 + $0x28] sm:$0xff] %v1555_v36   ;;  %v474_v23 = vmul.f32 1.442695, %v390_v49  ;;  %v3157_v8 = vsub.f32 %v2184_v53, %v2028_v13  ;;  %v959_v31 = vmul.f32 %v1779_v52, %v2544_v12  ;;  %v1781_v32 = vpop.eup %1780 }
  0x62   :  { %v197_v63 = vmul.f32 %v2319_v50, %v3156_v46  ;;  %v476_v28 = vmul.f32 1.442695, %v391_v29  ;;  %v266_v16 = vadd.f32 %v2330_v59, %v196_v44  ;;  %v478_v6 = vmul.f32 1.442695, %v392_v25 }
  0x63   :  { %v198_v34 = vmul.f32 %v2319_v50, %v3157_v8  ;;  %v393_v47 = vmin.f32 %v2616_v48, 20.0  ;;  %1792 = vpow2.f32 %v474_v23  ;;  %v3158_v11 = vsub.f32 %v2189_v54, %v2028_v13  ;;  %v1783_v35 = vpop.eup %1782 }
  0x64   :  { %v267_v43 = vadd.f32 %v2330_v59, %v197_v63  ;;  %v2634_v19 = vadd.f32 0.1, %v266_v16  ;;  %v1560_v38 = vpack.c.bf16 %v959_v31, %v958_v51  ;;  %v960_v12 = vmul.f32 %v1781_v32, %v2552_v17 }
  0x65   :  { %v199_v14 = vmul.f32 %v2319_v50, %v3158_v11  ;;  %v268_v53 = vadd.f32 %v2330_v59, %v198_v34  ;;  %1794 = vpow2.f32 %v476_v28  ;;  %v480_v2 = vmul.f32 1.442695, %v393_v47 }
  0x66   :  { %v1785_v56 = vpop.eup %1784  ;;  %v961_v39 = vmul.f32 %v1783_v35, %v2560_v42  ;;  %1796 = vpow2.f32 %v478_v6  ;;  %v2643_v18 = vadd.f32 0.1, %v267_v43  ;;  %v394_v40 = vmin.f32 %v2634_v19, 20.0  ;;  %1692 = vst [vmem:[%s3122_s5 + $0x30] sm:$0xff] %v1560_v38  }
  0x67   :  { %v1787_v24 = vpop.eup %1786  ;;  %v578_v54 = vadd.f32 1.0, %v1785_v56  ;;  %1798 = vpow2.f32 %v480_v2  ;;  %v269_v27 = vadd.f32 %v2330_v59, %v199_v14  ;;  %v2650_v17 = vadd.f32 0.1, %v268_v53 }
  0x68   :  { %v1565_v58 = vpack.c.bf16 %v961_v39, %v960_v12  ;;  %v579_v0 = vadd.f32 1.0, %v1787_v24  ;;  %v395_v42 = vmin.f32 %v2643_v18, 20.0  ;;  %v482_v30 = vmul.f32 1.442695, %v394_v40 }
  0x69   :  { %v642_v57 = vmul.f32 %v578_v54, %v578_v54  ;;  %v2658_v37 = vadd.f32 0.1, %v269_v27  ;;  %v396_v45 = vmin.f32 %v2650_v17, 20.0  ;;  %v3159_v21 = vsub.f32 %v2194_v55, %v2028_v13  ;;  %v2676_v55 = vld [vmem:[%s3119_s0 + $0x168] sm:$0xff] }
  0x6a   :  { %1693 = vst [vmem:[%s3122_s5 + $0x38] sm:$0xff] %v1565_v58   ;;  %v643_v9 = vmul.f32 %v579_v0, %v579_v0  ;;  %1800 = vpow2.f32 %v482_v30  ;;  %v484_v36 = vmul.f32 1.442695, %v395_v42  ;;  %v3160_v49 = vsub.f32 %v2207_v60, %v2028_v13  ;;  %v1789_v52 = vpop.eup %1788 }
  0x6b   :  { %v200_v44 = vmul.f32 %v2319_v50, %v3159_v21  ;;  %v834_v51 = vadd.f32 1.0, %v642_v57  ;;  %v397_v25 = vmin.f32 %v2658_v37, 20.0  ;;  %v486_v46 = vmul.f32 1.442695, %v396_v45  ;;  %v1791_v16 = vpop.eup %1790 }
  0x6c   :  { %v201_v29 = vmul.f32 %v2319_v50, %v3160_v49  ;;  %v143_v63 = vsub.f32 %v2656_v20, %v2028_v13  ;;  %v1351_v23 = vadd.f32 -1.0, %v642_v57  ;;  %v835_v28 = vadd.f32 1.0, %v643_v9 }
  0x6d   :  { %1802 = vpow2.f32 %v484_v36  ;;  %v270_v60 = vadd.f32 %v2330_v59, %v200_v44  ;;  %v1352_v8 = vadd.f32 -1.0, %v643_v9  ;;  %v580_v34 = vadd.f32 1.0, %v1789_v52 }
  0x6e   :  { %1804 = vrcp.f32 %v834_v51  ;;  %v488_v31 = vmul.f32 1.442695, %v397_v25  ;;  %v581_v47 = vadd.f32 1.0, %v1791_v16  ;;  %v271_v6 = vadd.f32 %v2330_v59, %v201_v29 }
  0x6f   :  { %1806 = vrcp.f32 %v835_v28  ;;  %v144_v43 = vsub.f32 %v2676_v55, %v2028_v13  ;;  %v644_v32 = vmul.f32 %v580_v34, %v580_v34  ;;  %v2684_v11 = vadd.f32 0.1, %v270_v60 }
  0x70   :  { %1808 = vpow2.f32 %v486_v46  ;;  %v3161_v14 = vsub.f32 %v2212_v61, %v2028_v13  ;;  %v770_v35 = vmul.f32 %v1351_v23, %v2491_v22  ;;  %v645_v38 = vmul.f32 %v581_v47, %v581_v47  ;;  %v1793_v2 = vpop.eup %1792 }
  0x71   :  { %1810 = vpow2.f32 %v488_v31  ;;  %v2691_v12 = vadd.f32 0.1, %v271_v6  ;;  %v771_v56 = vmul.f32 %v1352_v8, %v2493_v33  ;;  %v836_v39 = vadd.f32 1.0, %v644_v32 }
  0x72   :  { %v202_v53 = vmul.f32 %v2319_v50, %v3161_v14  ;;  %v398_v40 = vmin.f32 %v2684_v11, 20.0  ;;  %v3162_v24 = vsub.f32 %v2217_v62, %v2028_v13  ;;  %v1795_v61 = vpop.eup %1794  ;;  %v1353_v27 = vadd.f32 -1.0, %v644_v32 }
  0x73   :  { %v837_v58 = vadd.f32 1.0, %v645_v38  ;;  %v582_v0 = vadd.f32 1.0, %v1793_v2  ;;  %v399_v22 = vmin.f32 %v2691_v12, 20.0  ;;  %v1797_v42 = vpop.eup %1796  ;;  %1812 = vrcp.f32 %v836_v39 }
  0x74   :  { %v203_v54 = vmul.f32 %v2319_v50, %v3162_v24  ;;  %v583_v30 = vadd.f32 1.0, %v1795_v61  ;;  %v490_v57 = vmul.f32 1.442695, %v398_v40  ;;  %v272_v33 = vadd.f32 %v2330_v59, %v202_v53  ;;  %v1799_v45 = vpop.eup %1798 }
  0x75   :  { %v1354_v21 = vadd.f32 -1.0, %v645_v38  ;;  %1814 = vrcp.f32 %v837_v58  ;;  %v646_v44 = vmul.f32 %v582_v0, %v582_v0  ;;  %v584_v9 = vadd.f32 1.0, %v1797_v42 }
  0x76   :  { %v647_v62 = vmul.f32 %v583_v30, %v583_v30  ;;  %v585_v36 = vadd.f32 1.0, %v1799_v45  ;;  %1816 = vpow2.f32 %v490_v57  ;;  %v492_v49 = vmul.f32 1.442695, %v399_v22 }
  0x77   :  { %v772_v29 = vmul.f32 %v1353_v27, %v2564_v7  ;;  %v1355_v51 = vadd.f32 -1.0, %v646_v44  ;;  %v838_v25 = vadd.f32 1.0, %v646_v44  ;;  %v648_v46 = vmul.f32 %v584_v9, %v584_v9  ;;  %v1801_v52 = vpop.eup %1800 }
  0x78   :  { %v1356_v23 = vadd.f32 -1.0, %v647_v62  ;;  %v839_v28 = vadd.f32 1.0, %v647_v62  ;;  %v649_v60 = vmul.f32 %v585_v36, %v585_v36  ;;  %1818 = vpow2.f32 %v492_v49 }
  0x79   :  { %v773_v16 = vmul.f32 %v1354_v21, %v2566_v10  ;;  %1820 = vrcp.f32 %v838_v25  ;;  %v840_v8 = vadd.f32 1.0, %v648_v46  ;;  %v273_v34 = vadd.f32 %v2330_v59, %v203_v54 }
  0x7a   :  { %v1803_v31 = vpop.eup %1802  ;;  %1822 = vrcp.f32 %v839_v28  ;;  %v1357_v47 = vadd.f32 -1.0, %v648_v46  ;;  %v1358_v6 = vadd.f32 -1.0, %v649_v60  ;;  %v841_v32 = vadd.f32 1.0, %v649_v60 }
  0x7b   :  { %v1805_v7 = vpop.eup %1804  ;;  %v774_v14 = vmul.f32 %v1355_v51, %v2599_v15  ;;  %1824 = vrcp.f32 %v840_v8  ;;  %v586_v53 = vadd.f32 1.0, %v1801_v52  ;;  %v587_v38 = vadd.f32 1.0, %v1803_v31 }
  0x7c   :  { %v1807_v2 = vpop.eup %1806  ;;  %v962_v39 = vmul.f32 %v1805_v7, %v770_v35  ;;  %v775_v40 = vmul.f32 %v1356_v23, %v2601_v41  ;;  %1826 = vrcp.f32 %v841_v32  ;;  %v2706_v10 = vadd.f32 0.1, %v272_v33 }
  0x7d   :  { %v1809_v24 = vpop.eup %1808  ;;  %v963_v54 = vmul.f32 %v1807_v2, %v771_v56  ;;  %v650_v61 = vmul.f32 %v586_v53, %v586_v53  ;;  %v651_v27 = vmul.f32 %v587_v38, %v587_v38  ;;  %v2708_v58 = vadd.f32 0.1, %v273_v34 }
  0x7e   :  { %v1811_v0 = vpop.eup %1810  ;;  %v776_v22 = vmul.f32 %v1357_v47, %v2604_v26  ;;  %v777_v15 = vmul.f32 %v1358_v6, %v2616_v48  ;;  %v588_v42 = vadd.f32 1.0, %v1809_v24  ;;  %v400_v30 = vmin.f32 %v2706_v10, 20.0 }
  0x7f   :  { %v1570_v35 = vpack.c.bf16 %v963_v54, %v962_v39  ;;  %v1359_v57 = vadd.f32 -1.0, %v650_v61  ;;  %v1360_v41 = vadd.f32 -1.0, %v651_v27  ;;  %v842_v45 = vadd.f32 1.0, %v650_v61 }
  0x80   :  { %v843_v33 = vadd.f32 1.0, %v651_v27  ;;  %v589_v21 = vadd.f32 1.0, %v1811_v0  ;;  %v652_v44 = vmul.f32 %v588_v42, %v588_v42  ;;  %v401_v56 = vmin.f32 %v2708_v58, 20.0  ;;  %v1813_v9 = vpop.eup %1812 }
  0x81   :  { %1694 = vst [vmem:[%s3122_s5 + $0x40] sm:$0xff] %v1570_v35   ;;  %1828 = vrcp.f32 %v842_v45  ;;  %v494_v26 = vmul.f32 1.442695, %v400_v30  ;;  %v3163_v48 = vsub.f32 %v2230_v3, %v2028_v13  ;;  %v3164_v36 = vsub.f32 %v2235_v4, %v2028_v13 }
  0x82   :  { %v1815_v51 = vpop.eup %1814  ;;  %v964_v25 = vmul.f32 %v1813_v9, %v772_v29  ;;  %v778_v46 = vmul.f32 %v1359_v57, %v2634_v19  ;;  %1830 = vrcp.f32 %v843_v33  ;;  %v653_v52 = vmul.f32 %v589_v21, %v589_v21 }
  0x83   :  { %v204_v62 = vmul.f32 %v2319_v50, %v3163_v48  ;;  %v205_v49 = vmul.f32 %v2319_v50, %v3164_v36  ;;  %v1817_v23 = vpop.eup %1816  ;;  %v965_v28 = vmul.f32 %v1815_v51, %v773_v16  ;;  %v844_v60 = vadd.f32 1.0, %v652_v44  ;;  %v3169_v36 = vld [vmem:[#allocation3_spill] sm:$0xff] }
  0x84   :  { %1832 = vpow2.f32 %v494_v26  ;;  %v496_v8 = vmul.f32 1.442695, %v401_v56  ;;  %v779_v3 = vmul.f32 %v1360_v41, %v2643_v18  ;;  %v1361_v34 = vadd.f32 -1.0, %v652_v44 }
  0x85   :  { %v845_v31 = vadd.f32 1.0, %v653_v52  ;;  %v590_v47 = vadd.f32 1.0, %v1817_v23  ;;  %v1819_v6 = vpop.eup %1818  ;;  %v1575_v4 = vpack.c.bf16 %v965_v28, %v964_v25  ;;  %1834 = vrcp.f32 %v844_v60  ;;  %v3171_v25 = vld [vmem:[#allocation4_spill] sm:$0xff] }
  0x86   :  { %v274_v32 = vadd.f32 %v2330_v59, %v204_v62  ;;  %v275_v29 = vadd.f32 %v2330_v59, %v205_v49  ;;  %v1821_v19 = vpop.eup %1820  ;;  %v1362_v7 = vadd.f32 -1.0, %v653_v52  ;;  %v591_v53 = vadd.f32 1.0, %v1819_v6 }
  0x87   :  { %1836 = vrcp.f32 %v845_v31  ;;  %v654_v16 = vmul.f32 %v590_v47, %v590_v47  ;;  %v1823_v38 = vpop.eup %1822  ;;  %1695 = vst [vmem:[%s3122_s5 + $0x48] sm:$0xff] %v1575_v4   ;;  %v966_v18 = vmul.f32 %v1821_v19, %v774_v14  ;;  %v780_v61 = vmul.f32 %v1361_v34, %v2650_v17 }
  0x88   :  { %1838 = vpow2.f32 %v496_v8  ;;  %v2732_v2 = vadd.f32 0.1, %v274_v32  ;;  %v2734_v39 = vadd.f32 0.1, %v275_v29  ;;  %v1825_v24 = vpop.eup %1824  ;;  %v967_v54 = vmul.f32 %v1823_v38, %v775_v40  ;;  %v3173_v8 = vld [vmem:[#allocation5_spill] sm:$0xff] }
  0x89   :  { %v655_v27 = vmul.f32 %v591_v53, %v591_v53  ;;  %v846_v0 = vadd.f32 1.0, %v654_v16  ;;  %v1827_v42 = vpop.eup %1826  ;;  %v968_v30 = vmul.f32 %v1825_v24, %v776_v22  ;;  %v3165_v14 = vsub.f32 %v2240_v5, %v2028_v13 }
  0x8a   :  { %v402_v35 = vmin.f32 %v2732_v2, 20.0  ;;  %v403_v57 = vmin.f32 %v2734_v39, 20.0  ;;  %v1580_v45 = vpack.c.bf16 %v967_v54, %v966_v18  ;;  %v969_v33 = vmul.f32 %v1827_v42, %v777_v15 }
  0x8b   :  { %v206_v41 = vmul.f32 %v2319_v50, %v3165_v14  ;;  %v781_v21 = vmul.f32 %v1362_v7, %v2658_v37  ;;  %v1363_v40 = vadd.f32 -1.0, %v654_v16  ;;  %v847_v44 = vadd.f32 1.0, %v655_v27  ;;  %v3167_v37 = vld [vmem:[#allocation2_spill] sm:$0xff] }
  0x8c   :  { %1840 = vrcp.f32 %v846_v0  ;;  %v498_v17 = vmul.f32 1.442695, %v402_v35  ;;  %v500_v56 = vmul.f32 1.442695, %v403_v57  ;;  %1696 = vst [vmem:[%s3122_s5 + $0x50] sm:$0xff] %v1580_v45   ;;  %v1585_v22 = vpack.c.bf16 %v969_v33, %v968_v30 }
  0x8d   :  { %v1364_v9 = vadd.f32 -1.0, %v655_v27  ;;  %v3166_v5 = vsub.f32 %v2253_v1, %v2028_v13  ;;  %v276_v15 = vadd.f32 %v2330_v59, %v206_v41  ;;  %1842 = vrcp.f32 %v847_v44  ;;  %v2782_v16 = vld [vmem:[%s3121_s4] ss:$0 sm:$0xff] }
  0x8e   :  { %v3168_v48 = vsub.f32 %v3167_v37, %v2028_v13  ;;  %v3170_v49 = vsub.f32 %v3169_v36, %v2028_v13  ;;  %v3172_v52 = vsub.f32 %v3171_v25, %v2028_v13  ;;  %v1829_v23 = vpop.eup %1828  ;;  %1697 = vst [vmem:[%s3122_s5 + $0x58] sm:$0xff] %v1585_v22   ;;  %1844 = vpow2.f32 %v498_v17  ;;  %v3177_v25 = vld [vmem:[#allocation7_spill] sm:$0xff] }
  0x8f   :  { %v207_v26 = vmul.f32 %v2319_v50, %v3166_v5  ;;  %v2768_v60 = vadd.f32 0.1, %v276_v15  ;;  %v3174_v34 = vsub.f32 %v3173_v8, %v2028_v13  ;;  %v1831_v47 = vpop.eup %1830  ;;  %v970_v6 = vmul.f32 %v1829_v23, %v778_v46 }
  0x90   :  { %v208_v62 = vmul.f32 %v2319_v50, %v3168_v48  ;;  %v209_v51 = vmul.f32 %v2319_v50, %v3170_v49  ;;  %v210_v1 = vmul.f32 %v2319_v50, %v3172_v52  ;;  %1846 = vpow2.f32 %v500_v56 }
  0x91   :  { %v277_v28 = vadd.f32 %v2330_v59, %v207_v26  ;;  %v211_v31 = vmul.f32 %v2319_v50, %v3174_v34  ;;  %v1833_v29 = vpop.eup %1832  ;;  %v971_v19 = vmul.f32 %v1831_v47, %v779_v3  ;;  %v404_v53 = vmin.f32 %v2768_v60, 20.0 }
  0x92   :  { %v278_v4 = vadd.f32 %v2330_v59, %v208_v62  ;;  %v279_v32 = vadd.f32 %v2330_v59, %v209_v51  ;;  %v280_v38 = vadd.f32 %v2782_v16, %v210_v1  ;;  %v592_v18 = vadd.f32 1.0, %v1833_v29  ;;  %v1835_v54 = vpop.eup %1834 }
  0x93   :  { %v2776_v7 = vadd.f32 0.1, %v277_v28  ;;  %v281_v59 = vadd.f32 %v2782_v16, %v211_v31  ;;  %v1590_v3 = vpack.c.bf16 %v971_v19, %v970_v6  ;;  %v502_v0 = vmul.f32 1.442695, %v404_v53 }
  0x94   :  { %v2785_v46 = vadd.f32 0.1, %v278_v4  ;;  %v2787_v24 = vadd.f32 0.1, %v279_v32  ;;  %v2791_v42 = vadd.f32 0.1, %v280_v38  ;;  %v1837_v30 = vpop.eup %1836  ;;  %v972_v35 = vmul.f32 %v1835_v54, %v780_v61 }
  0x95   :  { %v405_v27 = vmin.f32 %v2776_v7, 20.0  ;;  %v656_v57 = vmul.f32 %v592_v18, %v592_v18  ;;  %v1839_v45 = vpop.eup %1838  ;;  %1698 = vst [vmem:[%s3122_s5 + $0x60] sm:$0xff] %v1590_v3   ;;  %v973_v33 = vmul.f32 %v1837_v30, %v781_v21  ;;  %1848 = vpow2.f32 %v502_v0  ;;  %v3179_v32 = vld [vmem:[#allocation8_spill] sm:$0xff] }
  0x96   :  { %v406_v14 = vmin.f32 %v2785_v46, 20.0  ;;  %v407_v41 = vmin.f32 %v2787_v24, 20.0  ;;  %v2798_v17 = vadd.f32 0.1, %v281_v59  ;;  %v782_v56 = vmul.f32 %v1363_v40, %v2684_v11  ;;  %v3175_v40 = vld [vmem:[#allocation6_spill] sm:$0xff] }
  0x97   :  { %v504_v44 = vmul.f32 1.442695, %v405_v27  ;;  %v593_v22 = vadd.f32 1.0, %v1839_v45  ;;  %v848_v5 = vadd.f32 1.0, %v656_v57  ;;  %v1595_v26 = vpack.c.bf16 %v973_v33, %v972_v35  ;;  %v3181_v27 = vld [vmem:[#allocation9_spill] sm:$0xff] }
  0x98   :  { %v506_v61 = vmul.f32 1.442695, %v406_v14  ;;  %v508_v15 = vmul.f32 1.442695, %v407_v41  ;;  %v408_v37 = vmin.f32 %v2791_v42, 20.0  ;;  %v783_v48 = vmul.f32 %v1364_v9, %v2691_v12 }
  0x99   :  { %1850 = vpow2.f32 %v504_v44  ;;  %v657_v62 = vmul.f32 %v593_v22, %v593_v22  ;;  %v409_v21 = vmin.f32 %v2798_v17, 20.0  ;;  %v1841_v36 = vpop.eup %1840  ;;  %1699 = vst [vmem:[%s3122_s5 + $0x68] sm:$0xff] %v1595_v26   ;;  %v3176_v49 = vsub.f32 %v3175_v40, %v2028_v13 }
  0x9a   :  { %1852 = vrcp.f32 %v848_v5  ;;  %v510_v11 = vmul.f32 1.442695, %v408_v37  ;;  %v3178_v52 = vsub.f32 %v3177_v25, %v2028_v13  ;;  %v974_v9 = vmul.f32 %v1841_v36, %v782_v56  ;;  %v1843_v28 = vpop.eup %1842 }
  0x9b   :  { %1854 = vpow2.f32 %v506_v61  ;;  %v212_v51 = vmul.f32 %v2319_v50, %v3176_v49  ;;  %v1365_v1 = vadd.f32 -1.0, %v656_v57  ;;  %v849_v23 = vadd.f32 1.0, %v657_v62  ;;  %v1845_v47 = vpop.eup %1844 }
  0x9c   :  { %v213_v12 = vmul.f32 %v2319_v50, %v3178_v52  ;;  %1856 = vpow2.f32 %v508_v15  ;;  %v512_v8 = vmul.f32 1.442695, %v409_v21  ;;  %v975_v6 = vmul.f32 %v1843_v28, %v783_v48 }
  0x9d   :  { %1858 = vpow2.f32 %v510_v11  ;;  %v282_v34 = vadd.f32 %v2782_v16, %v212_v51  ;;  %v1366_v4 = vadd.f32 -1.0, %v657_v62  ;;  %v3180_v29 = vsub.f32 %v3179_v32, %v2028_v13  ;;  %v1847_v53 = vpop.eup %1846 }
  0x9e   :  { %v283_v31 = vadd.f32 %v2782_v16, %v213_v12  ;;  %1860 = vrcp.f32 %v849_v23  ;;  %v594_v38 = vadd.f32 1.0, %v1845_v47  ;;  %v1600_v54 = vpack.c.bf16 %v975_v6, %v974_v9 }
  0x9f   :  { %v214_v19 = vmul.f32 %v2319_v50, %v3180_v29  ;;  %1862 = vpow2.f32 %v512_v8  ;;  %v2821_v18 = vadd.f32 0.1, %v282_v34  ;;  %v595_v3 = vadd.f32 1.0, %v1847_v53 }
  0xa0   :  { %v2823_v59 = vadd.f32 0.1, %v283_v31  ;;  %v3182_v0 = vsub.f32 %v3181_v27, %v2028_v13  ;;  %v658_v57 = vmul.f32 %v594_v38, %v594_v38  ;;  %v216_v45 = vmul.f32 %v2319_v50, %v143_v63  ;;  %1700 = vst [vmem:[%s3122_s5 + $0x70] sm:$0xff] %v1600_v54  }
  0xa1   :  { %v284_v35 = vadd.f32 %v2782_v16, %v214_v19  ;;  %v410_v14 = vmin.f32 %v2821_v18, 20.0  ;;  %v784_v33 = vmul.f32 %v1365_v1, %v2706_v10  ;;  %v659_v44 = vmul.f32 %v595_v3, %v595_v3 }
  0xa2   :  { %v215_v30 = vmul.f32 %v2319_v50, %v3182_v0  ;;  %v411_v41 = vmin.f32 %v2823_v59, 20.0  ;;  %v1367_v5 = vadd.f32 -1.0, %v658_v57  ;;  %v850_v61 = vadd.f32 1.0, %v658_v57  ;;  %v1849_v63 = vpop.eup %1848 }
  0xa3   :  { %v2841_v22 = vadd.f32 0.1, %v284_v35  ;;  %v514_v26 = vmul.f32 1.442695, %v410_v14  ;;  %v217_v20 = vmul.f32 %v2319_v50, %v144_v43  ;;  %v851_v15 = vadd.f32 1.0, %v659_v44 }
  0xa4   :  { %v285_v56 = vadd.f32 %v2782_v16, %v215_v30  ;;  %v516_v37 = vmul.f32 1.442695, %v411_v41  ;;  %v785_v62 = vmul.f32 %v1366_v4, %v2708_v58  ;;  %1864 = vrcp.f32 %v850_v61  ;;  %v66_v61 = vld [vmem:[%s3119_s0 + $0x170] sm:$0xff] }
  0xa5   :  { %v412_v10 = vmin.f32 %v2841_v22, 20.0  ;;  %v596_v21 = vadd.f32 1.0, %v1849_v63  ;;  %v286_v36 = vadd.f32 %v2782_v16, %v216_v45  ;;  %v1368_v40 = vadd.f32 -1.0, %v659_v44 }
  0xa6   :  { %v2847_v48 = vadd.f32 0.1, %v285_v56  ;;  %v1851_v11 = vpop.eup %1850  ;;  %1866 = vrcp.f32 %v851_v15  ;;  %v287_v52 = vadd.f32 %v2782_v16, %v217_v20  ;;  %v786_v58 = vmul.f32 %v1367_v5, %v2732_v2 }
  0xa7   :  { %v518_v49 = vmul.f32 1.442695, %v412_v10  ;;  %v1853_v43 = vpop.eup %1852  ;;  %v597_v51 = vadd.f32 1.0, %v1851_v11  ;;  %v660_v25 = vmul.f32 %v596_v21, %v596_v21  ;;  %1868 = vpow2.f32 %v514_v26  ;;  %v67_v10 = vld [vmem:[%s3119_s0 + $0x178] sm:$0xff] }
  0xa8   :  { %v413_v55 = vmin.f32 %v2847_v48, 20.0  ;;  %v1855_v12 = vpop.eup %1854  ;;  %v976_v9 = vmul.f32 %v1853_v43, %v784_v33  ;;  %1870 = vpow2.f32 %v516_v37  ;;  %v2855_v1 = vadd.f32 0.1, %v286_v36 }
  0xa9   :  { %v1857_v23 = vpop.eup %1856  ;;  %v661_v28 = vmul.f32 %v597_v51, %v597_v51  ;;  %v852_v8 = vadd.f32 1.0, %v660_v25  ;;  %v598_v34 = vadd.f32 1.0, %v1855_v12  ;;  %v1369_v6 = vadd.f32 -1.0, %v660_v25 }
  0xaa   :  { %v520_v31 = vmul.f32 1.442695, %v413_v55  ;;  %v1859_v47 = vpop.eup %1858  ;;  %v599_v4 = vadd.f32 1.0, %v1857_v23  ;;  %1872 = vpow2.f32 %v518_v49  ;;  %v2857_v32 = vadd.f32 0.1, %v287_v52 }
  0xab   :  { %v1861_v29 = vpop.eup %1860  ;;  %v1370_v19 = vadd.f32 -1.0, %v661_v28  ;;  %v853_v53 = vadd.f32 1.0, %v661_v28  ;;  %1874 = vrcp.f32 %v852_v8  ;;  %v414_v2 = vmin.f32 %v2855_v1, 20.0 }
  0xac   :  { %v1863_v38 = vpop.eup %1862  ;;  %v977_v54 = vmul.f32 %v1861_v29, %v785_v62  ;;  %v662_v3 = vmul.f32 %v598_v34, %v598_v34  ;;  %v663_v27 = vmul.f32 %v599_v4, %v599_v4  ;;  %v600_v0 = vadd.f32 1.0, %v1859_v47 }
  0xad   :  { %v787_v30 = vmul.f32 %v1368_v40, %v2734_v39  ;;  %1876 = vrcp.f32 %v853_v53  ;;  %v601_v35 = vadd.f32 1.0, %v1863_v38  ;;  %v415_v57 = vmin.f32 %v2857_v32, 20.0 }
  0xae   :  { %v1605_v14 = vpack.c.bf16 %v977_v54, %v976_v9  ;;  %v1371_v41 = vadd.f32 -1.0, %v662_v3  ;;  %v1372_v45 = vadd.f32 -1.0, %v663_v27  ;;  %v854_v33 = vadd.f32 1.0, %v662_v3 }
  0xaf   :  { %v855_v44 = vadd.f32 1.0, %v663_v27  ;;  %v664_v56 = vmul.f32 %v600_v0, %v600_v0  ;;  %v665_v5 = vmul.f32 %v601_v35, %v601_v35  ;;  %1878 = vpow2.f32 %v520_v31 }
  0xb0   :  { %1701 = vst [vmem:[%s3122_s5 + $0x78] sm:$0xff] %v1605_v14   ;;  %v788_v39 = vmul.f32 %v1369_v6, %v2768_v60  ;;  %v789_v26 = vmul.f32 %v1370_v19, %v2776_v7  ;;  %1880 = vrcp.f32 %v854_v33  ;;  %v522_v20 = vmul.f32 1.442695, %v414_v2 }
  0xb1   :  { %v2871_v63 = vmul.f32 %v1371_v41, %v2785_v46  ;;  %v2874_v15 = vmul.f32 %v1372_v45, %v2787_v24  ;;  %1882 = vrcp.f32 %v855_v44  ;;  %v856_v37 = vadd.f32 1.0, %v664_v56  ;;  %v1865_v62 = vpop.eup %1864  ;;  %v68_v46 = vld [vmem:[%s3119_s0 + $0x180] sm:$0xff]  ;;  %v69_v24 = vld [vmem:[%s3119_s0 + $0x188] sm:$0xff] }
  0xb2   :  { %v857_v21 = vadd.f32 1.0, %v665_v5  ;;  %1884 = vpow2.f32 %v522_v20  ;;  %v524_v60 = vmul.f32 1.442695, %v415_v57  ;;  %v145_v7 = vsub.f32 %v66_v61, %v2028_v13 }
  0xb3   :  { %v1867_v36 = vpop.eup %1866  ;;  %v978_v11 = vmul.f32 %v1865_v62, %v786_v58  ;;  %v1373_v40 = vadd.f32 -1.0, %v664_v56  ;;  %v1374_v55 = vadd.f32 -1.0, %v665_v5  ;;  %1886 = vrcp.f32 %v856_v37 }
  0xb4   :  { %v1869_v49 = vpop.eup %1868  ;;  %v979_v43 = vmul.f32 %v1867_v36, %v787_v30  ;;  %1888 = vrcp.f32 %v857_v21  ;;  %v146_v51 = vsub.f32 %v67_v10, %v2028_v13  ;;  %v218_v25 = vmul.f32 %v2319_v50, %v145_v7 }
  0xb5   :  { %v1871_v52 = vpop.eup %1870  ;;  %v602_v12 = vadd.f32 1.0, %v1869_v49  ;;  %1890 = vpow2.f32 %v524_v60  ;;  %v147_v9 = vsub.f32 %v68_v46, %v2028_v13  ;;  %v148_v23 = vsub.f32 %v69_v24, %v2028_v13 }
  0xb6   :  { %v1610_v28 = vpack.c.bf16 %v979_v43, %v978_v11  ;;  %v603_v8 = vadd.f32 1.0, %v1871_v52  ;;  %v219_v58 = vmul.f32 %v2319_v50, %v146_v51  ;;  %v288_v34 = vadd.f32 %v2782_v16, %v218_v25 }
  0xb7   :  { %v1873_v31 = vpop.eup %1872  ;;  %v792_v47 = vmul.f32 %v1373_v40, %v2791_v42  ;;  %v793_v6 = vmul.f32 %v1374_v55, %v2798_v17  ;;  %v666_v4 = vmul.f32 %v602_v12, %v602_v12  ;;  %v220_v29 = vmul.f32 %v2319_v50, %v147_v9  ;;  %v2904_v42 = vld [vmem:[%s3119_s0 + $0x190] sm:$0xff] }
  0xb8   :  { %v1875_v19 = vpop.eup %1874  ;;  %1702 = vst [vmem:[%s3122_s5 + $0x80] sm:$0xff] %v1610_v28   ;;  %v667_v53 = vmul.f32 %v603_v8, %v603_v8  ;;  %v604_v2 = vadd.f32 1.0, %v1873_v31  ;;  %v289_v38 = vadd.f32 %v2782_v16, %v219_v58  ;;  %v2899_v54 = vadd.f32 0.1, %v288_v34 }
  0xb9   :  { %v980_v17 = vmul.f32 %v1875_v19, %v788_v39  ;;  %v1375_v3 = vadd.f32 -1.0, %v666_v4  ;;  %v858_v27 = vadd.f32 1.0, %v666_v4  ;;  %v221_v0 = vmul.f32 %v2319_v50, %v148_v23 }
  0xba   :  { %v1877_v30 = vpop.eup %1876  ;;  %v1376_v35 = vadd.f32 -1.0, %v667_v53  ;;  %v859_v57 = vadd.f32 1.0, %v667_v53  ;;  %v668_v14 = vmul.f32 %v604_v2, %v604_v2  ;;  %v2907_v41 = vadd.f32 0.1, %v289_v38 }
  0xbb   :  { %v981_v45 = vmul.f32 %v1877_v30, %v789_v26  ;;  %1892 = vrcp.f32 %v858_v27  ;;  %v416_v33 = vmin.f32 %v2899_v54, 20.0  ;;  %v149_v44 = vsub.f32 %v2904_v42, %v2028_v13 }
  0xbc   :  { %v1879_v56 = vpop.eup %1878  ;;  %v2913_v5 = vmul.f32 %v1375_v3, %v2821_v18  ;;  %1894 = vrcp.f32 %v859_v57  ;;  %v860_v61 = vadd.f32 1.0, %v668_v14  ;;  %v290_v39 = vadd.f32 %v2782_v16, %v220_v29  ;;  %v71_v18 = vld [vmem:[%s3119_s0 + $0x198] sm:$0xff] }
  0xbd   :  { %v1881_v20 = vpop.eup %1880  ;;  %v1615_v37 = vpack.c.bf16 %v981_v45, %v980_v17  ;;  %v605_v10 = vadd.f32 1.0, %v1879_v56  ;;  %v417_v62 = vmin.f32 %v2907_v41, 20.0  ;;  %v526_v26 = vmul.f32 1.442695, %v416_v33 }
  0xbe   :  { %v1883_v21 = vpop.eup %1882  ;;  %v982_v60 = vmul.f32 %v1881_v20, %v2871_v63  ;;  %v795_v7 = vmul.f32 %v1376_v35, %v2823_v59  ;;  %1896 = vrcp.f32 %v860_v61  ;;  %v291_v46 = vadd.f32 %v2782_v16, %v221_v0 }
  0xbf   :  { %v1885_v24 = vpop.eup %1884  ;;  %1703 = vst [vmem:[%s3122_s5 + $0x88] sm:$0xff] %v1615_v37   ;;  %v983_v36 = vmul.f32 %v1883_v21, %v2874_v15  ;;  %v669_v11 = vmul.f32 %v605_v10, %v605_v10  ;;  %1898 = vpow2.f32 %v526_v26  ;;  %v528_v40 = vmul.f32 1.442695, %v417_v62  ;;  %v76_v37 = vld [vmem:[%s3119_s0 + $0x1c0] sm:$0xff] }
  0xc0   :  { %v1887_v63 = vpop.eup %1886  ;;  %v1377_v55 = vadd.f32 -1.0, %v668_v14  ;;  %v606_v59 = vadd.f32 1.0, %v1885_v24  ;;  %v2927_v49 = vadd.f32 0.1, %v290_v39  ;;  %v2929_v43 = vadd.f32 0.1, %v291_v46 }
  0xc1   :  { %v1889_v51 = vpop.eup %1888  ;;  %v1620_v25 = vpack.c.bf16 %v983_v36, %v982_v60  ;;  %v984_v52 = vmul.f32 %v1887_v63, %v792_v47  ;;  %v861_v12 = vadd.f32 1.0, %v669_v11  ;;  %v150_v9 = vsub.f32 %v71_v18, %v2028_v13  ;;  %v72_v47 = vld [vmem:[%s3119_s0 + $0x1a0] sm:$0xff] }
  0xc2   :  { %v1891_v23 = vpop.eup %1890  ;;  %v985_v28 = vmul.f32 %v1889_v51, %v793_v6  ;;  %v670_v8 = vmul.f32 %v606_v59, %v606_v59  ;;  %1900 = vpow2.f32 %v528_v40  ;;  %v418_v15 = vmin.f32 %v2927_v49, 20.0  ;;  %v73_v6 = vld [vmem:[%s3119_s0 + $0x1a8] sm:$0xff] }
  0xc3   :  { %1704 = vst [vmem:[%s3122_s5 + $0x90] sm:$0xff] %v1620_v25   ;;  %v1378_v58 = vadd.f32 -1.0, %v669_v11  ;;  %1902 = vrcp.f32 %v861_v12  ;;  %v607_v34 = vadd.f32 1.0, %v1891_v23  ;;  %v419_v31 = vmin.f32 %v2929_v43, 20.0  ;;  %v77_v23 = vld [vmem:[%s3119_s0 + $0x1c8] sm:$0xff] }
  0xc4   :  { %v1625_v4 = vpack.c.bf16 %v985_v28, %v984_v52  ;;  %v1379_v29 = vadd.f32 -1.0, %v670_v8  ;;  %v862_v19 = vadd.f32 1.0, %v670_v8  ;;  %v530_v53 = vmul.f32 1.442695, %v418_v15 }
  0xc5   :  { %v671_v2 = vmul.f32 %v607_v34, %v607_v34  ;;  %v532_v38 = vmul.f32 1.442695, %v419_v31  ;;  %v222_v42 = vmul.f32 %v2319_v50, %v149_v44  ;;  %v223_v17 = vmul.f32 %v2319_v50, %v150_v9 }
  0xc6   :  { %1705 = vst [vmem:[%s3122_s5 + $0x98] sm:$0xff] %v1625_v4   ;;  %v796_v3 = vmul.f32 %v1377_v55, %v2841_v22  ;;  %1904 = vrcp.f32 %v862_v19  ;;  %v151_v27 = vsub.f32 %v72_v47, %v2028_v13  ;;  %v152_v0 = vsub.f32 %v73_v6, %v2028_v13  ;;  %v74_v22 = vld [vmem:[%s3119_s0 + $0x1b0] sm:$0xff] }
  0xc7   :  { %v797_v30 = vmul.f32 %v1378_v58, %v2847_v48  ;;  %v863_v35 = vadd.f32 1.0, %v671_v2  ;;  %1906 = vpow2.f32 %v530_v53  ;;  %v292_v57 = vadd.f32 %v2782_v16, %v222_v42  ;;  %v75_v48 = vld [vmem:[%s3119_s0 + $0x1b8] sm:$0xff] }
  0xc8   :  { %v1893_v14 = vpop.eup %1892  ;;  %1908 = vpow2.f32 %v532_v38  ;;  %v293_v45 = vadd.f32 %v2782_v16, %v223_v17  ;;  %v224_v33 = vmul.f32 %v2319_v50, %v151_v27  ;;  %v225_v44 = vmul.f32 %v2319_v50, %v152_v0 }
  0xc9   :  { %v1895_v56 = vpop.eup %1894  ;;  %v986_v61 = vmul.f32 %v1893_v14, %v2913_v5  ;;  %v798_v39 = vmul.f32 %v1379_v29, %v2855_v1  ;;  %1910 = vrcp.f32 %v863_v35  ;;  %v2964_v20 = vadd.f32 0.1, %v292_v57 }
  0xca   :  { %v987_v10 = vmul.f32 %v1895_v56, %v795_v7  ;;  %v2969_v62 = vadd.f32 0.1, %v293_v45  ;;  %v294_v26 = vadd.f32 %v2782_v16, %v224_v33  ;;  %v295_v21 = vadd.f32 %v2782_v16, %v225_v44 }
  0xcb   :  { %v1897_v60 = vpop.eup %1896  ;;  %v1380_v46 = vadd.f32 -1.0, %v671_v2  ;;  %v420_v5 = vmin.f32 %v2964_v20, 20.0  ;;  %v153_v1 = vsub.f32 %v74_v22, %v2028_v13  ;;  %v154_v18 = vsub.f32 %v75_v48, %v2028_v13 }
  0xcc   :  { %v1899_v24 = vpop.eup %1898  ;;  %v1630_v36 = vpack.c.bf16 %v987_v10, %v986_v61  ;;  %v421_v11 = vmin.f32 %v2969_v62, 20.0  ;;  %v2977_v40 = vadd.f32 0.1, %v294_v26  ;;  %v155_v7 = vsub.f32 %v76_v37, %v2028_v13 }
  0xcd   :  { %v608_v63 = vadd.f32 1.0, %v1899_v24  ;;  %v534_v55 = vmul.f32 1.442695, %v420_v5  ;;  %v2980_v59 = vadd.f32 0.1, %v295_v21  ;;  %v226_v51 = vmul.f32 %v2319_v50, %v153_v1  ;;  %v79_v1 = vld [vmem:[%s3119_s0 + $0x1d8] sm:$0xff] }
  0xce   :  { %1706 = vst [vmem:[%s3122_s5 + $0xa0] sm:$0xff] %v1630_v36   ;;  %v988_v25 = vmul.f32 %v1897_v60, %v796_v3  ;;  %v536_v52 = vmul.f32 1.442695, %v421_v11  ;;  %v422_v12 = vmin.f32 %v2977_v40, 20.0  ;;  %v227_v9 = vmul.f32 %v2319_v50, %v154_v18 }
  0xcf   :  { %v1901_v28 = vpop.eup %1900  ;;  %v672_v8 = vmul.f32 %v608_v63, %v608_v63  ;;  %1912 = vpow2.f32 %v534_v55  ;;  %v423_v15 = vmin.f32 %v2980_v59, 20.0  ;;  %v296_v58 = vadd.f32 %v2782_v16, %v226_v51 }
  0xd0   :  { %v1903_v34 = vpop.eup %1902  ;;  %v609_v31 = vadd.f32 1.0, %v1901_v28  ;;  %1914 = vpow2.f32 %v536_v52  ;;  %v538_v47 = vmul.f32 1.442695, %v422_v12  ;;  %v297_v6 = vadd.f32 %v2782_v16, %v227_v9 }
  0xd1   :  { %v989_v4 = vmul.f32 %v1903_v34, %v797_v30  ;;  %v864_v29 = vadd.f32 1.0, %v672_v8  ;;  %v540_v19 = vmul.f32 1.442695, %v423_v15  ;;  %v156_v53 = vsub.f32 %v77_v23, %v2028_v13  ;;  %v80_v23 = vld [vmem:[%s3119_s0 + $0x1e0] sm:$0xff] }
  0xd2   :  { %v673_v2 = vmul.f32 %v609_v31, %v609_v31  ;;  %1916 = vpow2.f32 %v538_v47  ;;  %v2995_v38 = vadd.f32 0.1, %v296_v58  ;;  %v2997_v42 = vadd.f32 0.1, %v297_v6 }
  0xd3   :  { %v1905_v17 = vpop.eup %1904  ;;  %v1635_v3 = vpack.c.bf16 %v989_v4, %v988_v25  ;;  %v799_v27 = vmul.f32 %v1380_v46, %v2857_v32  ;;  %1918 = vrcp.f32 %v864_v29  ;;  %v228_v0 = vmul.f32 %v2319_v50, %v155_v7  ;;  %v78_v32 = vld [vmem:[%s3119_s0 + $0x1d0] sm:$0xff]  ;;  %v81_v4 = vld [vmem:[%s3119_s0 + $0x1e8] sm:$0xff] }
  0xd4   :  { %v1907_v35 = vpop.eup %1906  ;;  %v990_v57 = vmul.f32 %v1905_v17, %v798_v39  ;;  %v865_v30 = vadd.f32 1.0, %v673_v2  ;;  %1920 = vpow2.f32 %v540_v19  ;;  %v424_v33 = vmin.f32 %v2995_v38, 20.0 }
  0xd5   :  { %v1909_v14 = vpop.eup %1908  ;;  %1707 = vst [vmem:[%s3122_s5 + $0xa8] sm:$0xff] %v1635_v3   ;;  %v610_v45 = vadd.f32 1.0, %v1907_v35  ;;  %v425_v44 = vmin.f32 %v2997_v42, 20.0  ;;  %v229_v22 = vmul.f32 %v2319_v50, %v156_v53  ;;  %v1381_v56 = vadd.f32 -1.0, %v672_v8 }
  0xd6   :  { %v1911_v48 = vpop.eup %1910  ;;  %1922 = vrcp.f32 %v865_v30  ;;  %v611_v61 = vadd.f32 1.0, %v1909_v14  ;;  %v298_v39 = vadd.f32 %v2782_v16, %v228_v0  ;;  %v542_v26 = vmul.f32 1.442695, %v424_v33 }
  0xd7   :  { %v991_v37 = vmul.f32 %v1911_v48, %v799_v27  ;;  %v674_v10 = vmul.f32 %v610_v45, %v610_v45  ;;  %v544_v21 = vmul.f32 1.442695, %v425_v44  ;;  %v299_v46 = vadd.f32 %v2782_v16, %v229_v22 }
  0xd8   :  { %v675_v60 = vmul.f32 %v611_v61, %v611_v61  ;;  %v3012_v5 = vadd.f32 0.1, %v298_v39  ;;  %v157_v18 = vsub.f32 %v78_v32, %v2028_v13  ;;  %v1382_v36 = vadd.f32 -1.0, %v673_v2 }
  0xd9   :  { %v1640_v24 = vpack.c.bf16 %v991_v37, %v990_v57  ;;  %v866_v11 = vadd.f32 1.0, %v674_v10  ;;  %1924 = vpow2.f32 %v542_v26  ;;  %v3018_v63 = vadd.f32 0.1, %v299_v46 }
  0xda   :  { %v867_v7 = vadd.f32 1.0, %v675_v60  ;;  %1926 = vpow2.f32 %v544_v21  ;;  %v426_v55 = vmin.f32 %v3012_v5, 20.0  ;;  %v158_v51 = vsub.f32 %v79_v1, %v2028_v13 }
  0xdb   :  { %1708 = vst [vmem:[%s3122_s5 + $0xb0] sm:$0xff] %v1640_v24   ;;  %1928 = vrcp.f32 %v866_v11  ;;  %v800_v52 = vmul.f32 %v1381_v56, %v2899_v54  ;;  %v427_v12 = vmin.f32 %v3018_v63, 20.0  ;;  %v230_v9 = vmul.f32 %v2319_v50, %v157_v18 }
  0xdc   :  { %v1913_v25 = vpop.eup %1912  ;;  %1930 = vrcp.f32 %v867_v7  ;;  %v801_v8 = vmul.f32 %v1382_v36, %v2907_v41  ;;  %v546_v58 = vmul.f32 1.442695, %v426_v55  ;;  %v231_v34 = vmul.f32 %v2319_v50, %v158_v51 }
  0xdd   :  { %v1915_v28 = vpop.eup %1914  ;;  %v612_v15 = vadd.f32 1.0, %v1913_v25  ;;  %v1383_v31 = vadd.f32 -1.0, %v674_v10  ;;  %v548_v6 = vmul.f32 1.442695, %v427_v12  ;;  %v300_v54 = vadd.f32 %v2782_v16, %v230_v9  ;;  %v82_v12 = vld [vmem:[%s3119_s0 + $0x1f0] sm:$0xff] }
  0xde   :  { %v613_v47 = vadd.f32 1.0, %v1915_v28  ;;  %1932 = vpow2.f32 %v546_v58  ;;  %v301_v53 = vadd.f32 %v2782_v16, %v231_v34  ;;  %v159_v41 = vsub.f32 %v80_v23, %v2028_v13 }
  0xdf   :  { %v1917_v29 = vpop.eup %1916  ;;  %v676_v19 = vmul.f32 %v612_v15, %v612_v15  ;;  %1934 = vpow2.f32 %v548_v6  ;;  %v3039_v27 = vadd.f32 0.1, %v300_v54  ;;  %v1384_v35 = vadd.f32 -1.0, %v675_v60 }
  0xe0   :  { %v1919_v2 = vpop.eup %1918  ;;  %v677_v17 = vmul.f32 %v613_v47, %v613_v47  ;;  %v614_v3 = vadd.f32 1.0, %v1917_v29  ;;  %v3041_v30 = vadd.f32 0.1, %v301_v53  ;;  %v160_v14 = vsub.f32 %v81_v4, %v2028_v13 }
  0xe1   :  { %v1921_v0 = vpop.eup %1920  ;;  %v868_v57 = vadd.f32 1.0, %v676_v19  ;;  %v992_v45 = vmul.f32 %v1919_v2, %v800_v52  ;;  %v428_v48 = vmin.f32 %v3039_v27, 20.0  ;;  %v232_v61 = vmul.f32 %v2319_v50, %v159_v41  ;;  %v83_v2 = vld [vmem:[%s3119_s0 + $0x1f8] sm:$0xff] }
  0xe2   :  { %v869_v33 = vadd.f32 1.0, %v677_v17  ;;  %v615_v44 = vadd.f32 1.0, %v1921_v0  ;;  %v678_v22 = vmul.f32 %v614_v3, %v614_v3  ;;  %v429_v56 = vmin.f32 %v3041_v30, 20.0 }
  0xe3   :  { %v1923_v32 = vpop.eup %1922  ;;  %1936 = vrcp.f32 %v868_v57  ;;  %v802_v10 = vmul.f32 %v1383_v31, %v2927_v49  ;;  %v803_v26 = vmul.f32 %v1384_v35, %v2929_v43  ;;  %v550_v60 = vmul.f32 1.442695, %v428_v48 }
  0xe4   :  { %v993_v39 = vmul.f32 %v1923_v32, %v801_v8  ;;  %1938 = vrcp.f32 %v869_v33  ;;  %v679_v37 = vmul.f32 %v615_v44, %v615_v44  ;;  %v870_v21 = vadd.f32 1.0, %v678_v22 }
  0xe5   :  { %v552_v24 = vmul.f32 1.442695, %v429_v56  ;;  %v233_v36 = vmul.f32 %v2319_v50, %v160_v14  ;;  %v1385_v7 = vadd.f32 -1.0, %v676_v19  ;;  %v302_v51 = vadd.f32 %v2782_v16, %v232_v61 }
  0xe6   :  { %v1925_v46 = vpop.eup %1924  ;;  %v1645_v1 = vpack.c.bf16 %v993_v39, %v992_v45  ;;  %v871_v18 = vadd.f32 1.0, %v679_v37  ;;  %1940 = vrcp.f32 %v870_v21  ;;  %v1386_v49 = vadd.f32 -1.0, %v677_v17 }
  0xe7   :  { %v1927_v11 = vpop.eup %1926  ;;  %v616_v55 = vadd.f32 1.0, %v1925_v46  ;;  %v303_v52 = vadd.f32 %v2782_v16, %v233_v36  ;;  %v3058_v8 = vadd.f32 0.1, %v302_v51  ;;  %v804_v31 = vmul.f32 %v1385_v7, %v2964_v20 }
  0xe8   :  { %v1929_v25 = vpop.eup %1928  ;;  %1709 = vst [vmem:[%s3122_s5 + $0xb8] sm:$0xff] %v1645_v1   ;;  %1942 = vrcp.f32 %v871_v18  ;;  %v617_v43 = vadd.f32 1.0, %v1927_v11  ;;  %v161_v54 = vsub.f32 %v82_v12, %v2028_v13  ;;  %v805_v19 = vmul.f32 %v1386_v49, %v2969_v62 }
  0xe9   :  { %v1931_v9 = vpop.eup %1930  ;;  %v994_v23 = vmul.f32 %v1929_v25, %v802_v10  ;;  %v680_v28 = vmul.f32 %v616_v55, %v616_v55  ;;  %1944 = vpow2.f32 %v550_v60  ;;  %v3060_v34 = vadd.f32 0.1, %v303_v52 }
  0xea   :  { %v995_v15 = vmul.f32 %v1931_v9, %v803_v26  ;;  %v681_v58 = vmul.f32 %v617_v43, %v617_v43  ;;  %1946 = vpow2.f32 %v552_v24  ;;  %v430_v6 = vmin.f32 %v3058_v8, 20.0 }
  0xeb   :  { %v872_v47 = vadd.f32 1.0, %v680_v28  ;;  %v1933_v4 = vpop.eup %1932  ;;  %v431_v41 = vmin.f32 %v3060_v34, 20.0  ;;  %v1387_v3 = vadd.f32 -1.0, %v678_v22  ;;  %v1388_v35 = vadd.f32 -1.0, %v679_v37 }
  0xec   :  { %v1650_v29 = vpack.c.bf16 %v995_v15, %v994_v23  ;;  %v873_v53 = vadd.f32 1.0, %v681_v58  ;;  %v1935_v17 = vpop.eup %1934  ;;  %v618_v20 = vadd.f32 1.0, %v1933_v4  ;;  %v554_v0 = vmul.f32 1.442695, %v430_v6 }
  0xed   :  { %1948 = vrcp.f32 %v872_v47  ;;  %v619_v57 = vadd.f32 1.0, %v1935_v17  ;;  %v556_v62 = vmul.f32 1.442695, %v431_v41  ;;  %v162_v45 = vsub.f32 %v83_v2, %v2028_v13 }
  0xee   :  { %1710 = vst [vmem:[%s3122_s5 + $0xc0] sm:$0xff] %v1650_v29   ;;  %1950 = vrcp.f32 %v873_v53  ;;  %v682_v14 = vmul.f32 %v618_v20, %v618_v20  ;;  %v234_v33 = vmul.f32 %v2319_v50, %v161_v54  ;;  %v806_v56 = vmul.f32 %v1387_v3, %v2977_v40 }
  0xef   :  { %1952 = vpow2.f32 %v554_v0  ;;  %v683_v32 = vmul.f32 %v619_v57, %v619_v57  ;;  %v235_v39 = vmul.f32 %v2319_v50, %v162_v45  ;;  %v807_v10 = vmul.f32 %v1388_v35, %v2980_v59 }
  0xf0   :  { %v1937_v44 = vpop.eup %1936  ;;  %1954 = vpow2.f32 %v556_v62  ;;  %v874_v61 = vadd.f32 1.0, %v682_v14  ;;  %v304_v21 = vadd.f32 %v2782_v16, %v234_v33  ;;  %v1389_v60 = vadd.f32 -1.0, %v680_v28 }
  0xf1   :  { %v1939_v22 = vpop.eup %1938  ;;  %v996_v48 = vmul.f32 %v1937_v44, %v804_v31  ;;  %v875_v26 = vadd.f32 1.0, %v683_v32  ;;  %v305_v13 = vadd.f32 %v2782_v16, %v235_v39  ;;  %v1390_v18 = vadd.f32 -1.0, %v681_v58 }
  0xf2   :  { %v997_v37 = vmul.f32 %v1939_v22, %v805_v19  ;;  %1956 = vrcp.f32 %v874_v61  ;;  %v3080_v24 = vadd.f32 0.1, %v304_v21  ;;  %v808_v16 = vmul.f32 %v1389_v60, %v2995_v38 }
  0xf3   :  { %v1941_v46 = vpop.eup %1940  ;;  %1958 = vrcp.f32 %v875_v26  ;;  %v3082_v11 = vadd.f32 0.1, %v305_v13  ;;  %v809_v43 = vmul.f32 %v1390_v18, %v2997_v42  ;;  %v1391_v9 = vadd.f32 -1.0, %v682_v14 }
  0xf4   :  { %v1655_v1 = vpack.c.bf16 %v997_v37, %v996_v48  ;;  %v998_v36 = vmul.f32 %v1941_v46, %v806_v56  ;;  %v432_v7 = vmin.f32 %v3080_v24, 20.0  ;;  %v1392_v58 = vadd.f32 -1.0, %v683_v32 }
  0xf5   :  { %v1943_v40 = vpop.eup %1942  ;;  %v433_v25 = vmin.f32 %v3082_v11, 20.0  ;;  %v810_v19 = vmul.f32 %v1391_v9, %v3012_v5 }
  0xf6   :  { %v1945_v50 = vpop.eup %1944  ;;  %1711 = vst [vmem:[%s3122_s5 + $0xc8] sm:$0xff] %v1655_v1   ;;  %v999_v59 = vmul.f32 %v1943_v40, %v807_v10  ;;  %v558_v12 = vmul.f32 1.442695, %v432_v7  ;;  %v811_v2 = vmul.f32 %v1392_v58, %v3018_v63 }
  0xf7   :  { %v1947_v55 = vpop.eup %1946  ;;  %v620_v51 = vadd.f32 1.0, %v1945_v50  ;;  %v560_v28 = vmul.f32 1.442695, %v433_v25 }
  0xf8   :  { %v1660_v49 = vpack.c.bf16 %v999_v59, %v998_v36  ;;  %v621_v52 = vadd.f32 1.0, %v1947_v55  ;;  %1960 = vpow2.f32 %v558_v12 }
  0xf9   :  { %v684_v23 = vmul.f32 %v620_v51, %v620_v51  ;;  %1962 = vpow2.f32 %v560_v28 }
  0xfa   :  { %v1949_v15 = vpop.eup %1948  ;;  %1712 = vst [vmem:[%s3122_s5 + $0xd0] sm:$0xff] %v1660_v49   ;;  %v685_v31 = vmul.f32 %v621_v52, %v621_v52 }
  0xfb   :  { %v1951_v38 = vpop.eup %1950  ;;  %v1000_v47 = vmul.f32 %v1949_v15, %v808_v16  ;;  %v876_v6 = vadd.f32 1.0, %v684_v23  ;;  %v1393_v5 = vadd.f32 -1.0, %v684_v23 }
  0xfc   :  { %v1953_v54 = vpop.eup %1952  ;;  %v1001_v4 = vmul.f32 %v1951_v38, %v809_v43  ;;  %v877_v42 = vadd.f32 1.0, %v685_v31  ;;  %v1394_v44 = vadd.f32 -1.0, %v685_v31 }
  0xfd   :  { %v1955_v29 = vpop.eup %1954  ;;  %1964 = vrcp.f32 %v876_v6  ;;  %v622_v53 = vadd.f32 1.0, %v1953_v54  ;;  %v812_v32 = vmul.f32 %v1393_v5, %v3039_v27 }
  0xfe   :  { %v1665_v41 = vpack.c.bf16 %v1001_v4, %v1000_v47  ;;  %1966 = vrcp.f32 %v877_v42  ;;  %v623_v17 = vadd.f32 1.0, %v1955_v29  ;;  %v813_v48 = vmul.f32 %v1394_v44, %v3041_v30 }
  0xff   :  { %v686_v3 = vmul.f32 %v622_v53, %v622_v53  ;;  %v1957_v20 = vpop.eup %1956 }
 0x100   :  { %1713 = vst [vmem:[%s3122_s5 + $0xd8] sm:$0xff] %v1665_v41   ;;  %v687_v0 = vmul.f32 %v623_v17, %v623_v17  ;;  %v1959_v35 = vpop.eup %1958  ;;  %v1002_v57 = vmul.f32 %v1957_v20, %v810_v19 }
 0x101   :  { %v878_v62 = vadd.f32 1.0, %v686_v3  ;;  %v1003_v14 = vmul.f32 %v1959_v35, %v811_v2  ;;  %v1395_v61 = vadd.f32 -1.0, %v686_v3 }
 0x102   :  { %v879_v45 = vadd.f32 1.0, %v687_v0  ;;  %v1396_v10 = vadd.f32 -1.0, %v687_v0 }
 0x103   :  { %1968 = vrcp.f32 %v878_v62  ;;  %v1670_v33 = vpack.c.bf16 %v1003_v14, %v1002_v57  ;;  %v814_v18 = vmul.f32 %v1395_v61, %v3058_v8 }
 0x104   :  { %1970 = vrcp.f32 %v879_v45  ;;  %v815_v27 = vmul.f32 %v1396_v10, %v3060_v34 }
 0x105   :  { %1714 = vst [vmem:[%s3122_s5 + $0xe0] sm:$0xff] %v1670_v33   ;;  %v1961_v63 = vpop.eup %1960 }
 0x106   :  { %v1963_v22 = vpop.eup %1962  ;;  %v624_v56 = vadd.f32 1.0, %v1961_v63 }
 0x107   :  { %v625_v39 = vadd.f32 1.0, %v1963_v22 }
 0x108   :  { %v688_v26 = vmul.f32 %v624_v56, %v624_v56 }
 0x109   :  { %v689_v13 = vmul.f32 %v625_v39, %v625_v39 }
 0x10a   :  { %v1965_v37 = vpop.eup %1964  ;;  %v880_v1 = vadd.f32 1.0, %v688_v26  ;;  %v1397_v16 = vadd.f32 -1.0, %v688_v26 }
 0x10b   :  { %v1967_v21 = vpop.eup %1966  ;;  %v1004_v60 = vmul.f32 %v1965_v37, %v812_v32  ;;  %v881_v40 = vadd.f32 1.0, %v689_v13  ;;  %v1398_v51 = vadd.f32 -1.0, %v689_v13 }
 0x10c   :  { %v1005_v46 = vmul.f32 %v1967_v21, %v813_v48  ;;  %1972 = vrcp.f32 %v880_v1  ;;  %v816_v8 = vmul.f32 %v1397_v16, %v3080_v24 }
 0x10d   :  { %1974 = vrcp.f32 %v881_v40  ;;  %v817_v34 = vmul.f32 %v1398_v51, %v3082_v11 }
 0x10e   :  { %v1675_v36 = vpack.c.bf16 %v1005_v46, %v1004_v60 }
 0x110   :  { %v1969_v30 = vpop.eup %1968  ;;  %1715 = vst [vmem:[%s3122_s5 + $0xe8] sm:$0xff] %v1675_v36  }
 0x111   :  { %v1971_v50 = vpop.eup %1970  ;;  %v1006_v59 = vmul.f32 %v1969_v30, %v814_v18 }
 0x112   :  { %v1007_v7 = vmul.f32 %v1971_v50, %v815_v27 }
 0x114   :  { %v1680_v55 = vpack.c.bf16 %v1007_v7, %v1006_v59 }
 0x116   :  { %1716 = vst [vmem:[%s3122_s5 + $0xf0] sm:$0xff] %v1680_v55  }
 0x119   :  { %v1973_v25 = vpop.eup %1972 }
 0x11a   :  { %v1975_v49 = vpop.eup %1974  ;;  %v1008_v43 = vmul.f32 %v1973_v25, %v816_v8 }
 0x11b   :  { %v1009_v52 = vmul.f32 %v1975_v49, %v817_v34 }
 0x11d   :  { %v1685_v12 = vpack.c.bf16 %v1009_v52, %v1008_v43 }
 0x11f   :  { %1717 = vst [vmem:[%s3122_s5 + $0xf8] sm:$0xff] %v1685_v12  }

// kernel: a_call__.6
= control target key start
LH: loop header
LB: loop body
LE: loop exit
PB: predicated region body
PF: predicated region fallthrough
CT: control target
= control target key end

     0   :  { %vm255_vm0 = vcmask 261120   ;;  %v1138_v35 = vmov 0.0   ;;  %s1700_s1 = inlined_call_operand.vmem [shape: bf16[32,128], index: 1, kind: input, shape index: {}]   ;;  %s1701_s0 = inlined_call_operand.vmem [shape: bf16[512,32], index: 0, kind: input, shape index: {}]   ;;  %s1702_s2 = inlined_call_operand.vmem [shape: f32[512,128], index: 2, kind: output, shape index: {0}]   ;;  %s1703_s3 = inlined_call_operand.vmem [shape: f32[1,128], index: 3, kind: output, shape index: {1}]   ;;  %s1704_s4 = inlined_call_operand.vmem [shape: f32[1,128], index: 4, kind: output, shape index: {2}]  }
   0x1   :  { %v1104_v0 = vld [vmem:[%s1700_s1 + $0x8] sm:$0xff]   ;;  %v1105_v1 = vld [vmem:[%s1700_s1] sm:$0xff]   ;;  %v1108_v4 = vld [vmem:[%s1701_s0 + $0x10] sm:$0xff]   ;;  %709 = vst [vmem:[%s1703_s3] sm:$0x1] %v1138_v35 }
   0x2   :  { %1031 = vmatprep.subr.bf16.mxu0 %v1104_v0  ;;  %v1106_v2 = vld [vmem:[%s1701_s0] sm:$0xff]   ;;  %1099 = vmatprep.subr.bf16.mxu1 %v1104_v0  ;;  %v1107_v3 = vld [vmem:[%s1701_s0 + $0x8] sm:$0xff]   ;;  %v1109_v5 = vld [vmem:[%s1701_s0 + $0x18] sm:$0xff]   ;;  %710 = vst [vmem:[%s1704_s4] sm:$0x1] %v1138_v35 }
   0x3   :  { %1032 = vmatpush3.bf16.msra.mxu0 %v1104_v0  ;;  %1101 = vmatpush3.bf16.msra.mxu1 %v1104_v0  ;;  %v1110_v6 = vld [vmem:[%s1701_s0 + $0x20] sm:$0xff]   ;;  %v1123_v8 = vld [vmem:[%s1701_s0 + $0x88] sm:$0xff]   ;;  %v1124_v9 = vld [vmem:[%s1701_s0 + $0x90] sm:$0xff]  }
   0x4   :  { %1033 = vmatprep.subr.bf16.mxu0 %v1105_v1  ;;  %1035 = vmatprep.mubr.msk.bf16.mxu0 %vm255_vm0, %v1106_v2  ;;  %v1122_v7 = vld [vmem:[%s1701_s0 + $0x80] sm:$0xff]   ;;  %v1111_v10 = vld [vmem:[%s1701_s0 + $0x28] sm:$0xff]   ;;  %v1112_v11 = vld [vmem:[%s1701_s0 + $0x30] sm:$0xff]  }
   0x5   :  { %1100 = vmatprep.subr.bf16.mxu1 %v1105_v1  ;;  %1067 = vmatprep.mubr.msk.bf16.mxu1 %vm255_vm0, %v1122_v7  ;;  %v1125_v12 = vld [vmem:[%s1701_s0 + $0x98] sm:$0xff]   ;;  %v1126_v13 = vld [vmem:[%s1701_s0 + $0xa0] sm:$0xff]   ;;  %v1127_v16 = vld [vmem:[%s1701_s0 + $0xa8] sm:$0xff]  }
   0x6   :  { %v1113_v14 = vld [vmem:[%s1701_s0 + $0x38] sm:$0xff]   ;;  %v1114_v15 = vld [vmem:[%s1701_s0 + $0x40] sm:$0xff]   ;;  %v1128_v17 = vld [vmem:[%s1701_s0 + $0xb0] sm:$0xff]  }
   0x7   :  { %1034 = vmatpush3.bf16.msra.mxu0 %v1105_v1  ;;  %1102 = vmatpush3.bf16.msra.mxu1 %v1105_v1  ;;  %v1115_v18 = vld [vmem:[%s1701_s0 + $0x48] sm:$0xff]   ;;  %v1116_v19 = vld [vmem:[%s1701_s0 + $0x50] sm:$0xff]   ;;  %v1129_v20 = vld [vmem:[%s1701_s0 + $0xb8] sm:$0xff]  }
   0x8   :  { %v1130_v21 = vld [vmem:[%s1701_s0 + $0xc0] sm:$0xff]   ;;  %v1117_v22 = vld [vmem:[%s1701_s0 + $0x58] sm:$0xff]   ;;  %v1131_v24 = vld [vmem:[%s1701_s0 + $0xc8] sm:$0xff]  }
   0x9   :  { %v1118_v23 = vld [vmem:[%s1701_s0 + $0x60] sm:$0xff]   ;;  %v1132_v25 = vld [vmem:[%s1701_s0 + $0xd0] sm:$0xff]   ;;  %v1119_v26 = vld [vmem:[%s1701_s0 + $0x68] sm:$0xff]  }
   0xa   :  { %1036 = vmatmul.mubr.msk.bf16.vlgmr.msra.gmra.mxu0 %vm255_vm0, %v1107_v3  ;;  %1068 = vmatmul.mubr.msk.bf16.vlgmr.msra.gmra.mxu1 %vm255_vm0, %v1123_v8  ;;  %v1120_v27 = vld [vmem:[%s1701_s0 + $0x70] sm:$0xff]   ;;  %v1133_v28 = vld [vmem:[%s1701_s0 + $0xd8] sm:$0xff]   ;;  %v1134_v29 = vld [vmem:[%s1701_s0 + $0xe0] sm:$0xff]  }
   0xb   :  { %1039 = vmatprep.mubr.msk.bf16.mxu0 %vm255_vm0, %v1108_v4  ;;  %1071 = vmatprep.mubr.msk.bf16.mxu1 %vm255_vm0, %v1124_v9  ;;  %v1121_v30 = vld [vmem:[%s1701_s0 + $0x78] sm:$0xff]   ;;  %v1135_v31 = vld [vmem:[%s1701_s0 + $0xe8] sm:$0xff]   ;;  %v1136_v32 = vld [vmem:[%s1701_s0 + $0xf0] sm:$0xff]  }
   0xc   :  { %v1137_v33 = vld [vmem:[%s1701_s0 + $0xf8] sm:$0xff]  }
  0x12   :  { %1040 = vmatmul.mubr.msk.bf16.gmra.mxu0 %vm255_vm0, %v1109_v5  ;;  %1072 = vmatmul.mubr.msk.bf16.gmra.mxu1 %vm255_vm0, %v1125_v12 }
  0x13   :  { %1043 = vmatprep.mubr.msk.bf16.mxu0 %vm255_vm0, %v1110_v6  ;;  %1075 = vmatprep.mubr.msk.bf16.mxu1 %vm255_vm0, %v1126_v13 }
  0x1a   :  { %1044 = vmatmul.mubr.msk.bf16.gmra.mxu0 %vm255_vm0, %v1111_v10  ;;  %1076 = vmatmul.mubr.msk.bf16.gmra.mxu1 %vm255_vm0, %v1127_v16 }
  0x1b   :  { %1047 = vmatprep.mubr.msk.bf16.mxu0 %vm255_vm0, %v1112_v11  ;;  %1079 = vmatprep.mubr.msk.bf16.mxu1 %vm255_vm0, %v1128_v17 }
  0x22   :  { %1048 = vmatmul.mubr.msk.bf16.gmra.mxu0 %vm255_vm0, %v1113_v14  ;;  %1080 = vmatmul.mubr.msk.bf16.gmra.mxu1 %vm255_vm0, %v1129_v20 }
  0x23   :  { %1051 = vmatprep.mubr.msk.bf16.mxu0 %vm255_vm0, %v1114_v15  ;;  %1083 = vmatprep.mubr.msk.bf16.mxu1 %vm255_vm0, %v1130_v21 }
  0x2a   :  { %1052 = vmatmul.mubr.msk.bf16.gmra.mxu0 %vm255_vm0, %v1115_v18  ;;  %1084 = vmatmul.mubr.msk.bf16.gmra.mxu1 %vm255_vm0, %v1131_v24 }
  0x2b   :  { %1055 = vmatprep.mubr.msk.bf16.mxu0 %vm255_vm0, %v1116_v19  ;;  %1087 = vmatprep.mubr.msk.bf16.mxu1 %vm255_vm0, %v1132_v25 }
  0x32   :  { %1056 = vmatmul.mubr.msk.bf16.gmra.mxu0 %vm255_vm0, %v1117_v22  ;;  %1088 = vmatmul.mubr.msk.bf16.gmra.mxu1 %vm255_vm0, %v1133_v28 }
  0x33   :  { %1059 = vmatprep.mubr.msk.bf16.mxu0 %vm255_vm0, %v1118_v23  ;;  %1091 = vmatprep.mubr.msk.bf16.mxu1 %vm255_vm0, %v1134_v29 }
  0x3a   :  { %1060 = vmatmul.mubr.msk.bf16.gmra.mxu0 %vm255_vm0, %v1119_v26  ;;  %1092 = vmatmul.mubr.msk.bf16.gmra.mxu1 %vm255_vm0, %v1135_v31 }
  0x3b   :  { %1063 = vmatprep.mubr.msk.bf16.mxu0 %vm255_vm0, %v1120_v27  ;;  %1095 = vmatprep.mubr.msk.bf16.mxu1 %vm255_vm0, %v1136_v32 }
  0x42   :  { %1064 = vmatmul.mubr.msk.bf16.gmra.mxu0 %vm255_vm0, %v1121_v30  ;;  %1096 = vmatmul.mubr.msk.bf16.gmra.mxu1 %vm255_vm0, %v1137_v33 }
  0xca   :  { %v1037_v34 = vpop.f32.mrf.mxu0  ;;  %v1322_v50 = vpop.f32.mrf.mxu1 }
  0xcb   :  { %643 = vst [vmem:[%s1702_s2 + $0x10] sm:$0xff] %v1037_v34  ;;  %v786_v43 = vmul.f32 %v1037_v34, %v1037_v34  ;;  %675 = vst [vmem:[%s1702_s2 + $0x110] sm:$0xff] %v1322_v50 }
  0xcc   :  { %v386_v36 = vpop.f32.mrf.mxu0  ;;  %v1331_v55 = vpop.f32.mrf.mxu1 }
  0xcd   :  { %641 = vst [vmem:[%s1702_s2] sm:$0xff] %v386_v36  ;;  %v784_v39 = vmul.f32 %v386_v36, %v386_v36  ;;  %673 = vst [vmem:[%s1702_s2 + $0x100] sm:$0xff] %v1331_v55 }
  0xce   :  { %v1038_v37 = vpop.f32.mrf.mxu0  ;;  %v1340_v60 = vpop.f32.mrf.mxu1 }
  0xcf   :  { %644 = vst [vmem:[%s1702_s2 + $0x18] sm:$0xff] %v1038_v37  ;;  %v787_v47 = vmul.f32 %v1038_v37, %v1038_v37  ;;  %676 = vst [vmem:[%s1702_s2 + $0x118] sm:$0xff] %v1340_v60 }
  0xd0   :  { %v389_v38 = vpop.f32.mrf.mxu0  ;;  %v1349_v1 = vpop.f32.mrf.mxu1 }
  0xd1   :  { %642 = vst [vmem:[%s1702_s2 + $0x8] sm:$0xff] %v389_v38  ;;  %v712_v40 = vadd.f32 %v389_v38, %v386_v36  ;;  %v785_v41 = vmul.f32 %v389_v38, %v389_v38  ;;  %674 = vst [vmem:[%s1702_s2 + $0x108] sm:$0xff] %v1349_v1 }
  0xd2   :  { %v1041_v42 = vpop.f32.mrf.mxu0  ;;  %v1358_v6 = vpop.f32.mrf.mxu1 }
  0xd3   :  { %v713_v44 = vadd.f32 %v1037_v34, %v712_v40  ;;  %v848_v45 = vadd.f32 %v785_v41, %v784_v39  ;;  %647 = vst [vmem:[%s1702_s2 + $0x30] sm:$0xff] %v1041_v42  ;;  %v790_v62 = vmul.f32 %v1041_v42, %v1041_v42  ;;  %679 = vst [vmem:[%s1702_s2 + $0x130] sm:$0xff] %v1358_v6 }
  0xd4   :  { %v402_v46 = vpop.f32.mrf.mxu0  ;;  %v1367_v11 = vpop.f32.mrf.mxu1 }
  0xd5   :  { %v849_v48 = vadd.f32 %v848_v45, %v786_v43  ;;  %645 = vst [vmem:[%s1702_s2 + $0x20] sm:$0xff] %v402_v46  ;;  %v714_v49 = vadd.f32 %v1038_v37, %v713_v44  ;;  %v788_v53 = vmul.f32 %v402_v46, %v402_v46  ;;  %677 = vst [vmem:[%s1702_s2 + $0x120] sm:$0xff] %v1367_v11 }
  0xd6   :  { %v1042_v51 = vpop.f32.mrf.mxu0  ;;  %v1376_v16 = vpop.f32.mrf.mxu1 }
  0xd7   :  { %v715_v52 = vadd.f32 %v714_v49, %v402_v46  ;;  %v850_v54 = vadd.f32 %v849_v48, %v787_v47  ;;  %648 = vst [vmem:[%s1702_s2 + $0x38] sm:$0xff] %v1042_v51  ;;  %v791_v3 = vmul.f32 %v1042_v51, %v1042_v51  ;;  %680 = vst [vmem:[%s1702_s2 + $0x138] sm:$0xff] %v1376_v16 }
  0xd8   :  { %v405_v56 = vpop.f32.mrf.mxu0  ;;  %v1385_v21 = vpop.f32.mrf.mxu1 }
  0xd9   :  { %v851_v57 = vadd.f32 %v850_v54, %v788_v53  ;;  %646 = vst [vmem:[%s1702_s2 + $0x28] sm:$0xff] %v405_v56  ;;  %v716_v58 = vadd.f32 %v715_v52, %v405_v56  ;;  %v789_v59 = vmul.f32 %v405_v56, %v405_v56  ;;  %678 = vst [vmem:[%s1702_s2 + $0x128] sm:$0xff] %v1385_v21 }
  0xda   :  { %v1045_v61 = vpop.f32.mrf.mxu0  ;;  %v1394_v26 = vpop.f32.mrf.mxu1 }
  0xdb   :  { %v717_v63 = vadd.f32 %v1041_v42, %v716_v58  ;;  %v852_v0 = vadd.f32 %v851_v57, %v789_v59  ;;  %651 = vst [vmem:[%s1702_s2 + $0x50] sm:$0xff] %v1045_v61  ;;  %v794_v18 = vmul.f32 %v1045_v61, %v1045_v61  ;;  %683 = vst [vmem:[%s1702_s2 + $0x150] sm:$0xff] %v1394_v26 }
  0xdc   :  { %v418_v2 = vpop.f32.mrf.mxu0  ;;  %v1403_v31 = vpop.f32.mrf.mxu1 }
  0xdd   :  { %v853_v4 = vadd.f32 %v852_v0, %v790_v62  ;;  %649 = vst [vmem:[%s1702_s2 + $0x40] sm:$0xff] %v418_v2  ;;  %v718_v5 = vadd.f32 %v1042_v51, %v717_v63  ;;  %v792_v9 = vmul.f32 %v418_v2, %v418_v2  ;;  %681 = vst [vmem:[%s1702_s2 + $0x140] sm:$0xff] %v1403_v31 }
  0xde   :  { %v1046_v7 = vpop.f32.mrf.mxu0  ;;  %v1412_v36 = vpop.f32.mrf.mxu1 }
  0xdf   :  { %v719_v8 = vadd.f32 %v718_v5, %v418_v2  ;;  %v854_v10 = vadd.f32 %v853_v4, %v791_v3  ;;  %652 = vst [vmem:[%s1702_s2 + $0x58] sm:$0xff] %v1046_v7  ;;  %v795_v23 = vmul.f32 %v1046_v7, %v1046_v7  ;;  %684 = vst [vmem:[%s1702_s2 + $0x158] sm:$0xff] %v1412_v36 }
  0xe0   :  { %v421_v12 = vpop.f32.mrf.mxu0  ;;  %v1421_v41 = vpop.f32.mrf.mxu1 }
  0xe1   :  { %v855_v13 = vadd.f32 %v854_v10, %v792_v9  ;;  %650 = vst [vmem:[%s1702_s2 + $0x48] sm:$0xff] %v421_v12  ;;  %v720_v14 = vadd.f32 %v719_v8, %v421_v12  ;;  %v793_v15 = vmul.f32 %v421_v12, %v421_v12  ;;  %682 = vst [vmem:[%s1702_s2 + $0x148] sm:$0xff] %v1421_v41 }
  0xe2   :  { %v1049_v17 = vpop.f32.mrf.mxu0  ;;  %v1430_v46 = vpop.f32.mrf.mxu1 }
  0xe3   :  { %v721_v19 = vadd.f32 %v1045_v61, %v720_v14  ;;  %v856_v20 = vadd.f32 %v855_v13, %v793_v15  ;;  %655 = vst [vmem:[%s1702_s2 + $0x70] sm:$0xff] %v1049_v17  ;;  %v798_v38 = vmul.f32 %v1049_v17, %v1049_v17  ;;  %687 = vst [vmem:[%s1702_s2 + $0x170] sm:$0xff] %v1430_v46 }
  0xe4   :  { %v434_v22 = vpop.f32.mrf.mxu0  ;;  %v1439_v52 = vpop.f32.mrf.mxu1 }
  0xe5   :  { %v857_v24 = vadd.f32 %v856_v20, %v794_v18  ;;  %653 = vst [vmem:[%s1702_s2 + $0x60] sm:$0xff] %v434_v22  ;;  %v722_v25 = vadd.f32 %v1046_v7, %v721_v19  ;;  %v796_v29 = vmul.f32 %v434_v22, %v434_v22  ;;  %685 = vst [vmem:[%s1702_s2 + $0x160] sm:$0xff] %v1439_v52 }
  0xe6   :  { %v1050_v27 = vpop.f32.mrf.mxu0  ;;  %v1448_v58 = vpop.f32.mrf.mxu1 }
  0xe7   :  { %v723_v28 = vadd.f32 %v722_v25, %v434_v22  ;;  %v858_v30 = vadd.f32 %v857_v24, %v795_v23  ;;  %656 = vst [vmem:[%s1702_s2 + $0x78] sm:$0xff] %v1050_v27  ;;  %v799_v43 = vmul.f32 %v1050_v27, %v1050_v27  ;;  %688 = vst [vmem:[%s1702_s2 + $0x178] sm:$0xff] %v1448_v58 }
  0xe8   :  { %v437_v32 = vpop.f32.mrf.mxu0  ;;  %v1457_v0 = vpop.f32.mrf.mxu1 }
  0xe9   :  { %v859_v33 = vadd.f32 %v858_v30, %v796_v29  ;;  %654 = vst [vmem:[%s1702_s2 + $0x68] sm:$0xff] %v437_v32  ;;  %v724_v34 = vadd.f32 %v723_v28, %v437_v32  ;;  %v797_v35 = vmul.f32 %v437_v32, %v437_v32  ;;  %686 = vst [vmem:[%s1702_s2 + $0x168] sm:$0xff] %v1457_v0 }
  0xea   :  { %v1053_v37 = vpop.f32.mrf.mxu0  ;;  %v1466_v7 = vpop.f32.mrf.mxu1 }
  0xeb   :  { %v725_v39 = vadd.f32 %v1049_v17, %v724_v34  ;;  %v860_v40 = vadd.f32 %v859_v33, %v797_v35  ;;  %659 = vst [vmem:[%s1702_s2 + $0x90] sm:$0xff] %v1053_v37  ;;  %v802_v61 = vmul.f32 %v1053_v37, %v1053_v37  ;;  %691 = vst [vmem:[%s1702_s2 + $0x190] sm:$0xff] %v1466_v7 }
  0xec   :  { %v450_v42 = vpop.f32.mrf.mxu0  ;;  %v1475_v13 = vpop.f32.mrf.mxu1 }
  0xed   :  { %v861_v44 = vadd.f32 %v860_v40, %v798_v38  ;;  %657 = vst [vmem:[%s1702_s2 + $0x80] sm:$0xff] %v450_v42  ;;  %v726_v45 = vadd.f32 %v1050_v27, %v725_v39  ;;  %v800_v49 = vmul.f32 %v450_v42, %v450_v42  ;;  %689 = vst [vmem:[%s1702_s2 + $0x180] sm:$0xff] %v1475_v13 }
  0xee   :  { %v1054_v47 = vpop.f32.mrf.mxu0  ;;  %v1484_v19 = vpop.f32.mrf.mxu1 }
  0xef   :  { %v727_v48 = vadd.f32 %v726_v45, %v450_v42  ;;  %v862_v51 = vadd.f32 %v861_v44, %v799_v43  ;;  %660 = vst [vmem:[%s1702_s2 + $0x98] sm:$0xff] %v1054_v47  ;;  %v803_v3 = vmul.f32 %v1054_v47, %v1054_v47  ;;  %692 = vst [vmem:[%s1702_s2 + $0x198] sm:$0xff] %v1484_v19 }
  0xf0   :  { %v453_v53 = vpop.f32.mrf.mxu0  ;;  %v1493_v25 = vpop.f32.mrf.mxu1 }
  0xf1   :  { %v863_v54 = vadd.f32 %v862_v51, %v800_v49  ;;  %658 = vst [vmem:[%s1702_s2 + $0x88] sm:$0xff] %v453_v53  ;;  %v728_v56 = vadd.f32 %v727_v48, %v453_v53  ;;  %v801_v57 = vmul.f32 %v453_v53, %v453_v53  ;;  %690 = vst [vmem:[%s1702_s2 + $0x188] sm:$0xff] %v1493_v25 }
  0xf2   :  { %v1057_v59 = vpop.f32.mrf.mxu0  ;;  %v1502_v32 = vpop.f32.mrf.mxu1 }
  0xf3   :  { %v729_v62 = vadd.f32 %v1053_v37, %v728_v56  ;;  %v864_v63 = vadd.f32 %v863_v54, %v801_v57  ;;  %663 = vst [vmem:[%s1702_s2 + $0xb0] sm:$0xff] %v1057_v59  ;;  %v806_v22 = vmul.f32 %v1057_v59, %v1057_v59  ;;  %695 = vst [vmem:[%s1702_s2 + $0x1b0] sm:$0xff] %v1502_v32 }
  0xf4   :  { %v466_v2 = vpop.f32.mrf.mxu0  ;;  %v1511_v38 = vpop.f32.mrf.mxu1 }
  0xf5   :  { %v865_v4 = vadd.f32 %v864_v63, %v802_v61  ;;  %661 = vst [vmem:[%s1702_s2 + $0xa0] sm:$0xff] %v466_v2  ;;  %v730_v5 = vadd.f32 %v1054_v47, %v729_v62  ;;  %v804_v10 = vmul.f32 %v466_v2, %v466_v2  ;;  %693 = vst [vmem:[%s1702_s2 + $0x1a0] sm:$0xff] %v1511_v38 }
  0xf6   :  { %v1058_v8 = vpop.f32.mrf.mxu0  ;;  %v1520_v44 = vpop.f32.mrf.mxu1 }
  0xf7   :  { %v731_v9 = vadd.f32 %v730_v5, %v466_v2  ;;  %v866_v12 = vadd.f32 %v865_v4, %v803_v3  ;;  %664 = vst [vmem:[%s1702_s2 + $0xb8] sm:$0xff] %v1058_v8  ;;  %v807_v28 = vmul.f32 %v1058_v8, %v1058_v8  ;;  %696 = vst [vmem:[%s1702_s2 + $0x1b8] sm:$0xff] %v1520_v44 }
  0xf8   :  { %v469_v14 = vpop.f32.mrf.mxu0  ;;  %v1529_v51 = vpop.f32.mrf.mxu1 }
  0xf9   :  { %v867_v15 = vadd.f32 %v866_v12, %v804_v10  ;;  %662 = vst [vmem:[%s1702_s2 + $0xa8] sm:$0xff] %v469_v14  ;;  %v732_v17 = vadd.f32 %v731_v9, %v469_v14  ;;  %v805_v18 = vmul.f32 %v469_v14, %v469_v14  ;;  %694 = vst [vmem:[%s1702_s2 + $0x1a8] sm:$0xff] %v1529_v51 }
  0xfa   :  { %v1061_v20 = vpop.f32.mrf.mxu0 }
  0xfb   :  { %v733_v23 = vadd.f32 %v1057_v59, %v732_v17  ;;  %v868_v24 = vadd.f32 %v867_v15, %v805_v18  ;;  %667 = vst [vmem:[%s1702_s2 + $0xd0] sm:$0xff] %v1061_v20  ;;  %v810_v47 = vmul.f32 %v1061_v20, %v1061_v20  ;;  %v1538_v59 = vpop.f32.mrf.mxu1 }
  0xfc   :  { %v482_v27 = vpop.f32.mrf.mxu0  ;;  %699 = vst [vmem:[%s1702_s2 + $0x1d0] sm:$0xff] %v1538_v59 }
  0xfd   :  { %v869_v29 = vadd.f32 %v868_v24, %v806_v22  ;;  %665 = vst [vmem:[%s1702_s2 + $0xc0] sm:$0xff] %v482_v27  ;;  %v734_v30 = vadd.f32 %v1058_v8, %v733_v23  ;;  %v808_v35 = vmul.f32 %v482_v27, %v482_v27  ;;  %v1547_v3 = vpop.f32.mrf.mxu1  ;;  %v816_v24 = vmul.f32 %v1331_v55, %v1331_v55 }
  0xfe   :  { %v1062_v33 = vpop.f32.mrf.mxu0  ;;  %697 = vst [vmem:[%s1702_s2 + $0x1c0] sm:$0xff] %v1547_v3 }
  0xff   :  { %v735_v34 = vadd.f32 %v734_v30, %v482_v27  ;;  %v870_v37 = vadd.f32 %v869_v29, %v807_v28  ;;  %668 = vst [vmem:[%s1702_s2 + $0xd8] sm:$0xff] %v1062_v33  ;;  %v811_v54 = vmul.f32 %v1062_v33, %v1062_v33  ;;  %v1556_v10 = vpop.f32.mrf.mxu1 }
 0x100   :  { %v485_v39 = vpop.f32.mrf.mxu0  ;;  %700 = vst [vmem:[%s1702_s2 + $0x1d8] sm:$0xff] %v1556_v10 }
 0x101   :  { %v871_v40 = vadd.f32 %v870_v37, %v808_v35  ;;  %666 = vst [vmem:[%s1702_s2 + $0xc8] sm:$0xff] %v485_v39  ;;  %v736_v42 = vadd.f32 %v735_v34, %v485_v39  ;;  %v809_v43 = vmul.f32 %v485_v39, %v485_v39  ;;  %v1562_v17 = vpop.f32.mrf.mxu1 }
 0x102   :  { %v1065_v45 = vpop.f32.mrf.mxu0  ;;  %698 = vst [vmem:[%s1702_s2 + $0x1c8] sm:$0xff] %v1562_v17 }
 0x103   :  { %v737_v48 = vadd.f32 %v1061_v20, %v736_v42  ;;  %v872_v49 = vadd.f32 %v871_v40, %v809_v43  ;;  %671 = vst [vmem:[%s1702_s2 + $0xf0] sm:$0xff] %v1065_v45  ;;  %v814_v12 = vmul.f32 %v1065_v45, %v1065_v45  ;;  %v1568_v23 = vpop.f32.mrf.mxu1 }
 0x104   :  { %v498_v53 = vpop.f32.mrf.mxu0  ;;  %703 = vst [vmem:[%s1702_s2 + $0x1f0] sm:$0xff] %v1568_v23 }
 0x105   :  { %v873_v56 = vadd.f32 %v872_v49, %v810_v47  ;;  %669 = vst [vmem:[%s1702_s2 + $0xe0] sm:$0xff] %v498_v53  ;;  %v738_v57 = vadd.f32 %v1062_v33, %v737_v48  ;;  %v812_v63 = vmul.f32 %v498_v53, %v498_v53  ;;  %v1577_v29 = vpop.f32.mrf.mxu1  ;;  %v817_v33 = vmul.f32 %v1349_v1, %v1349_v1 }
 0x106   :  { %v1066_v61 = vpop.f32.mrf.mxu0  ;;  %701 = vst [vmem:[%s1702_s2 + $0x1e0] sm:$0xff] %v1577_v29  ;;  %v820_v47 = vmul.f32 %v1367_v11, %v1367_v11 }
 0x107   :  { %v739_v62 = vadd.f32 %v738_v57, %v498_v53  ;;  %v874_v2 = vadd.f32 %v873_v56, %v811_v54  ;;  %672 = vst [vmem:[%s1702_s2 + $0xf8] sm:$0xff] %v1066_v61  ;;  %v815_v18 = vmul.f32 %v1066_v61, %v1066_v61  ;;  %v1586_v35 = vpop.f32.mrf.mxu1  ;;  %v821_v53 = vmul.f32 %v1385_v21, %v1385_v21 }
 0x108   :  { %v501_v4 = vpop.f32.mrf.mxu0  ;;  %704 = vst [vmem:[%s1702_s2 + $0x1f8] sm:$0xff] %v1586_v35  ;;  %v822_v54 = vmul.f32 %v1358_v6, %v1358_v6 }
 0x109   :  { %v875_v5 = vadd.f32 %v874_v2, %v812_v63  ;;  %670 = vst [vmem:[%s1702_s2 + $0xe8] sm:$0xff] %v501_v4  ;;  %v740_v8 = vadd.f32 %v739_v62, %v501_v4  ;;  %v813_v9 = vmul.f32 %v501_v4, %v501_v4  ;;  %v1595_v40 = vpop.f32.mrf.mxu1  ;;  %v824_v63 = vmul.f32 %v1403_v31, %v1403_v31 }
 0x10a   :  { %702 = vst [vmem:[%s1702_s2 + $0x1e8] sm:$0xff] %v1595_v40 }
 0x10b   :  { %v741_v14 = vadd.f32 %v1065_v45, %v740_v8  ;;  %v876_v15 = vadd.f32 %v875_v5, %v813_v9  ;;  %v825_v5 = vmul.f32 %v1421_v41, %v1421_v41 }
 0x10d   :  { %v742_v20 = vadd.f32 %v1066_v61, %v741_v14  ;;  %v877_v22 = vadd.f32 %v876_v15, %v814_v12  ;;  %v828_v15 = vmul.f32 %v1439_v52, %v1439_v52 }
 0x10f   :  { %v878_v27 = vadd.f32 %v877_v22, %v815_v18  ;;  %v743_v28 = vadd.f32 %v742_v20, %v1331_v55  ;;  %v818_v55 = vmul.f32 %v1322_v50, %v1322_v50  ;;  %v829_v22 = vmul.f32 %v1457_v0, %v1457_v0 }
 0x111   :  { %v744_v30 = vadd.f32 %v743_v28, %v1349_v1  ;;  %v879_v34 = vadd.f32 %v878_v27, %v816_v24  ;;  %v819_v1 = vmul.f32 %v1340_v60, %v1340_v60 }
 0x113   :  { %v745_v37 = vadd.f32 %v1322_v50, %v744_v30  ;;  %v880_v39 = vadd.f32 %v879_v34, %v817_v33  ;;  %v832_v33 = vmul.f32 %v1475_v13, %v1475_v13 }
 0x115   :  { %v881_v42 = vadd.f32 %v880_v39, %v818_v55  ;;  %v746_v43 = vadd.f32 %v1340_v60, %v745_v37  ;;  %v823_v60 = vmul.f32 %v1376_v16, %v1376_v16  ;;  %v833_v37 = vmul.f32 %v1493_v25, %v1493_v25 }
 0x117   :  { %v747_v45 = vadd.f32 %v746_v43, %v1367_v11  ;;  %v882_v50 = vadd.f32 %v881_v42, %v819_v1 }
 0x119   :  { %v883_v48 = vadd.f32 %v882_v50, %v820_v47  ;;  %v748_v49 = vadd.f32 %v747_v45, %v1385_v21  ;;  %v836_v45 = vmul.f32 %v1511_v38, %v1511_v38 }
 0x11b   :  { %v749_v56 = vadd.f32 %v1358_v6, %v748_v49  ;;  %v884_v57 = vadd.f32 %v883_v48, %v821_v53  ;;  %v826_v6 = vmul.f32 %v1394_v26, %v1394_v26  ;;  %v837_v48 = vmul.f32 %v1529_v51, %v1529_v51 }
 0x11d   :  { %v885_v61 = vadd.f32 %v884_v57, %v822_v54  ;;  %v750_v62 = vadd.f32 %v1376_v16, %v749_v56  ;;  %v827_v16 = vmul.f32 %v1412_v36, %v1412_v36  ;;  %v840_v57 = vmul.f32 %v1547_v3, %v1547_v3 }
 0x11f   :  { %v751_v11 = vadd.f32 %v750_v62, %v1403_v31  ;;  %v886_v2 = vadd.f32 %v885_v61, %v823_v60  ;;  %v841_v62 = vmul.f32 %v1562_v17, %v1562_v17 }
 0x121   :  { %v887_v4 = vadd.f32 %v886_v2, %v824_v63  ;;  %v752_v21 = vadd.f32 %v751_v11, %v1421_v41 }
 0x123   :  { %v753_v8 = vadd.f32 %v1394_v26, %v752_v21  ;;  %v888_v9 = vadd.f32 %v887_v4, %v825_v5  ;;  %v830_v26 = vmul.f32 %v1430_v46, %v1430_v46  ;;  %v844_v21 = vmul.f32 %v1577_v29, %v1577_v29 }
 0x125   :  { %v889_v12 = vadd.f32 %v888_v9, %v826_v6  ;;  %v754_v14 = vadd.f32 %v1412_v36, %v753_v8  ;;  %v831_v36 = vmul.f32 %v1448_v58, %v1448_v58  ;;  %v845_v8 = vmul.f32 %v1595_v40, %v1595_v40 }
 0x127   :  { %v755_v31 = vadd.f32 %v754_v14, %v1439_v52  ;;  %v890_v18 = vadd.f32 %v889_v12, %v827_v16 }
 0x129   :  { %v891_v20 = vadd.f32 %v890_v18, %v828_v15  ;;  %v756_v41 = vadd.f32 %v755_v31, %v1457_v0 }
 0x12b   :  { %v757_v24 = vadd.f32 %v1430_v46, %v756_v41  ;;  %v892_v27 = vadd.f32 %v891_v20, %v829_v22  ;;  %v834_v46 = vmul.f32 %v1466_v7, %v1466_v7 }
 0x12d   :  { %v893_v28 = vadd.f32 %v892_v27, %v830_v26  ;;  %v758_v30 = vadd.f32 %v1448_v58, %v757_v24  ;;  %v835_v58 = vmul.f32 %v1484_v19, %v1484_v19 }
 0x12f   :  { %v759_v52 = vadd.f32 %v758_v30, %v1475_v13  ;;  %v894_v34 = vadd.f32 %v893_v28, %v831_v36 }
 0x131   :  { %v895_v55 = vadd.f32 %v894_v34, %v832_v33  ;;  %v760_v0 = vadd.f32 %v759_v52, %v1493_v25 }
 0x133   :  { %v761_v39 = vadd.f32 %v1466_v7, %v760_v0  ;;  %v896_v1 = vadd.f32 %v895_v55, %v833_v37  ;;  %v838_v7 = vmul.f32 %v1502_v32, %v1502_v32 }
 0x135   :  { %v897_v42 = vadd.f32 %v896_v1, %v834_v46  ;;  %v762_v43 = vadd.f32 %v1484_v19, %v761_v39  ;;  %v839_v19 = vmul.f32 %v1520_v44, %v1520_v44 }
 0x137   :  { %v763_v13 = vadd.f32 %v762_v43, %v1511_v38  ;;  %v898_v47 = vadd.f32 %v897_v42, %v835_v58 }
 0x139   :  { %v899_v50 = vadd.f32 %v898_v47, %v836_v45  ;;  %v764_v25 = vadd.f32 %v763_v13, %v1529_v51 }
 0x13b   :  { %v765_v49 = vadd.f32 %v1502_v32, %v764_v25  ;;  %v900_v53 = vadd.f32 %v899_v50, %v837_v48  ;;  %v842_v32 = vmul.f32 %v1538_v59, %v1538_v59 }
 0x13d   :  { %v901_v54 = vadd.f32 %v900_v53, %v838_v7  ;;  %v766_v56 = vadd.f32 %v1520_v44, %v765_v49  ;;  %v843_v44 = vmul.f32 %v1556_v10, %v1556_v10 }
 0x13f   :  { %v767_v38 = vadd.f32 %v766_v56, %v1547_v3  ;;  %v902_v60 = vadd.f32 %v901_v54, %v839_v19 }
 0x141   :  { %v903_v61 = vadd.f32 %v902_v60, %v840_v57  ;;  %v768_v51 = vadd.f32 %v767_v38, %v1562_v17 }
 0x143   :  { %v769_v11 = vadd.f32 %v1538_v59, %v768_v51  ;;  %v904_v63 = vadd.f32 %v903_v61, %v841_v62  ;;  %v846_v59 = vmul.f32 %v1568_v23, %v1568_v23 }
 0x145   :  { %v905_v2 = vadd.f32 %v904_v63, %v842_v32  ;;  %v770_v4 = vadd.f32 %v1556_v10, %v769_v11  ;;  %v847_v10 = vmul.f32 %v1586_v35, %v1586_v35 }
 0x147   :  { %v771_v3 = vadd.f32 %v770_v4, %v1577_v29  ;;  %v906_v5 = vadd.f32 %v905_v2, %v843_v44 }
 0x149   :  { %v907_v6 = vadd.f32 %v906_v5, %v844_v21  ;;  %v772_v17 = vadd.f32 %v771_v3, %v1595_v40 }
 0x14b   :  { %v773_v9 = vadd.f32 %v1568_v23, %v772_v17  ;;  %v908_v16 = vadd.f32 %v907_v6, %v845_v8  ;;  %v711_v23 = vld [vmem:[%s1703_s3] sm:$0x1] }
 0x14d   :  { %v774_v12 = vadd.f32 %v1586_v35, %v773_v9  ;;  %v909_v14 = vadd.f32 %v908_v16, %v846_v59  ;;  %v783_v35 = vld [vmem:[%s1704_s4] sm:$0x1] }
 0x14f   :  { %v775_v29 = vrot.slane %v774_v12, 4  ;;  %v910_v31 = vadd.f32 %v909_v14, %v847_v10 }
 0x151   :  { %v776_v15 = vadd.f32 %v775_v29, %v774_v12  ;;  %v911_v18 = vrot.slane %v910_v31, 4 }
 0x153   :  { %v777_v20 = vrot.slane %v776_v15, 2  ;;  %v912_v41 = vadd.f32 %v911_v18, %v910_v31 }
 0x155   :  { %v778_v22 = vadd.f32 %v777_v20, %v776_v15  ;;  %v913_v40 = vrot.slane %v912_v41, 2 }
 0x157   :  { %v779_v26 = vrot.slane %v778_v22, 1  ;;  %v914_v24 = vadd.f32 %v913_v40, %v912_v41 }
 0x159   :  { %v780_v27 = vadd.f32 %v779_v26, %v778_v22  ;;  %v915_v36 = vrot.slane %v914_v24, 1 }
 0x15b   :  { %v781_v28 = vadd.f32 %v780_v27, %v711_v23  ;;  %v916_v30 = vadd.f32 %v915_v36, %v914_v24 }
 0x15d   :  { %782 = vst [vmem:[%s1703_s3] sm:$0x1] %v781_v28  ;;  %v917_v52 = vadd.f32 %v916_v30, %v783_v35 }
 0x15f   :  { %918 = vst [vmem:[%s1704_s4] sm:$0x1] %v917_v52 }

// kernel: a_call__.10
= control target key start
LH: loop header
LB: loop body
LE: loop exit
PB: predicated region body
PF: predicated region fallthrough
CT: control target
= control target key end

     0   :  { %vm87_vm0 = vcmask 261120   ;;  %v370_v10 = vmov 0.0   ;;  %s500_s1 = inlined_call_operand.vmem [shape: bf16[32,128], index: 1, kind: input, shape index: {}]   ;;  %s501_s0 = inlined_call_operand.vmem [shape: bf16[128,32], index: 0, kind: input, shape index: {}]   ;;  %s502_s3 = inlined_call_operand.vmem [shape: f32[1,128], index: 3, kind: output, shape index: {1}]   ;;  %s503_s4 = inlined_call_operand.vmem [shape: f32[1,128], index: 4, kind: output, shape index: {2}]   ;;  %s504_s2 = inlined_call_operand.vmem [shape: f32[128,128], index: 2, kind: output, shape index: {0}]  }
   0x1   :  { %v360_v0 = vld [vmem:[%s500_s1 + $0x8] sm:$0xff]   ;;  %v361_v1 = vld [vmem:[%s500_s1] sm:$0xff]   ;;  %v364_v4 = vld [vmem:[%s501_s0 + $0x10] sm:$0xff]   ;;  %229 = vst [vmem:[%s502_s3] sm:$0x1] %v370_v10 }
   0x2   :  { %335 = vmatprep.subr.bf16.mxu0 %v360_v0  ;;  %v362_v2 = vld [vmem:[%s501_s0] sm:$0xff]   ;;  %355 = vmatprep.subr.bf16.mxu1 %v360_v0  ;;  %v363_v3 = vld [vmem:[%s501_s0 + $0x8] sm:$0xff]   ;;  %v368_v7 = vld [vmem:[%s501_s0 + $0x30] sm:$0xff]   ;;  %230 = vst [vmem:[%s503_s4] sm:$0x1] %v370_v10 }
   0x3   :  { %336 = vmatpush3.bf16.msra.mxu0 %v360_v0  ;;  %357 = vmatpush3.bf16.msra.mxu1 %v360_v0  ;;  %v366_v5 = vld [vmem:[%s501_s0 + $0x20] sm:$0xff]   ;;  %v367_v6 = vld [vmem:[%s501_s0 + $0x28] sm:$0xff]   ;;  %v365_v8 = vld [vmem:[%s501_s0 + $0x18] sm:$0xff]  }
   0x4   :  { %337 = vmatprep.subr.bf16.mxu0 %v361_v1  ;;  %339 = vmatprep.mubr.msk.bf16.mxu0 %vm87_vm0, %v362_v2  ;;  %v369_v9 = vld [vmem:[%s501_s0 + $0x38] sm:$0xff]  }
   0x5   :  { %356 = vmatprep.subr.bf16.mxu1 %v361_v1  ;;  %347 = vmatprep.mubr.msk.bf16.mxu1 %vm87_vm0, %v366_v5 }
   0x7   :  { %338 = vmatpush3.bf16.msra.mxu0 %v361_v1  ;;  %358 = vmatpush3.bf16.msra.mxu1 %v361_v1 }
   0xa   :  { %340 = vmatmul.mubr.msk.bf16.vlgmr.msra.gmra.mxu0 %vm87_vm0, %v363_v3  ;;  %348 = vmatmul.mubr.msk.bf16.vlgmr.msra.gmra.mxu1 %vm87_vm0, %v367_v6 }
   0xb   :  { %343 = vmatprep.mubr.msk.bf16.mxu0 %vm87_vm0, %v364_v4  ;;  %351 = vmatprep.mubr.msk.bf16.mxu1 %vm87_vm0, %v368_v7 }
  0x12   :  { %344 = vmatmul.mubr.msk.bf16.gmra.mxu0 %vm87_vm0, %v365_v8  ;;  %352 = vmatmul.mubr.msk.bf16.gmra.mxu1 %vm87_vm0, %v369_v9 }
  0xca   :  { %v341_v11 = vpop.f32.mrf.mxu0  ;;  %v349_v12 = vpop.f32.mrf.mxu1 }
  0xcb   :  { %211 = vst [vmem:[%s504_s2 + $0x10] sm:$0xff] %v341_v11  ;;  %219 = vst [vmem:[%s504_s2 + $0x50] sm:$0xff] %v349_v12  ;;  %v258_v24 = vmul.f32 %v341_v11, %v341_v11  ;;  %v266_v54 = vmul.f32 %v349_v12, %v349_v12 }
  0xcc   :  { %v146_v13 = vpop.f32.mrf.mxu0  ;;  %v178_v14 = vpop.f32.mrf.mxu1 }
  0xcd   :  { %209 = vst [vmem:[%s504_s2] sm:$0xff] %v146_v13  ;;  %217 = vst [vmem:[%s504_s2 + $0x40] sm:$0xff] %v178_v14  ;;  %v256_v19 = vmul.f32 %v146_v13, %v146_v13  ;;  %v264_v48 = vmul.f32 %v178_v14, %v178_v14 }
  0xce   :  { %v342_v15 = vpop.f32.mrf.mxu0  ;;  %v350_v16 = vpop.f32.mrf.mxu1 }
  0xcf   :  { %212 = vst [vmem:[%s504_s2 + $0x18] sm:$0xff] %v342_v15  ;;  %220 = vst [vmem:[%s504_s2 + $0x58] sm:$0xff] %v350_v16  ;;  %v259_v29 = vmul.f32 %v342_v15, %v342_v15  ;;  %v267_v57 = vmul.f32 %v350_v16, %v350_v16 }
  0xd0   :  { %v149_v17 = vpop.f32.mrf.mxu0  ;;  %v181_v18 = vpop.f32.mrf.mxu1 }
  0xd1   :  { %210 = vst [vmem:[%s504_s2 + $0x8] sm:$0xff] %v149_v17  ;;  %v232_v20 = vadd.f32 %v149_v17, %v146_v13  ;;  %v257_v21 = vmul.f32 %v149_v17, %v149_v17  ;;  %218 = vst [vmem:[%s504_s2 + $0x48] sm:$0xff] %v181_v18  ;;  %v265_v52 = vmul.f32 %v181_v18, %v181_v18 }
  0xd2   :  { %v345_v22 = vpop.f32.mrf.mxu0  ;;  %v353_v23 = vpop.f32.mrf.mxu1 }
  0xd3   :  { %v233_v25 = vadd.f32 %v341_v11, %v232_v20  ;;  %v272_v26 = vadd.f32 %v257_v21, %v256_v19  ;;  %215 = vst [vmem:[%s504_s2 + $0x30] sm:$0xff] %v345_v22  ;;  %223 = vst [vmem:[%s504_s2 + $0x70] sm:$0xff] %v353_v23  ;;  %v262_v42 = vmul.f32 %v345_v22, %v345_v22  ;;  %v255_v21 = vld [vmem:[%s503_s4] sm:$0x1] }
  0xd4   :  { %v162_v27 = vpop.f32.mrf.mxu0  ;;  %v194_v28 = vpop.f32.mrf.mxu1  ;;  %v270_v2 = vmul.f32 %v353_v23, %v353_v23 }
  0xd5   :  { %v273_v30 = vadd.f32 %v272_v26, %v258_v24  ;;  %213 = vst [vmem:[%s504_s2 + $0x20] sm:$0xff] %v162_v27  ;;  %v234_v31 = vadd.f32 %v342_v15, %v233_v25  ;;  %221 = vst [vmem:[%s504_s2 + $0x60] sm:$0xff] %v194_v28  ;;  %v260_v35 = vmul.f32 %v162_v27, %v162_v27 }
  0xd6   :  { %v346_v32 = vpop.f32.mrf.mxu0  ;;  %v354_v33 = vpop.f32.mrf.mxu1  ;;  %v268_v61 = vmul.f32 %v194_v28, %v194_v28 }
  0xd7   :  { %v235_v34 = vadd.f32 %v234_v31, %v162_v27  ;;  %v274_v36 = vadd.f32 %v273_v30, %v259_v29  ;;  %216 = vst [vmem:[%s504_s2 + $0x38] sm:$0xff] %v346_v32  ;;  %224 = vst [vmem:[%s504_s2 + $0x78] sm:$0xff] %v354_v33  ;;  %v263_v45 = vmul.f32 %v346_v32, %v346_v32 }
  0xd8   :  { %v165_v37 = vpop.f32.mrf.mxu0  ;;  %v197_v38 = vpop.f32.mrf.mxu1  ;;  %v271_v5 = vmul.f32 %v354_v33, %v354_v33 }
  0xd9   :  { %v275_v39 = vadd.f32 %v274_v36, %v260_v35  ;;  %214 = vst [vmem:[%s504_s2 + $0x28] sm:$0xff] %v165_v37  ;;  %v236_v40 = vadd.f32 %v235_v34, %v165_v37  ;;  %v261_v41 = vmul.f32 %v165_v37, %v165_v37  ;;  %222 = vst [vmem:[%s504_s2 + $0x68] sm:$0xff] %v197_v38 }
  0xda   :  { %v269_v1 = vmul.f32 %v197_v38, %v197_v38 }
  0xdb   :  { %v237_v43 = vadd.f32 %v345_v22, %v236_v40  ;;  %v276_v44 = vadd.f32 %v275_v39, %v261_v41 }
  0xdd   :  { %v238_v46 = vadd.f32 %v346_v32, %v237_v43  ;;  %v277_v47 = vadd.f32 %v276_v44, %v262_v42 }
  0xdf   :  { %v278_v49 = vadd.f32 %v277_v47, %v263_v45  ;;  %v239_v50 = vadd.f32 %v238_v46, %v178_v14 }
  0xe1   :  { %v240_v51 = vadd.f32 %v239_v50, %v181_v18  ;;  %v279_v53 = vadd.f32 %v278_v49, %v264_v48  ;;  %v231_v18 = vld [vmem:[%s502_s3] sm:$0x1] }
  0xe3   :  { %v241_v55 = vadd.f32 %v349_v12, %v240_v51  ;;  %v280_v56 = vadd.f32 %v279_v53, %v265_v52 }
  0xe5   :  { %v281_v58 = vadd.f32 %v280_v56, %v266_v54  ;;  %v242_v59 = vadd.f32 %v350_v16, %v241_v55 }
  0xe7   :  { %v243_v60 = vadd.f32 %v242_v59, %v194_v28  ;;  %v282_v62 = vadd.f32 %v281_v58, %v267_v57 }
  0xe9   :  { %v283_v63 = vadd.f32 %v282_v62, %v268_v61  ;;  %v244_v0 = vadd.f32 %v243_v60, %v197_v38 }
  0xeb   :  { %v245_v3 = vadd.f32 %v353_v23, %v244_v0  ;;  %v284_v4 = vadd.f32 %v283_v63, %v269_v1 }
  0xed   :  { %v246_v6 = vadd.f32 %v354_v33, %v245_v3  ;;  %v285_v7 = vadd.f32 %v284_v4, %v270_v2 }
  0xef   :  { %v247_v8 = vrot.slane %v246_v6, 4  ;;  %v286_v9 = vadd.f32 %v285_v7, %v271_v5 }
  0xf1   :  { %v248_v10 = vadd.f32 %v247_v8, %v246_v6  ;;  %v287_v11 = vrot.slane %v286_v9, 4 }
  0xf3   :  { %v249_v12 = vrot.slane %v248_v10, 2  ;;  %v288_v13 = vadd.f32 %v287_v11, %v286_v9 }
  0xf5   :  { %v250_v14 = vadd.f32 %v249_v12, %v248_v10  ;;  %v289_v15 = vrot.slane %v288_v13, 2 }
  0xf7   :  { %v251_v16 = vrot.slane %v250_v14, 1  ;;  %v290_v17 = vadd.f32 %v289_v15, %v288_v13 }
  0xf9   :  { %v252_v19 = vadd.f32 %v251_v16, %v250_v14  ;;  %v291_v20 = vrot.slane %v290_v17, 1 }
  0xfb   :  { %v253_v22 = vadd.f32 %v252_v19, %v231_v18  ;;  %v292_v23 = vadd.f32 %v291_v20, %v290_v17 }
  0xfd   :  { %254 = vst [vmem:[%s502_s3] sm:$0x1] %v253_v22  ;;  %v293_v24 = vadd.f32 %v292_v23, %v255_v21 }
  0xff   :  { %294 = vst [vmem:[%s503_s4] sm:$0x1] %v293_v24 }

// kernel: a_call__.9
= control target key start
LH: loop header
LB: loop body
LE: loop exit
PB: predicated region body
PF: predicated region fallthrough
CT: control target
= control target key end

     0   :  { %v53_v13 = vlaneseq  ;;  %s1165_s5 = inlined_call_operand.vmem [shape: bf16[128,128], index: 5, kind: input, shape index: {}]   ;;  %s1166_s1 = inlined_call_operand.vmem [shape: f32[1,128], index: 1, kind: input, shape index: {}]   ;;  %s1167_s2 = inlined_call_operand.vmem [shape: f32[1,128], index: 2, kind: input, shape index: {}]   ;;  %s1168_s0 = inlined_call_operand.vmem [shape: f32[128,128], index: 0, kind: input, shape index: {}]   ;;  %s1169_s3 = inlined_call_operand.vmem [shape: f32[1,128], index: 3, kind: input, shape index: {}]   ;;  %s1170_s4 = inlined_call_operand.vmem [shape: f32[1,128], index: 4, kind: input, shape index: {}]   ;;  %s1171_s7 = inlined_call_operand.vmem [shape: f32[1,128], index: 7, kind: output, shape index: {1}]   ;;  %s1172_s8 = inlined_call_operand.vmem [shape: f32[1,128], index: 8, kind: output, shape index: {2}]   ;;  %s1173_s6 = inlined_call_operand.vmem [shape: f32[128,128], index: 6, kind: output, shape index: {0}]  }
   0x1   :  { %v753_v0 = vld [vmem:[%s1165_s5 + $0x38] sm:$0xff]   ;;  %v754_v1 = vld [vmem:[%s1165_s5 + $0x30] sm:$0xff]   ;;  %v755_v2 = vld [vmem:[%s1165_s5 + $0x28] sm:$0xff]  }
   0x2   :  { %704 = vmatprep.subr.bf16.mxu0 %v753_v0  ;;  %736 = vmatprep.subr.bf16.mxu1 %v753_v0  ;;  %v756_v3 = vld [vmem:[%s1165_s5 + $0x20] sm:$0xff]   ;;  %v757_v8 = vld [vmem:[%s1165_s5 + $0x18] sm:$0xff]   ;;  %v758_v11 = vld [vmem:[%s1165_s5 + $0x10] sm:$0xff]   ;;  %v54_v16 = vshrl.u32 %v53_v13, 7 }
   0x3   :  { %705 = vmatpush3.bf16.msra.mxu0 %v753_v0  ;;  %744 = vmatpush3.bf16.msra.mxu1 %v753_v0  ;;  %v43_v4 = vld [vmem:[%s1166_s1] sm:$0x1]  ;;  %v759_v15 = vld [vmem:[%s1165_s5 + $0x8] sm:$0xff]   ;;  %v29_v23 = vld [vmem:[%s1168_s0 + $0x10] sm:$0xff] }
   0x4   :  { %706 = vmatprep.subr.bf16.mxu0 %v754_v1  ;;  %737 = vmatprep.subr.bf16.mxu1 %v754_v1  ;;  %v44_v5 = vld [vmem:[%s1167_s2] sm:$0x1]  ;;  %v47_v6 = vmul.f32 0.0078125, %v43_v4  ;;  %v55_v18 = vsub.s32 0, %v54_v16  ;;  %v28_v20 = vld [vmem:[%s1168_s0 + $0x8] sm:$0xff]  ;;  %v30_v24 = vld [vmem:[%s1168_s0 + $0x18] sm:$0xff] }
   0x5   :  { %v48_v7 = vmul.f32 0.0078125, %v44_v5  ;;  %v760_v17 = vld [vmem:[%s1165_s5] sm:$0xff]   ;;  %v32_v26 = vld [vmem:[%s1168_s0 + $0x28] sm:$0xff]  ;;  %v33_v27 = vld [vmem:[%s1168_s0 + $0x30] sm:$0xff] }
   0x6   :  { %v49_v9 = vmul.f32 %v47_v6, %v47_v6  ;;  %v27_v19 = vld [vmem:[%s1168_s0] sm:$0xff]  ;;  %v909_v21 = vrot.slane %v47_v6, %v55_v18  ;;  %v34_v28 = vld [vmem:[%s1168_s0 + $0x38] sm:$0xff]  ;;  %v36_v30 = vld [vmem:[%s1168_s0 + $0x48] sm:$0xff] }
   0x7   :  { %707 = vmatpush3.bf16.msra.mxu0 %v754_v1  ;;  %745 = vmatpush3.bf16.msra.mxu1 %v754_v1  ;;  %v45_v22 = vld [vmem:[%s1169_s3] sm:$0x1]  ;;  %v943_v34 = vld [vmem:[%s1168_s0 + $0x50] sm:$0xff]  ;;  %v948_v35 = vld [vmem:[%s1168_s0 + $0x58] sm:$0xff] }
   0x8   :  { %708 = vmatprep.subr.bf16.mxu0 %v755_v2  ;;  %738 = vmatprep.subr.bf16.mxu1 %v755_v2  ;;  %v50_v10 = vsub.f32 %v48_v7, %v49_v9  ;;  %v31_v25 = vld [vmem:[%s1168_s0 + $0x20] sm:$0xff]  ;;  %v58_v32 = vsub.f32 %v27_v19, %v909_v21  ;;  %v59_v33 = vsub.f32 %v28_v20, %v909_v21  ;;  %v961_v41 = vld [vmem:[%s1168_s0 + $0x68] sm:$0xff]  ;;  %v966_v42 = vld [vmem:[%s1168_s0 + $0x70] sm:$0xff] }
   0x9   :  { %v35_v29 = vld [vmem:[%s1168_s0 + $0x40] sm:$0xff]  ;;  %v60_v38 = vsub.f32 %v29_v23, %v909_v21  ;;  %v61_v39 = vsub.f32 %v30_v24, %v909_v21  ;;  %v62_v40 = vsub.f32 %v31_v25, %v909_v21  ;;  %v971_v43 = vld [vmem:[%s1168_s0 + $0x78] sm:$0xff]  ;;  %v63_v44 = vsub.f32 %v32_v26, %v909_v21 }
   0xa   :  { %v51_v12 = vmax.f32 %v50_v10, 0.0  ;;  %v953_v36 = vld [vmem:[%s1168_s0 + $0x60] sm:$0xff]  ;;  %v64_v45 = vsub.f32 %v33_v27, %v909_v21  ;;  %v65_v46 = vsub.f32 %v34_v28, %v909_v21  ;;  %v66_v47 = vsub.f32 %v35_v29, %v909_v21 }
   0xb   :  { %709 = vmatpush3.bf16.msra.mxu0 %v755_v2  ;;  %746 = vmatpush3.bf16.msra.mxu1 %v755_v2  ;;  %v67_v49 = vsub.f32 %v36_v30, %v909_v21  ;;  %v68_v50 = vsub.f32 %v943_v34, %v909_v21  ;;  %v69_v51 = vsub.f32 %v948_v35, %v909_v21  ;;  %v987_v52 = vld [vmem:[%s1170_s4] ss:$0 sm:$0xff] }
   0xc   :  { %710 = vmatprep.subr.bf16.mxu0 %v756_v3  ;;  %739 = vmatprep.subr.bf16.mxu1 %v756_v3  ;;  %v74_v14 = vadd.f32 1e-05, %v51_v12  ;;  %v70_v53 = vsub.f32 %v953_v36, %v909_v21  ;;  %v71_v54 = vsub.f32 %v961_v41, %v909_v21  ;;  %v72_v55 = vsub.f32 %v966_v42, %v909_v21 }
   0xd   :  { %v73_v56 = vsub.f32 %v971_v43, %v909_v21 }
   0xe   :  { %761 = vrsqrt.f32 %v74_v14 }
   0xf   :  { %711 = vmatpush3.bf16.msra.mxu0 %v756_v3  ;;  %747 = vmatpush3.bf16.msra.mxu1 %v756_v3 }
  0x10   :  { %712 = vmatprep.subr.bf16.mxu0 %v757_v8  ;;  %740 = vmatprep.subr.bf16.mxu1 %v757_v8 }
  0x13   :  { %713 = vmatpush3.bf16.msra.mxu0 %v757_v8  ;;  %748 = vmatpush3.bf16.msra.mxu1 %v757_v8 }
  0x14   :  { %714 = vmatprep.subr.bf16.mxu0 %v758_v11  ;;  %741 = vmatprep.subr.bf16.mxu1 %v758_v11 }
  0x17   :  { %715 = vmatpush3.bf16.msra.mxu0 %v758_v11  ;;  %749 = vmatpush3.bf16.msra.mxu1 %v758_v11 }
  0x18   :  { %716 = vmatprep.subr.bf16.mxu0 %v759_v15  ;;  %742 = vmatprep.subr.bf16.mxu1 %v759_v15 }
  0x1b   :  { %717 = vmatpush3.bf16.msra.mxu0 %v759_v15  ;;  %750 = vmatpush3.bf16.msra.mxu1 %v759_v15  ;;  %v762_v31 = vpop.eup %761 }
  0x1c   :  { %718 = vmatprep.subr.bf16.mxu0 %v760_v17  ;;  %743 = vmatprep.subr.bf16.mxu1 %v760_v17  ;;  %v76_v37 = vmul.f32 %v762_v31, %v45_v22 }
  0x1e   :  { %v977_v48 = vrot.slane %v76_v37, %v55_v18 }
  0x1f   :  { %719 = vmatpush3.bf16.msra.mxu0 %v760_v17  ;;  %751 = vmatpush3.bf16.msra.mxu1 %v760_v17 }
  0x20   :  { %v83_v57 = vmul.f32 %v977_v48, %v58_v32  ;;  %v84_v58 = vmul.f32 %v977_v48, %v59_v33  ;;  %v85_v59 = vmul.f32 %v977_v48, %v60_v38  ;;  %v86_v60 = vmul.f32 %v977_v48, %v61_v39 }
  0x21   :  { %v87_v61 = vmul.f32 %v977_v48, %v62_v40  ;;  %v88_v62 = vmul.f32 %v977_v48, %v63_v44  ;;  %v89_v63 = vmul.f32 %v977_v48, %v64_v45  ;;  %v90_v0 = vmul.f32 %v977_v48, %v65_v46 }
  0x22   :  { %v105_v1 = vadd.f32 %v987_v52, %v83_v57  ;;  %v106_v2 = vadd.f32 %v987_v52, %v84_v58  ;;  %v107_v3 = vadd.f32 %v987_v52, %v85_v59  ;;  %v108_v4 = vadd.f32 %v987_v52, %v86_v60 }
  0x23   :  { %v109_v5 = vadd.f32 %v987_v52, %v87_v61  ;;  %v110_v6 = vadd.f32 %v987_v52, %v88_v62  ;;  %v111_v7 = vadd.f32 %v987_v52, %v89_v63  ;;  %v112_v8 = vadd.f32 %v987_v52, %v90_v0 }
  0x24   :  { %v1013_v9 = vadd.f32 0.1, %v105_v1  ;;  %v1015_v10 = vadd.f32 0.1, %v106_v2  ;;  %v1017_v11 = vadd.f32 0.1, %v107_v3  ;;  %v91_v12 = vmul.f32 %v977_v48, %v66_v47 }
  0x25   :  { %v1020_v13 = vadd.f32 0.1, %v108_v4  ;;  %v1022_v14 = vadd.f32 0.1, %v109_v5  ;;  %v1024_v15 = vadd.f32 0.1, %v110_v6  ;;  %v92_v16 = vmul.f32 %v977_v48, %v67_v49 }
  0x26   :  { %v137_v17 = vmin.f32 %v1013_v9, 20.0  ;;  %v138_v18 = vmin.f32 %v1015_v10, 20.0  ;;  %v139_v19 = vmin.f32 %v1017_v11, 20.0  ;;  %v1030_v20 = vadd.f32 0.1, %v111_v7 }
  0x27   :  { %v140_v22 = vmin.f32 %v1020_v13, 20.0  ;;  %v141_v23 = vmin.f32 %v1022_v14, 20.0  ;;  %v142_v24 = vmin.f32 %v1024_v15, 20.0  ;;  %v1035_v25 = vadd.f32 0.1, %v112_v8 }
  0x28   :  { %v153_v26 = vmul.f32 1.442695, %v137_v17  ;;  %v155_v27 = vmul.f32 1.442695, %v138_v18  ;;  %v157_v28 = vmul.f32 1.442695, %v139_v19  ;;  %v113_v29 = vadd.f32 %v987_v52, %v91_v12 }
  0x29   :  { %v159_v30 = vmul.f32 1.442695, %v140_v22  ;;  %v161_v31 = vmul.f32 1.442695, %v141_v23  ;;  %v163_v32 = vmul.f32 1.442695, %v142_v24  ;;  %v114_v33 = vadd.f32 %v987_v52, %v92_v16 }
  0x2a   :  { %763 = vpow2.f32 %v153_v26  ;;  %v143_v34 = vmin.f32 %v1030_v20, 20.0  ;;  %v144_v35 = vmin.f32 %v1035_v25, 20.0  ;;  %v1041_v36 = vadd.f32 0.1, %v113_v29 }
  0x2b   :  { %765 = vpow2.f32 %v155_v27  ;;  %v1043_v37 = vadd.f32 0.1, %v114_v33  ;;  %v93_v38 = vmul.f32 %v977_v48, %v68_v50  ;;  %v94_v39 = vmul.f32 %v977_v48, %v69_v51 }
  0x2c   :  { %767 = vpow2.f32 %v157_v28  ;;  %v165_v40 = vmul.f32 1.442695, %v143_v34  ;;  %v167_v41 = vmul.f32 1.442695, %v144_v35  ;;  %v145_v44 = vmin.f32 %v1041_v36, 20.0 }
  0x2d   :  { %769 = vpow2.f32 %v159_v30  ;;  %v146_v45 = vmin.f32 %v1043_v37, 20.0  ;;  %v115_v46 = vadd.f32 %v987_v52, %v93_v38  ;;  %v116_v47 = vadd.f32 %v987_v52, %v94_v39 }
  0x2e   :  { %771 = vpow2.f32 %v161_v31  ;;  %v169_v49 = vmul.f32 1.442695, %v145_v44  ;;  %v95_v57 = vmul.f32 %v977_v48, %v70_v53  ;;  %v96_v50 = vmul.f32 %v977_v48, %v71_v54 }
  0x2f   :  { %773 = vpow2.f32 %v163_v32  ;;  %v171_v51 = vmul.f32 1.442695, %v146_v45  ;;  %v1053_v58 = vadd.f32 0.1, %v115_v46  ;;  %v1055_v59 = vadd.f32 0.1, %v116_v47 }
  0x30   :  { %775 = vpow2.f32 %v165_v40  ;;  %v117_v60 = vadd.f32 %v987_v52, %v95_v57  ;;  %v118_v61 = vadd.f32 %v987_v52, %v96_v50  ;;  %v97_v62 = vmul.f32 %v977_v48, %v72_v55 }
  0x31   :  { %777 = vpow2.f32 %v167_v41  ;;  %v147_v53 = vmin.f32 %v1053_v58, 20.0  ;;  %v148_v54 = vmin.f32 %v1055_v59, 20.0  ;;  %v98_v63 = vmul.f32 %v977_v48, %v73_v56 }
  0x32   :  { %779 = vpow2.f32 %v169_v49  ;;  %v1069_v0 = vadd.f32 0.1, %v117_v60  ;;  %v1071_v1 = vadd.f32 0.1, %v118_v61  ;;  %v119_v2 = vadd.f32 %v987_v52, %v97_v62 }
  0x33   :  { %781 = vpow2.f32 %v171_v51  ;;  %v173_v42 = vmul.f32 1.442695, %v147_v53  ;;  %v175_v55 = vmul.f32 1.442695, %v148_v54  ;;  %v120_v3 = vadd.f32 %v987_v52, %v98_v63 }
  0x34   :  { %v149_v4 = vmin.f32 %v1069_v0, 20.0  ;;  %v150_v5 = vmin.f32 %v1071_v1, 20.0  ;;  %v1077_v6 = vadd.f32 0.1, %v119_v2 }
  0x35   :  { %783 = vpow2.f32 %v173_v42  ;;  %v1079_v21 = vadd.f32 0.1, %v120_v3 }
  0x36   :  { %785 = vpow2.f32 %v175_v55  ;;  %v177_v43 = vmul.f32 1.442695, %v149_v4  ;;  %v151_v48 = vmin.f32 %v1077_v6, 20.0  ;;  %v179_v7 = vmul.f32 1.442695, %v150_v5 }
  0x37   :  { %v764_v56 = vpop.eup %763  ;;  %v152_v8 = vmin.f32 %v1079_v21, 20.0 }
  0x38   :  { %v766_v12 = vpop.eup %765  ;;  %v185_v16 = vadd.f32 1.0, %v764_v56  ;;  %v181_v52 = vmul.f32 1.442695, %v151_v48  ;;  %787 = vpow2.f32 %v177_v43 }
  0x39   :  { %v768_v17 = vpop.eup %767  ;;  %v186_v18 = vadd.f32 1.0, %v766_v12  ;;  %v183_v19 = vmul.f32 1.442695, %v152_v8  ;;  %789 = vpow2.f32 %v179_v7 }
  0x3a   :  { %v770_v22 = vpop.eup %769  ;;  %v201_v23 = vmul.f32 %v185_v16, %v185_v16  ;;  %v187_v24 = vadd.f32 1.0, %v768_v17  ;;  %791 = vpow2.f32 %v181_v52 }
  0x3b   :  { %v772_v26 = vpop.eup %771  ;;  %v202_v27 = vmul.f32 %v186_v18, %v186_v18  ;;  %v188_v28 = vadd.f32 1.0, %v770_v22  ;;  %793 = vpow2.f32 %v183_v19 }
  0x3c   :  { %v774_v29 = vpop.eup %773  ;;  %v249_v30 = vadd.f32 1.0, %v201_v23  ;;  %v203_v31 = vmul.f32 %v187_v24, %v187_v24  ;;  %v189_v32 = vadd.f32 1.0, %v772_v26  ;;  %v664_v2 = vadd.f32 -1.0, %v201_v23 }
  0x3d   :  { %v776_v33 = vpop.eup %775  ;;  %v250_v34 = vadd.f32 1.0, %v202_v27  ;;  %v204_v35 = vmul.f32 %v188_v28, %v188_v28  ;;  %v190_v38 = vadd.f32 1.0, %v774_v29  ;;  %v665_v42 = vadd.f32 -1.0, %v202_v27 }
  0x3e   :  { %v778_v39 = vpop.eup %777  ;;  %795 = vrcp.f32 %v249_v30  ;;  %v251_v40 = vadd.f32 1.0, %v203_v31  ;;  %v205_v46 = vmul.f32 %v189_v32, %v189_v32  ;;  %v191_v49 = vadd.f32 1.0, %v776_v33 }
  0x3f   :  { %v780_v41 = vpop.eup %779  ;;  %797 = vrcp.f32 %v250_v34  ;;  %v252_v44 = vadd.f32 1.0, %v204_v35  ;;  %v206_v47 = vmul.f32 %v190_v38, %v190_v38  ;;  %v192_v57 = vadd.f32 1.0, %v778_v39 }
  0x40   :  { %v782_v45 = vpop.eup %781  ;;  %799 = vrcp.f32 %v251_v40  ;;  %v253_v51 = vadd.f32 1.0, %v205_v46  ;;  %v207_v62 = vmul.f32 %v191_v49, %v191_v49  ;;  %v193_v54 = vadd.f32 1.0, %v780_v41 }
  0x41   :  { %801 = vrcp.f32 %v252_v44  ;;  %v254_v60 = vadd.f32 1.0, %v206_v47  ;;  %v208_v53 = vmul.f32 %v192_v57, %v192_v57  ;;  %v194_v63 = vadd.f32 1.0, %v782_v45 }
  0x42   :  { %v784_v50 = vpop.eup %783  ;;  %803 = vrcp.f32 %v253_v51  ;;  %v666_v3 = vadd.f32 -1.0, %v203_v31  ;;  %v667_v4 = vadd.f32 -1.0, %v204_v35  ;;  %v255_v5 = vadd.f32 1.0, %v207_v62 }
  0x43   :  { %v786_v61 = vpop.eup %785  ;;  %v195_v55 = vadd.f32 1.0, %v784_v50  ;;  %805 = vrcp.f32 %v254_v60  ;;  %v256_v43 = vadd.f32 1.0, %v208_v53  ;;  %v209_v48 = vmul.f32 %v193_v54, %v193_v54 }
  0x44   :  { %v210_v56 = vmul.f32 %v194_v63, %v194_v63  ;;  %v196_v7 = vadd.f32 1.0, %v786_v61  ;;  %v668_v12 = vadd.f32 -1.0, %v205_v46  ;;  %807 = vrcp.f32 %v255_v5 }
  0x45   :  { %v788_v8 = vpop.eup %787  ;;  %v211_v16 = vmul.f32 %v195_v55, %v195_v55  ;;  %v233_v17 = vmul.f32 %v664_v2, %v1013_v9  ;;  %v234_v18 = vmul.f32 %v665_v42, %v1015_v10  ;;  %809 = vrcp.f32 %v256_v43 }
  0x46   :  { %v790_v52 = vpop.eup %789  ;;  %v257_v19 = vadd.f32 1.0, %v209_v48  ;;  %v669_v23 = vadd.f32 -1.0, %v206_v47  ;;  %v258_v24 = vadd.f32 1.0, %v210_v56  ;;  %v212_v26 = vmul.f32 %v196_v7, %v196_v7 }
  0x47   :  { %v792_v22 = vpop.eup %791  ;;  %v259_v27 = vadd.f32 1.0, %v211_v16  ;;  %v235_v29 = vmul.f32 %v666_v3, %v1017_v11  ;;  %v236_v30 = vmul.f32 %v667_v4, %v1020_v13  ;;  %v197_v31 = vadd.f32 1.0, %v788_v8 }
  0x48   :  { %v794_v28 = vpop.eup %793  ;;  %811 = vrcp.f32 %v257_v19  ;;  %v237_v33 = vmul.f32 %v668_v12, %v1022_v14  ;;  %v670_v9 = vadd.f32 -1.0, %v207_v62  ;;  %v260_v10 = vadd.f32 1.0, %v212_v26 }
  0x49   :  { %813 = vrcp.f32 %v258_v24  ;;  %v198_v38 = vadd.f32 1.0, %v790_v52  ;;  %v213_v39 = vmul.f32 %v197_v31, %v197_v31  ;;  %v238_v44 = vmul.f32 %v669_v23, %v1024_v15 }
  0x4a   :  { %815 = vrcp.f32 %v259_v27  ;;  %v199_v11 = vadd.f32 1.0, %v792_v22  ;;  %v671_v46 = vadd.f32 -1.0, %v208_v53  ;;  %v200_v50 = vadd.f32 1.0, %v794_v28 }
  0x4b   :  { %v796_v32 = vpop.eup %795  ;;  %817 = vrcp.f32 %v260_v10  ;;  %v214_v47 = vmul.f32 %v198_v38, %v198_v38  ;;  %v261_v49 = vadd.f32 1.0, %v213_v39  ;;  %v239_v60 = vmul.f32 %v670_v9, %v1030_v20 }
  0x4c   :  { %v798_v34 = vpop.eup %797  ;;  %v281_v35 = vmul.f32 %v796_v32, %v233_v17  ;;  %v215_v51 = vmul.f32 %v199_v11, %v199_v11  ;;  %v672_v61 = vadd.f32 -1.0, %v209_v48  ;;  %v673_v15 = vadd.f32 -1.0, %v210_v56 }
  0x4d   :  { %v800_v40 = vpop.eup %799  ;;  %v282_v41 = vmul.f32 %v798_v34, %v234_v18  ;;  %v262_v62 = vadd.f32 1.0, %v214_v47  ;;  %819 = vrcp.f32 %v261_v49  ;;  %v216_v2 = vmul.f32 %v200_v50, %v200_v50 }
  0x4e   :  { %v802_v13 = vpop.eup %801  ;;  %v283_v45 = vmul.f32 %v800_v40, %v235_v29  ;;  %v263_v42 = vadd.f32 1.0, %v215_v51  ;;  %v240_v53 = vmul.f32 %v671_v46, %v1035_v25  ;;  %v674_v4 = vadd.f32 -1.0, %v211_v16 }
  0x4f   :  { %v396_v14 = vpack.c.bf16 %v282_v41, %v281_v35  ;;  %v284_v57 = vmul.f32 %v802_v13, %v236_v30  ;;  %v804_v54 = vpop.eup %803  ;;  %821 = vrcp.f32 %v262_v62  ;;  %v675_v43 = vadd.f32 -1.0, %v212_v26 }
  0x50   :  { %v806_v55 = vpop.eup %805  ;;  %v285_v3 = vmul.f32 %v804_v54, %v237_v33  ;;  %v264_v7 = vadd.f32 1.0, %v216_v2  ;;  %v241_v48 = vmul.f32 %v672_v61, %v1041_v36  ;;  %823 = vrcp.f32 %v263_v42 }
  0x51   :  { %720 = vmatprep.mubr.bf16.mxu0 %v396_v14  ;;  %v397_v63 = vpack.c.bf16 %v284_v57, %v283_v45  ;;  %v286_v5 = vmul.f32 %v806_v55, %v238_v44  ;;  %v808_v20 = vpop.eup %807  ;;  %v242_v56 = vmul.f32 %v673_v15, %v1043_v37  ;;  %v243_v18 = vmul.f32 %v674_v4, %v1053_v58 }
  0x52   :  { %v810_v8 = vpop.eup %809  ;;  %v287_v52 = vmul.f32 %v808_v20, %v239_v60  ;;  %825 = vrcp.f32 %v264_v7  ;;  %v676_v25 = vadd.f32 -1.0, %v213_v39  ;;  %v244_v19 = vmul.f32 %v675_v43, %v1055_v59 }
  0x53   :  { %721 = vmatmul.mubr.bf16.vlgmr.msra.gmra.mxu0 %v397_v63  ;;  %v398_v12 = vpack.c.bf16 %v286_v5, %v285_v3  ;;  %v288_v17 = vmul.f32 %v810_v8, %v240_v53  ;;  %v677_v26 = vadd.f32 -1.0, %v214_v47  ;;  %v678_v37 = vadd.f32 -1.0, %v215_v51 }
  0x54   :  { %v245_v30 = vmul.f32 %v676_v25, %v1069_v0  ;;  %v679_v58 = vadd.f32 -1.0, %v216_v2 }
  0x55   :  { %v812_v16 = vpop.eup %811  ;;  %724 = vmatprep.mubr.bf16.mxu0 %v398_v12  ;;  %v399_v23 = vpack.c.bf16 %v288_v17, %v287_v52  ;;  %v246_v33 = vmul.f32 %v677_v26, %v1071_v1  ;;  %v247_v34 = vmul.f32 %v678_v37, %v1077_v6  ;;  %v827_v1 = vmov 0.0  }
  0x56   :  { %v814_v22 = vpop.eup %813  ;;  %v289_v24 = vmul.f32 %v812_v16, %v241_v48  ;;  %v248_v38 = vmul.f32 %v679_v58, %v1079_v21  ;;  %585 = vst [vmem:[%s1171_s7] sm:$0x1] %v827_v1  ;;  %586 = vst [vmem:[%s1172_s8] sm:$0x1] %v827_v1 }
  0x57   :  { %v816_v36 = vpop.eup %815  ;;  %v290_v27 = vmul.f32 %v814_v22, %v242_v56 }
  0x58   :  { %v818_v28 = vpop.eup %817  ;;  %v291_v29 = vmul.f32 %v816_v36, %v243_v18 }
  0x59   :  { %v400_v31 = vpack.c.bf16 %v290_v27, %v289_v24  ;;  %v292_v32 = vmul.f32 %v818_v28, %v244_v19 }
  0x5a   :  { %v820_v9 = vpop.eup %819 }
  0x5b   :  { %725 = vmatmul.mubr.bf16.gmra.mxu0 %v399_v23  ;;  %728 = vmatprep.mubr.bf16.mxu1 %v400_v31  ;;  %v401_v59 = vpack.c.bf16 %v292_v32, %v291_v29  ;;  %v293_v10 = vmul.f32 %v820_v9, %v245_v30 }
  0x5c   :  { %v822_v35 = vpop.eup %821 }
  0x5d   :  { %729 = vmatmul.mubr.bf16.vlgmr.msra.gmra.mxu1 %v401_v59  ;;  %v294_v39 = vmul.f32 %v822_v35, %v246_v33  ;;  %v824_v40 = vpop.eup %823 }
  0x5e   :  { %v295_v44 = vmul.f32 %v824_v40, %v247_v34 }
  0x5f   :  { %v826_v0 = vpop.eup %825  ;;  %v402_v41 = vpack.c.bf16 %v294_v39, %v293_v10 }
  0x60   :  { %v296_v11 = vmul.f32 %v826_v0, %v248_v38 }
  0x61   :  { %732 = vmatprep.mubr.bf16.mxu1 %v402_v41 }
  0x62   :  { %v403_v13 = vpack.c.bf16 %v296_v11, %v295_v44 }
  0x65   :  { %733 = vmatmul.mubr.bf16.gmra.mxu1 %v403_v13 }
 0x113   :  { %v722_v6 = vpop.f32.mrf.mxu0 }
 0x114   :  { %567 = vst [vmem:[%s1173_s6 + $0x10] sm:$0xff] %v722_v6  ;;  %v614_v50 = vmul.f32 %v722_v6, %v722_v6 }
 0x115   :  { %v502_v21 = vpop.f32.mrf.mxu0 }
 0x116   :  { %565 = vst [vmem:[%s1173_s6] sm:$0xff] %v502_v21  ;;  %v612_v47 = vmul.f32 %v502_v21, %v502_v21 }
 0x117   :  { %v723_v45 = vpop.f32.mrf.mxu0 }
 0x118   :  { %568 = vst [vmem:[%s1173_s6 + $0x18] sm:$0xff] %v723_v45  ;;  %v615_v62 = vmul.f32 %v723_v45, %v723_v45 }
 0x119   :  { %v505_v46 = vpop.f32.mrf.mxu0 }
 0x11a   :  { %566 = vst [vmem:[%s1173_s6 + $0x8] sm:$0xff] %v505_v46  ;;  %v588_v49 = vadd.f32 %v505_v46, %v502_v21  ;;  %v613_v14 = vmul.f32 %v505_v46, %v505_v46 }
 0x11b   :  { %v726_v57 = vpop.f32.mrf.mxu0 }
 0x11c   :  { %v589_v51 = vadd.f32 %v722_v6, %v588_v49  ;;  %v628_v60 = vadd.f32 %v613_v14, %v612_v47  ;;  %571 = vst [vmem:[%s1173_s6 + $0x30] sm:$0xff] %v726_v57  ;;  %v618_v48 = vmul.f32 %v726_v57, %v726_v57 }
 0x11d   :  { %v518_v61 = vpop.f32.mrf.mxu0  ;;  %v730_v15 = vpop.f32.mrf.mxu1 }
 0x11e   :  { %v629_v54 = vadd.f32 %v628_v60, %v614_v50  ;;  %569 = vst [vmem:[%s1173_s6 + $0x20] sm:$0xff] %v518_v61  ;;  %v590_v63 = vadd.f32 %v723_v45, %v589_v51  ;;  %v616_v55 = vmul.f32 %v518_v61, %v518_v61  ;;  %575 = vst [vmem:[%s1173_s6 + $0x50] sm:$0xff] %v730_v15  ;;  %v611_v60 = vld [vmem:[%s1172_s8] sm:$0x1] }
 0x11f   :  { %v727_v2 = vpop.f32.mrf.mxu0  ;;  %v534_v53 = vpop.f32.mrf.mxu1  ;;  %v622_v28 = vmul.f32 %v730_v15, %v730_v15 }
 0x120   :  { %v591_v42 = vadd.f32 %v590_v63, %v518_v61  ;;  %v630_v3 = vadd.f32 %v629_v54, %v615_v62  ;;  %572 = vst [vmem:[%s1173_s6 + $0x38] sm:$0xff] %v727_v2  ;;  %573 = vst [vmem:[%s1173_s6 + $0x40] sm:$0xff] %v534_v53  ;;  %v619_v56 = vmul.f32 %v727_v2, %v727_v2 }
 0x121   :  { %v521_v4 = vpop.f32.mrf.mxu0  ;;  %v731_v20 = vpop.f32.mrf.mxu1  ;;  %v620_v16 = vmul.f32 %v534_v53, %v534_v53 }
 0x122   :  { %v631_v5 = vadd.f32 %v630_v3, %v616_v55  ;;  %570 = vst [vmem:[%s1173_s6 + $0x28] sm:$0xff] %v521_v4  ;;  %v592_v43 = vadd.f32 %v591_v42, %v521_v4  ;;  %v617_v7 = vmul.f32 %v521_v4, %v521_v4  ;;  %576 = vst [vmem:[%s1173_s6 + $0x58] sm:$0xff] %v731_v20 }
 0x123   :  { %v537_v52 = vpop.f32.mrf.mxu1  ;;  %v623_v31 = vmul.f32 %v731_v20, %v731_v20 }
 0x124   :  { %v593_v8 = vadd.f32 %v726_v57, %v592_v43  ;;  %v632_v12 = vadd.f32 %v631_v5, %v617_v7  ;;  %574 = vst [vmem:[%s1173_s6 + $0x48] sm:$0xff] %v537_v52  ;;  %v621_v26 = vmul.f32 %v537_v52, %v537_v52  ;;  %v587_v57 = vld [vmem:[%s1171_s7] sm:$0x1] }
 0x125   :  { %v734_v25 = vpop.f32.mrf.mxu1 }
 0x126   :  { %v594_v17 = vadd.f32 %v727_v2, %v593_v8  ;;  %v633_v18 = vadd.f32 %v632_v12, %v618_v48  ;;  %579 = vst [vmem:[%s1173_s6 + $0x70] sm:$0xff] %v734_v25  ;;  %v626_v38 = vmul.f32 %v734_v25, %v734_v25 }
 0x127   :  { %v550_v23 = vpop.f32.mrf.mxu1 }
 0x128   :  { %v634_v19 = vadd.f32 %v633_v18, %v619_v56  ;;  %v595_v22 = vadd.f32 %v594_v17, %v534_v53  ;;  %577 = vst [vmem:[%s1173_s6 + $0x60] sm:$0xff] %v550_v23  ;;  %v624_v9 = vmul.f32 %v550_v23, %v550_v23 }
 0x129   :  { %v735_v27 = vpop.f32.mrf.mxu1 }
 0x12a   :  { %v596_v24 = vadd.f32 %v595_v22, %v537_v52  ;;  %v635_v36 = vadd.f32 %v634_v19, %v620_v16  ;;  %580 = vst [vmem:[%s1173_s6 + $0x78] sm:$0xff] %v735_v27  ;;  %v627_v0 = vmul.f32 %v735_v27, %v735_v27 }
 0x12b   :  { %v553_v37 = vpop.f32.mrf.mxu1 }
 0x12c   :  { %v597_v29 = vadd.f32 %v730_v15, %v596_v24  ;;  %v636_v30 = vadd.f32 %v635_v36, %v621_v26  ;;  %578 = vst [vmem:[%s1173_s6 + $0x68] sm:$0xff] %v553_v37  ;;  %v625_v35 = vmul.f32 %v553_v37, %v553_v37 }
 0x12e   :  { %v637_v32 = vadd.f32 %v636_v30, %v622_v28  ;;  %v598_v58 = vadd.f32 %v731_v20, %v597_v29 }
 0x130   :  { %v599_v33 = vadd.f32 %v598_v58, %v550_v23  ;;  %v638_v59 = vadd.f32 %v637_v32, %v623_v31 }
 0x132   :  { %v639_v10 = vadd.f32 %v638_v59, %v624_v9  ;;  %v600_v34 = vadd.f32 %v599_v33, %v553_v37 }
 0x134   :  { %v601_v39 = vadd.f32 %v734_v25, %v600_v34  ;;  %v640_v40 = vadd.f32 %v639_v10, %v625_v35 }
 0x136   :  { %v602_v41 = vadd.f32 %v735_v27, %v601_v39  ;;  %v641_v44 = vadd.f32 %v640_v40, %v626_v38 }
 0x138   :  { %v603_v11 = vrot.slane %v602_v41, 4  ;;  %v642_v13 = vadd.f32 %v641_v44, %v627_v0 }
 0x13a   :  { %v604_v1 = vadd.f32 %v603_v11, %v602_v41  ;;  %v643_v6 = vrot.slane %v642_v13, 4 }
 0x13c   :  { %v605_v21 = vrot.slane %v604_v1, 2  ;;  %v644_v45 = vadd.f32 %v643_v6, %v642_v13 }
 0x13e   :  { %v606_v46 = vadd.f32 %v605_v21, %v604_v1  ;;  %v645_v47 = vrot.slane %v644_v45, 2 }
 0x140   :  { %v607_v49 = vrot.slane %v606_v46, 1  ;;  %v646_v14 = vadd.f32 %v645_v47, %v644_v45 }
 0x142   :  { %v608_v50 = vadd.f32 %v607_v49, %v606_v46  ;;  %v647_v51 = vrot.slane %v646_v14, 1 }
 0x144   :  { %v609_v61 = vadd.f32 %v608_v50, %v587_v57  ;;  %v648_v62 = vadd.f32 %v647_v51, %v646_v14 }
 0x146   :  { %610 = vst [vmem:[%s1171_s7] sm:$0x1] %v609_v61  ;;  %v649_v54 = vadd.f32 %v648_v62, %v611_v60 }
 0x148   :  { %650 = vst [vmem:[%s1172_s8] sm:$0x1] %v649_v54 }

// kernel: a_call__.11
= control target key start
LH: loop header
LB: loop body
LE: loop exit
PB: predicated region body
PF: predicated region fallthrough
CT: control target
= control target key end

     0   :  { %v62_v10 = vlaneseq  ;;  %s1072_s0 = inlined_call_operand.vmem [shape: f32[128,128], index: 0, kind: input, shape index: {}]   ;;  %s1073_s1 = inlined_call_operand.vmem [shape: f32[1,128], index: 1, kind: input, shape index: {}]   ;;  %s1074_s2 = inlined_call_operand.vmem [shape: f32[1,128], index: 2, kind: input, shape index: {}]   ;;  %s1075_s3 = inlined_call_operand.vmem [shape: f32[1,128], index: 3, kind: input, shape index: {}, may-alias: {3,8}]   ;;  %s1076_s4 = inlined_call_operand.vmem [shape: f32[1,128], index: 4, kind: input, shape index: {}, may-alias: {4,9}]   ;;  %s1077_s5 = inlined_call_operand.vmem [shape: f32[128,128], index: 5, kind: input, shape index: {}]   ;;  %s1078_s6 = inlined_call_operand.vmem [shape: f32[1,128], index: 6, kind: input, shape index: {}]   ;;  %s1079_s7 = inlined_call_operand.vmem [shape: f32[1,128], index: 7, kind: input, shape index: {}]   ;;  %s1080_s8 = inlined_call_operand.vmem [shape: f32[1,128], index: 8, kind: input, shape index: {}, may-alias: {3,8}]   ;;  %s1081_s9 = inlined_call_operand.vmem [shape: f32[1,128], index: 9, kind: input, shape index: {}, may-alias: {4,9}]   ;;  %s1082_s10 = inlined_call_operand.hbm [shape: f32[128,128], index: 10, kind: output, shape index: {}]  }
   0x1   :  { %v52_v0 = vld [vmem:[%s1073_s1] sm:$0x1] }
   0x2   :  { %v53_v1 = vld [vmem:[%s1074_s2] sm:$0x1]  ;;  %v56_v2 = vmul.f32 0.0078125, %v52_v0  ;;  %v63_v14 = vshrl.u32 %v62_v10, 7 }
   0x3   :  { %v57_v3 = vmul.f32 0.0078125, %v53_v1  ;;  %v162_v4 = vld [vmem:[%s1078_s6] sm:$0x1] }
   0x4   :  { %v163_v5 = vld [vmem:[%s1079_s7] sm:$0x1]  ;;  %v58_v6 = vmul.f32 %v56_v2, %v56_v2  ;;  %v166_v7 = vmul.f32 0.0078125, %v162_v4  ;;  %v645_v18 = vsub.s32 0, %v63_v14 }
   0x5   :  { %v167_v8 = vmul.f32 0.0078125, %v163_v5 }
   0x6   :  { %v59_v9 = vsub.f32 %v57_v3, %v58_v6  ;;  %v168_v11 = vmul.f32 %v166_v7, %v166_v7 }
   0x8   :  { %v60_v12 = vmax.f32 %v59_v9, 0.0  ;;  %v169_v13 = vsub.f32 %v167_v8, %v168_v11 }
   0xa   :  { %v83_v15 = vadd.f32 1e-05, %v60_v12  ;;  %v170_v16 = vmax.f32 %v169_v13, 0.0 }
   0xc   :  { %485 = vrsqrt.f32 %v83_v15  ;;  %v193_v17 = vadd.f32 1e-05, %v170_v16 }
   0xe   :  { %487 = vrsqrt.f32 %v193_v17 }
   0xf   :  { %15 = vsyncpa [#allocation3], 0  ;;  %v650_v19 = vld [vmem:[%s1072_s0] sm:$0xff]  ;;  %v653_v20 = vrot.slane %v56_v2, %v645_v18  ;;  %v661_v22 = vrot.slane %v166_v7, %v645_v18  ;;  %v666_v23 = vld [vmem:[%s1072_s0 + $0x8] sm:$0xff] }
  0x10   :  { %v658_v21 = vld [vmem:[%s1077_s5] sm:$0xff]  ;;  %v671_v24 = vld [vmem:[%s1077_s5 + $0x8] sm:$0xff]  ;;  %v38_v25 = vld [vmem:[%s1072_s0 + $0x10] sm:$0xff] }
  0x11   :  { %v679_v26 = vld [vmem:[%s1077_s5 + $0x10] sm:$0xff]  ;;  %v39_v27 = vld [vmem:[%s1072_s0 + $0x18] sm:$0xff]  ;;  %v40_v29 = vld [vmem:[%s1072_s0 + $0x20] sm:$0xff]  ;;  %v67_v34 = vsub.f32 %v650_v19, %v653_v20  ;;  %v177_v35 = vsub.f32 %v658_v21, %v661_v22  ;;  %v68_v40 = vsub.f32 %v666_v23, %v653_v20  ;;  %v178_v41 = vsub.f32 %v671_v24, %v661_v22 }
  0x12   :  { %v687_v28 = vld [vmem:[%s1077_s5 + $0x18] sm:$0xff]  ;;  %v54_v30 = vld [vmem:[%s1075_s3] sm:$0x1]  ;;  %v41_v32 = vld [vmem:[%s1072_s0 + $0x28] sm:$0xff]  ;;  %v69_v42 = vsub.f32 %v38_v25, %v653_v20  ;;  %v179_v43 = vsub.f32 %v679_v26, %v661_v22  ;;  %v70_v47 = vsub.f32 %v39_v27, %v653_v20  ;;  %v71_v49 = vsub.f32 %v40_v29, %v653_v20 }
  0x13   :  { %v698_v31 = vld [vmem:[%s1077_s5 + $0x20] sm:$0xff]  ;;  %v706_v33 = vld [vmem:[%s1077_s5 + $0x28] sm:$0xff]  ;;  %v42_v36 = vld [vmem:[%s1072_s0 + $0x30] sm:$0xff]  ;;  %v180_v48 = vsub.f32 %v687_v28, %v661_v22  ;;  %v72_v55 = vsub.f32 %v41_v32, %v653_v20 }
  0x14   :  { %v718_v37 = vld [vmem:[%s1077_s5 + $0x30] sm:$0xff]  ;;  %v723_v38 = vld [vmem:[%s1072_s0 + $0x38] sm:$0xff]  ;;  %v164_v39 = vld [vmem:[%s1080_s8] sm:$0x1]  ;;  %v181_v50 = vsub.f32 %v698_v31, %v661_v22  ;;  %v182_v56 = vsub.f32 %v706_v33, %v661_v22  ;;  %v73_v57 = vsub.f32 %v42_v36, %v653_v20 }
  0x15   :  { %v738_v44 = vld [vmem:[%s1077_s5 + $0x38] sm:$0xff]  ;;  %v743_v45 = vld [vmem:[%s1072_s0 + $0x40] sm:$0xff]  ;;  %v759_v51 = vld [vmem:[%s1072_s0 + $0x48] sm:$0xff]  ;;  %v183_v58 = vsub.f32 %v718_v37, %v661_v22  ;;  %v74_v63 = vsub.f32 %v723_v38, %v653_v20 }
  0x16   :  { %v748_v46 = vld [vmem:[%s1077_s5 + $0x40] sm:$0xff]  ;;  %v764_v52 = vld [vmem:[%s1077_s5 + $0x48] sm:$0xff]  ;;  %v769_v53 = vld [vmem:[%s1072_s0 + $0x50] sm:$0xff]  ;;  %v184_v0 = vsub.f32 %v738_v44, %v661_v22  ;;  %v75_v1 = vsub.f32 %v743_v45, %v653_v20  ;;  %v76_v7 = vsub.f32 %v759_v51, %v653_v20 }
  0x17   :  { %v780_v59 = vld [vmem:[%s1077_s5 + $0x50] sm:$0xff]  ;;  %v785_v60 = vld [vmem:[%s1072_s0 + $0x58] sm:$0xff]  ;;  %v801_v2 = vld [vmem:[%s1072_s0 + $0x60] sm:$0xff]  ;;  %v185_v6 = vsub.f32 %v748_v46, %v661_v22  ;;  %v186_v8 = vsub.f32 %v764_v52, %v661_v22  ;;  %v77_v9 = vsub.f32 %v769_v53, %v653_v20 }
  0x18   :  { %v790_v61 = vld [vmem:[%s1077_s5 + $0x58] sm:$0xff]  ;;  %v806_v3 = vld [vmem:[%s1077_s5 + $0x60] sm:$0xff]  ;;  %v811_v4 = vld [vmem:[%s1072_s0 + $0x68] sm:$0xff]  ;;  %v187_v12 = vsub.f32 %v780_v59, %v661_v22  ;;  %v78_v13 = vsub.f32 %v785_v60, %v653_v20  ;;  %v79_v16 = vsub.f32 %v801_v2, %v653_v20 }
  0x19   :  { %v486_v54 = vpop.eup %485  ;;  %v831_v14 = vld [vmem:[%s1076_s4] ss:$0 sm:$0xff]  ;;  %v188_v15 = vsub.f32 %v790_v61, %v661_v22  ;;  %v189_v17 = vsub.f32 %v806_v3, %v661_v22  ;;  %v80_v19 = vsub.f32 %v811_v4, %v653_v20  ;;  %v938_v51 = vld [vmem:[%s1077_s5 + $0x68] sm:$0xff]  ;;  %v958_v60 = vld [vmem:[%s1072_s0 + $0x70] sm:$0xff] }
  0x1a   :  { %v85_v62 = vmul.f32 %v486_v54, %v54_v30  ;;  %v850_v26 = vld [vmem:[%s1081_s9] ss:$0 sm:$0xff]  ;;  %v190_v59 = vsub.f32 %v938_v51, %v661_v22 }
  0x1b   :  { %v488_v5 = vpop.eup %487 }
  0x1c   :  { %v822_v10 = vrot.slane %v85_v62, %v645_v18  ;;  %v195_v11 = vmul.f32 %v488_v5, %v164_v39 }
  0x1e   :  { %v92_v21 = vmul.f32 %v822_v10, %v67_v34  ;;  %v843_v23 = vrot.slane %v195_v11, %v645_v18  ;;  %v93_v24 = vmul.f32 %v822_v10, %v68_v40  ;;  %v94_v25 = vmul.f32 %v822_v10, %v69_v42 }
  0x1f   :  { %v95_v27 = vmul.f32 %v822_v10, %v70_v47  ;;  %v96_v28 = vmul.f32 %v822_v10, %v71_v49  ;;  %v97_v29 = vmul.f32 %v822_v10, %v72_v55  ;;  %v98_v30 = vmul.f32 %v822_v10, %v73_v57 }
  0x20   :  { %v114_v18 = vadd.f32 %v831_v14, %v92_v21  ;;  %v202_v31 = vmul.f32 %v843_v23, %v177_v35  ;;  %v115_v32 = vadd.f32 %v831_v14, %v93_v24  ;;  %v203_v33 = vmul.f32 %v843_v23, %v178_v41 }
  0x21   :  { %v116_v34 = vadd.f32 %v831_v14, %v94_v25  ;;  %v204_v36 = vmul.f32 %v843_v23, %v179_v43  ;;  %v117_v39 = vadd.f32 %v831_v14, %v95_v27  ;;  %v205_v40 = vmul.f32 %v843_v23, %v180_v48 }
  0x22   :  { %v130_v42 = vadd.f32 0.1, %v114_v18  ;;  %v224_v47 = vadd.f32 %v850_v26, %v202_v31  ;;  %v131_v49 = vadd.f32 0.1, %v115_v32  ;;  %v225_v54 = vadd.f32 %v850_v26, %v203_v33 }
  0x23   :  { %v132_v55 = vadd.f32 0.1, %v116_v34  ;;  %v226_v35 = vadd.f32 %v850_v26, %v204_v36  ;;  %v133_v57 = vadd.f32 0.1, %v117_v39  ;;  %v227_v41 = vadd.f32 %v850_v26, %v205_v40 }
  0x24   :  { %v240_v62 = vadd.f32 0.1, %v224_v47  ;;  %v241_v5 = vadd.f32 0.1, %v225_v54  ;;  %v118_v43 = vadd.f32 %v831_v14, %v96_v28  ;;  %v206_v11 = vmul.f32 %v843_v23, %v181_v50 }
  0x25   :  { %v242_v21 = vadd.f32 0.1, %v226_v35  ;;  %v243_v48 = vadd.f32 0.1, %v227_v41  ;;  %v119_v24 = vadd.f32 %v831_v14, %v97_v29  ;;  %v207_v25 = vmul.f32 %v843_v23, %v182_v56 }
  0x26   :  { %v872_v27 = vadd.f32 %v240_v62, %v130_v42  ;;  %v874_v18 = vadd.f32 %v241_v5, %v131_v49  ;;  %v134_v31 = vadd.f32 0.1, %v118_v43  ;;  %v228_v32 = vadd.f32 %v850_v26, %v206_v11 }
  0x27   :  { %v877_v33 = vadd.f32 %v242_v21, %v132_v55  ;;  %v879_v34 = vadd.f32 %v243_v48, %v133_v57  ;;  %v135_v28 = vadd.f32 0.1, %v119_v24  ;;  %v229_v50 = vadd.f32 %v850_v26, %v207_v25 }
  0x28   :  { %v272_v36 = vmin.f32 %v872_v27, 20.0  ;;  %v273_v29 = vmin.f32 %v874_v18, 20.0  ;;  %v244_v39 = vadd.f32 0.1, %v228_v32  ;;  %v120_v56 = vadd.f32 %v831_v14, %v98_v30 }
  0x29   :  { %v274_v40 = vmin.f32 %v877_v33, 20.0  ;;  %v275_v42 = vmin.f32 %v879_v34, 20.0  ;;  %v245_v47 = vadd.f32 0.1, %v229_v50  ;;  %v208_v49 = vmul.f32 %v843_v23, %v183_v58 }
  0x2a   :  { %v288_v54 = vmul.f32 1.442695, %v272_v36  ;;  %v290_v55 = vmul.f32 1.442695, %v273_v29  ;;  %v891_v35 = vadd.f32 %v244_v39, %v134_v31  ;;  %v136_v57 = vadd.f32 0.1, %v120_v56 }
  0x2b   :  { %v292_v41 = vmul.f32 1.442695, %v274_v40  ;;  %v294_v62 = vmul.f32 1.442695, %v275_v42  ;;  %v893_v5 = vadd.f32 %v245_v47, %v135_v28  ;;  %v230_v30 = vadd.f32 %v850_v26, %v208_v49 }
  0x2c   :  { %489 = vpow2.f32 %v288_v54  ;;  %v276_v43 = vmin.f32 %v891_v35, 20.0  ;;  %v99_v37 = vmul.f32 %v822_v10, %v74_v63  ;;  %v209_v58 = vmul.f32 %v843_v23, %v184_v0 }
  0x2d   :  { %491 = vpow2.f32 %v290_v55  ;;  %v277_v11 = vmin.f32 %v893_v5, 20.0  ;;  %v246_v21 = vadd.f32 0.1, %v230_v30  ;;  %v100_v48 = vmul.f32 %v822_v10, %v75_v1 }
  0x2e   :  { %493 = vpow2.f32 %v292_v41  ;;  %v296_v24 = vmul.f32 1.442695, %v276_v43  ;;  %v121_v38 = vadd.f32 %v831_v14, %v99_v37  ;;  %v231_v63 = vadd.f32 %v850_v26, %v209_v58  ;;  %v984_v37 = vld [vmem:[%s1077_s5 + $0x78] sm:$0xff] }
  0x2f   :  { %495 = vpow2.f32 %v294_v62  ;;  %v298_v25 = vmul.f32 1.442695, %v277_v11  ;;  %v912_v44 = vadd.f32 %v246_v21, %v136_v57  ;;  %v122_v0 = vadd.f32 %v831_v14, %v100_v48 }
  0x30   :  { %497 = vpow2.f32 %v296_v24  ;;  %v137_v31 = vadd.f32 0.1, %v121_v38  ;;  %v247_v32 = vadd.f32 0.1, %v231_v63  ;;  %v210_v45 = vmul.f32 %v843_v23, %v185_v6 }
  0x31   :  { %499 = vpow2.f32 %v298_v25  ;;  %v278_v1 = vmin.f32 %v912_v44, 20.0  ;;  %v138_v28 = vadd.f32 0.1, %v122_v0  ;;  %v101_v50 = vmul.f32 %v822_v10, %v76_v7 }
  0x32   :  { %v924_v36 = vadd.f32 %v247_v32, %v137_v31  ;;  %v232_v29 = vadd.f32 %v850_v26, %v210_v45  ;;  %v211_v46 = vmul.f32 %v843_v23, %v186_v8  ;;  %v102_v6 = vmul.f32 %v822_v10, %v77_v9 }
  0x33   :  { %v300_v7 = vmul.f32 1.442695, %v278_v1  ;;  %v123_v39 = vadd.f32 %v831_v14, %v101_v50  ;;  %v212_v52 = vmul.f32 %v843_v23, %v187_v12  ;;  %v103_v53 = vmul.f32 %v822_v10, %v78_v13  ;;  %v963_v12 = vld [vmem:[%s1077_s5 + $0x70] sm:$0xff]  ;;  %v968_v13 = vld [vmem:[%s1072_s0 + $0x78] sm:$0xff]  ;;  %s575_s5 = smov [#allocation2]  }
  0x34   :  { %v279_v8 = vmin.f32 %v924_v36, 20.0  ;;  %v248_v9 = vadd.f32 0.1, %v232_v29  ;;  %v233_v56 = vadd.f32 %v850_v26, %v211_v46  ;;  %v124_v40 = vadd.f32 %v831_v14, %v102_v6  ;;  %s453_s14 = sshll.u32 %s575_s5, 4  ;;  %s454_s14 = int_to_ptr.vmem [resolvable:$true] %s453_s14 }
  0x35   :  { %501 = vpow2.f32 %v300_v7  ;;  %v139_v42 = vadd.f32 0.1, %v123_v39  ;;  %v234_v47 = vadd.f32 %v850_v26, %v212_v52  ;;  %v125_v62 = vadd.f32 %v831_v14, %v103_v53  ;;  %s553_s15 = scalar_lea.vmem %s454_s14, 2048  ;;  %p558_p1 = scmp.lt.s32.totalorder %s454_s14, %s454_s14 }
  0x36   :  { %v302_v49 = vmul.f32 1.442695, %v279_v8  ;;  %v970_v54 = vadd.f32 %v248_v9, %v138_v28  ;;  %v249_v55 = vadd.f32 0.1, %v233_v56  ;;  %v140_v57 = vadd.f32 0.1, %v124_v40  ;;  %p554_p0 = scmp.ne.s32.totalorder %s454_s14, %s553_s15  ;;  %p559_p2 = scmp.lt.s32.totalorder %s553_s15, %s553_s15 }
  0x37   :  { %v250_v41 = vadd.f32 0.1, %v234_v47  ;;  %v213_v30 = vmul.f32 %v843_v23, %v188_v15  ;;  %v104_v43 = vmul.f32 %v822_v10, %v79_v16  ;;  %v81_v11 = vsub.f32 %v958_v60, %v653_v20 }
  0x38   :  { %503 = vpow2.f32 %v302_v49  ;;  %v280_v58 = vmin.f32 %v970_v54, 20.0  ;;  %v191_v61 = vsub.f32 %v963_v12, %v661_v22  ;;  %v991_v21 = vadd.f32 %v249_v55, %v139_v42  ;;  %p560_p3 = por %p559_p2, %p558_p1 }
  0x39   :  { %v490_v15 = vpop.eup %489  ;;  %v235_v2 = vadd.f32 %v850_v26, %v213_v30  ;;  %v214_v16 = vmul.f32 %v843_v23, %v189_v17  ;;  %v82_v48 = vsub.f32 %v968_v13, %v653_v20  ;;  %v1000_v25 = vadd.f32 %v250_v41, %v140_v57 }
  0x3a   :  { %v492_v24 = vpop.eup %491  ;;  %v320_v38 = vadd.f32 1.0, %v490_v15  ;;  %v304_v63 = vmul.f32 1.442695, %v280_v58  ;;  %v192_v0 = vsub.f32 %v984_v37, %v661_v22  ;;  %v141_v45 = vadd.f32 0.1, %v125_v62  ;;  %p561_p4 = pnand %p560_p3, %p554_p0 }
  0x3b   :  { %v494_v31 = vpop.eup %493  ;;  %v321_v32 = vadd.f32 1.0, %v492_v24  ;;  %v251_v1 = vadd.f32 0.1, %v235_v2  ;;  %v126_v28 = vadd.f32 %v831_v14, %v104_v43  ;;  %v105_v29 = vmul.f32 %v822_v10, %v80_v19 }
  0x3c   :  { %v496_v3 = vpop.eup %495  ;;  %v336_v50 = vmul.f32 %v320_v38, %v320_v38  ;;  %v322_v17 = vadd.f32 1.0, %v494_v31  ;;  %505 = vpow2.f32 %v304_v63  ;;  %v281_v39 = vmin.f32 %v991_v21, 20.0 }
  0x3d   :  { %v498_v46 = vpop.eup %497  ;;  %v337_v6 = vmul.f32 %v321_v32, %v321_v32  ;;  %v323_v7 = vadd.f32 1.0, %v496_v3  ;;  %v236_v52 = vadd.f32 %v850_v26, %v214_v16  ;;  %v282_v40 = vmin.f32 %v1000_v25, 20.0 }
  0x3e   :  { %v500_v53 = vpop.eup %499  ;;  %v384_v8 = vadd.f32 1.0, %v336_v50  ;;  %v338_v9 = vmul.f32 %v322_v17, %v322_v17  ;;  %v324_v56 = vadd.f32 1.0, %v498_v46  ;;  %v1012_v55 = vadd.f32 %v251_v1, %v141_v45 }
  0x3f   :  { %v385_v42 = vadd.f32 1.0, %v337_v6  ;;  %v339_v47 = vmul.f32 %v323_v7, %v323_v7  ;;  %v325_v49 = vadd.f32 1.0, %v500_v53  ;;  %v466_v4 = vadd.f32 -1.0, %v336_v50 }
  0x40   :  { %507 = vrcp.f32 %v384_v8  ;;  %v467_v19 = vadd.f32 -1.0, %v337_v6  ;;  %v386_v57 = vadd.f32 1.0, %v338_v9  ;;  %v306_v62 = vmul.f32 1.442695, %v281_v39 }
  0x41   :  { %509 = vrcp.f32 %v385_v42  ;;  %v387_v41 = vadd.f32 1.0, %v339_v47  ;;  %v142_v30 = vadd.f32 0.1, %v126_v28  ;;  %v468_v58 = vadd.f32 -1.0, %v338_v9 }
  0x42   :  { %v502_v43 = vpop.eup %501  ;;  %511 = vrcp.f32 %v386_v57  ;;  %v340_v15 = vmul.f32 %v324_v56, %v324_v56  ;;  %v341_v2 = vmul.f32 %v325_v49, %v325_v49  ;;  %v308_v24 = vmul.f32 1.442695, %v282_v40 }
  0x43   :  { %513 = vrcp.f32 %v387_v41  ;;  %v326_v16 = vadd.f32 1.0, %v502_v43  ;;  %v283_v38 = vmin.f32 %v1012_v55, 20.0  ;;  %v368_v63 = vmul.f32 %v466_v4, %v872_v27 }
  0x44   :  { %v369_v31 = vmul.f32 %v467_v19, %v874_v18  ;;  %v388_v32 = vadd.f32 1.0, %v340_v15  ;;  %v389_v45 = vadd.f32 1.0, %v341_v2  ;;  %v469_v3 = vadd.f32 -1.0, %v339_v47 }
  0x45   :  { %v504_v1 = vpop.eup %503  ;;  %v342_v50 = vmul.f32 %v326_v16, %v326_v16  ;;  %515 = vpow2.f32 %v306_v62  ;;  %v252_v28 = vadd.f32 0.1, %v236_v52  ;;  %v370_v17 = vmul.f32 %v468_v58, %v877_v33 }
  0x46   :  { %517 = vrcp.f32 %v388_v32  ;;  %v327_v46 = vadd.f32 1.0, %v504_v1  ;;  %v310_v6 = vmul.f32 1.442695, %v283_v38  ;;  %v470_v7 = vadd.f32 -1.0, %v340_v15 }
  0x47   :  { %519 = vrcp.f32 %v389_v45  ;;  %v390_v39 = vadd.f32 1.0, %v342_v50  ;;  %v1018_v53 = vadd.f32 %v252_v28, %v142_v30  ;;  %v127_v18 = vadd.f32 %v831_v14, %v105_v29 }
  0x48   :  { %v343_v27 = vmul.f32 %v327_v46, %v327_v46  ;;  %521 = vpow2.f32 %v308_v24  ;;  %v215_v8 = vmul.f32 %v843_v23, %v190_v59  ;;  %v371_v33 = vmul.f32 %v469_v3, %v879_v34 }
  0x49   :  { %v506_v52 = vpop.eup %505  ;;  %523 = vrcp.f32 %v390_v39  ;;  %v284_v9 = vmin.f32 %v1018_v53, 20.0  ;;  %v106_v56 = vmul.f32 %v822_v10, %v81_v11  ;;  %v471_v40 = vadd.f32 -1.0, %v341_v2 }
  0x4a   :  { %v391_v42 = vadd.f32 1.0, %v343_v27  ;;  %v328_v47 = vadd.f32 1.0, %v506_v52  ;;  %525 = vpow2.f32 %v310_v6  ;;  %v143_v49 = vadd.f32 0.1, %v127_v18 }
  0x4b   :  { %v312_v29 = vmul.f32 1.442695, %v284_v9  ;;  %v237_v51 = vadd.f32 %v850_v26, %v215_v8  ;;  %v128_v59 = vadd.f32 %v831_v14, %v106_v56  ;;  %v372_v34 = vmul.f32 %v470_v7, %v891_v35 }
  0x4c   :  { %527 = vrcp.f32 %v391_v42  ;;  %v344_v4 = vmul.f32 %v328_v47, %v328_v47  ;;  %v216_v60 = vmul.f32 %v843_v23, %v191_v61  ;;  %v472_v19 = vadd.f32 -1.0, %v342_v50 }
  0x4d   :  { %v508_v11 = vpop.eup %507  ;;  %529 = vpow2.f32 %v312_v29  ;;  %v253_v57 = vadd.f32 0.1, %v237_v51  ;;  %v107_v41 = vmul.f32 %v822_v10, %v82_v48  ;;  %v144_v35 = vadd.f32 0.1, %v128_v59 }
  0x4e   :  { %v510_v62 = vpop.eup %509  ;;  %v416_v30 = vmul.f32 %v508_v11, %v368_v63  ;;  %v392_v43 = vadd.f32 1.0, %v344_v4  ;;  %v238_v58 = vadd.f32 %v850_v26, %v216_v60  ;;  %v217_v16 = vmul.f32 %v843_v23, %v192_v0 }
  0x4f   :  { %v512_v15 = vpop.eup %511  ;;  %v417_v2 = vmul.f32 %v510_v62, %v369_v31  ;;  %v1043_v12 = vadd.f32 %v253_v57, %v143_v49  ;;  %v129_v61 = vadd.f32 %v831_v14, %v107_v41  ;;  %v373_v13 = vmul.f32 %v471_v40, %v893_v5 }
  0x50   :  { %v514_v20 = vpop.eup %513  ;;  %432 = vst [vmem:[#allocation2] sm:$0xff] %v416_v30  ;;  %v418_v10 = vmul.f32 %v512_v15, %v370_v17  ;;  %531 = vrcp.f32 %v392_v43  ;;  %v254_v48 = vadd.f32 0.1, %v238_v58  ;;  %v239_v31 = vadd.f32 %v850_v26, %v217_v16 }
  0x51   :  { %433 = vst [vmem:[#allocation2 + $0x8] sm:$0xff] %v417_v2  ;;  %v419_v24 = vmul.f32 %v514_v20, %v371_v33  ;;  %v285_v38 = vmin.f32 %v1043_v12, 20.0  ;;  %v145_v63 = vadd.f32 0.1, %v129_v61  ;;  %v473_v32 = vadd.f32 -1.0, %v343_v27 }
  0x52   :  { %v516_v14 = vpop.eup %515  ;;  %434 = vst [vmem:[#allocation2 + $0x10] sm:$0xff] %v418_v10  ;;  %v1053_v22 = vadd.f32 %v254_v48, %v144_v35  ;;  %v374_v37 = vmul.f32 %v472_v19, %v912_v44  ;;  %v255_v45 = vadd.f32 0.1, %v239_v31  ;;  %v474_v39 = vadd.f32 -1.0, %v344_v4 }
  0x53   :  { %v518_v23 = vpop.eup %517  ;;  %435 = vst [vmem:[#allocation2 + $0x18] sm:$0xff] %v419_v24  ;;  %v329_v0 = vadd.f32 1.0, %v516_v14  ;;  %v314_v5 = vmul.f32 1.442695, %v285_v38  ;;  %v375_v7 = vmul.f32 %v473_v32, %v924_v36 }
  0x54   :  { %v520_v1 = vpop.eup %519  ;;  %v420_v3 = vmul.f32 %v518_v23, %v372_v34  ;;  %v286_v50 = vmin.f32 %v1053_v22, 20.0  ;;  %v1057_v26 = vadd.f32 %v255_v45, %v145_v63  ;;  %v376_v36 = vmul.f32 %v474_v39, %v970_v54 }
  0x55   :  { %v522_v28 = vpop.eup %521  ;;  %v421_v17 = vmul.f32 %v520_v1, %v373_v13  ;;  %v345_v46 = vmul.f32 %v329_v0, %v329_v0  ;;  %533 = vpow2.f32 %v314_v5 }
  0x56   :  { %v524_v6 = vpop.eup %523  ;;  %436 = vst [vmem:[#allocation2 + $0x20] sm:$0xff] %v420_v3  ;;  %v330_v27 = vadd.f32 1.0, %v522_v28  ;;  %v316_v44 = vmul.f32 1.442695, %v286_v50  ;;  %v287_v33 = vmin.f32 %v1057_v26, 20.0 }
  0x57   :  { %v526_v18 = vpop.eup %525  ;;  %437 = vst [vmem:[#allocation2 + $0x28] sm:$0xff] %v421_v17  ;;  %v422_v8 = vmul.f32 %v524_v6, %v374_v37  ;;  %v393_v52 = vadd.f32 1.0, %v345_v46  ;;  %v475_v19 = vadd.f32 -1.0, %v345_v46 }
  0x58   :  { %v346_v9 = vmul.f32 %v330_v27, %v330_v27  ;;  %v331_v56 = vadd.f32 1.0, %v526_v18  ;;  %535 = vpow2.f32 %v316_v44  ;;  %v318_v42 = vmul.f32 1.442695, %v287_v33 }
  0x59   :  { %v528_v40 = vpop.eup %527  ;;  %438 = vst [vmem:[#allocation2 + $0x30] sm:$0xff] %v422_v8  ;;  %537 = vrcp.f32 %v393_v52  ;;  %v377_v30 = vmul.f32 %v475_v19, %v991_v21 }
  0x5a   :  { %v530_v47 = vpop.eup %529  ;;  %v423_v29 = vmul.f32 %v528_v40, %v375_v7  ;;  %v394_v49 = vadd.f32 1.0, %v346_v9  ;;  %v347_v51 = vmul.f32 %v331_v56, %v331_v56  ;;  %539 = vpow2.f32 %v318_v42 }
  0x5b   :  { %v332_v59 = vadd.f32 1.0, %v530_v47  ;;  %v476_v62 = vadd.f32 -1.0, %v346_v9 }
  0x5c   :  { %439 = vst [vmem:[#allocation2 + $0x38] sm:$0xff] %v423_v29  ;;  %541 = vrcp.f32 %v394_v49  ;;  %v395_v34 = vadd.f32 1.0, %v347_v51  ;;  %v477_v43 = vadd.f32 -1.0, %v347_v51 }
  0x5d   :  { %v532_v4 = vpop.eup %531  ;;  %v348_v60 = vmul.f32 %v332_v59, %v332_v59  ;;  %v378_v2 = vmul.f32 %v476_v62, %v1000_v25 }
  0x5e   :  { %v424_v11 = vmul.f32 %v532_v4, %v376_v36  ;;  %543 = vrcp.f32 %v395_v34  ;;  %v379_v48 = vmul.f32 %v477_v43, %v1012_v55 }
  0x5f   :  { %v396_v57 = vadd.f32 1.0, %v348_v60  ;;  %v478_v20 = vadd.f32 -1.0, %v348_v60 }
  0x60   :  { %440 = vst [vmem:[#allocation2 + $0x40] sm:$0xff] %v424_v11 }
  0x61   :  { %545 = vrcp.f32 %v396_v57  ;;  %v380_v32 = vmul.f32 %v478_v20, %v1018_v53 }
  0x62   :  { %v534_v41 = vpop.eup %533 }
  0x63   :  { %v333_v54 = vadd.f32 1.0, %v534_v41 }
  0x65   :  { %v536_v35 = vpop.eup %535  ;;  %v349_v58 = vmul.f32 %v333_v54, %v333_v54 }
  0x66   :  { %v538_v15 = vpop.eup %537  ;;  %v334_v61 = vadd.f32 1.0, %v536_v35 }
  0x67   :  { %v425_v16 = vmul.f32 %v538_v15, %v377_v30  ;;  %v397_v10 = vadd.f32 1.0, %v349_v58  ;;  %v540_v13 = vpop.eup %539  ;;  %v479_v45 = vadd.f32 -1.0, %v349_v58 }
  0x68   :  { %v350_v24 = vmul.f32 %v334_v61, %v334_v61  ;;  %v335_v63 = vadd.f32 1.0, %v540_v13 }
  0x69   :  { %v542_v38 = vpop.eup %541  ;;  %441 = vst [vmem:[#allocation2 + $0x48] sm:$0xff] %v425_v16  ;;  %547 = vrcp.f32 %v397_v10  ;;  %v381_v1 = vmul.f32 %v479_v45, %v1043_v12 }
  0x6a   :  { %v426_v21 = vmul.f32 %v542_v38, %v378_v2  ;;  %v398_v31 = vadd.f32 1.0, %v350_v24  ;;  %v351_v23 = vmul.f32 %v335_v63, %v335_v63  ;;  %v480_v55 = vadd.f32 -1.0, %v350_v24 }
  0x6b   :  { %v544_v14 = vpop.eup %543 }
  0x6c   :  { %442 = vst [vmem:[#allocation2 + $0x50] sm:$0xff] %v426_v21  ;;  %v427_v25 = vmul.f32 %v544_v14, %v379_v48  ;;  %549 = vrcp.f32 %v398_v31  ;;  %v399_v37 = vadd.f32 1.0, %v351_v23  ;;  %v481_v3 = vadd.f32 -1.0, %v351_v23 }
  0x6d   :  { %v382_v28 = vmul.f32 %v480_v55, %v1053_v22 }
  0x6e   :  { %v546_v0 = vpop.eup %545  ;;  %443 = vst [vmem:[#allocation2 + $0x58] sm:$0xff] %v427_v25  ;;  %551 = vrcp.f32 %v399_v37  ;;  %v383_v46 = vmul.f32 %v481_v3, %v1057_v26 }
  0x6f   :  { %v428_v5 = vmul.f32 %v546_v0, %v380_v32 }
  0x71   :  { %444 = vst [vmem:[#allocation2 + $0x60] sm:$0xff] %v428_v5 }
  0x76   :  { %v548_v50 = vpop.eup %547 }
  0x77   :  { %v429_v17 = vmul.f32 %v548_v50, %v381_v1 }
  0x79   :  { %v550_v53 = vpop.eup %549  ;;  %445 = vst [vmem:[#allocation2 + $0x68] sm:$0xff] %v429_v17 }
  0x7a   :  { %v430_v6 = vmul.f32 %v550_v53, %v382_v28 }
  0x7b   :  { %v552_v7 = vpop.eup %551 }
  0x7c   :  { %446 = vst [vmem:[#allocation2 + $0x70] sm:$0xff] %v430_v6  ;;  %v431_v39 = vmul.f32 %v552_v7, %v383_v46 }
  0x7e   :  { %447 = vst [vmem:[#allocation2 + $0x78] sm:$0xff] %v431_v39 }
  0x7f   :  { %564 = shalt.err (!%p561_p4)
}
  0x80   :  { %s576_s16 = smov 128   ;;  %s577_s17 = smov 8  }
  0x81   :  { %459 = dma.vmem_to_hbm [thread:$0]  %s454_s14, 2048, %s1082_s10, [#allocation3], %s576_s16, %s576_s16, %s577_s17  }
  0x82   :  { %573 = dma.done.wait [#allocation3], 2048  }
  0x83   :  { %574 = vsyncadd [#allocation3], 4294965248 }
  0x84   :  { %463 = vsyncpa [#allocation3], 1 }

// kernel: a_call__.8
= control target key start
LH: loop header
LB: loop body
LE: loop exit
PB: predicated region body
PF: predicated region fallthrough
CT: control target
= control target key end

     0   :  { %s2907_s1 = inlined_call_operand.vmem [shape: bf16[1152,128], index: 1, kind: input, shape index: {}]   ;;  %s2908_s0 = inlined_call_operand.vmem [shape: bf16[128,1152], index: 0, kind: input, shape index: {}]   ;;  %s2909_s3 = inlined_call_operand.vmem [shape: f32[1,128], index: 3, kind: output, shape index: {1}]   ;;  %s2910_s4 = inlined_call_operand.vmem [shape: f32[1,128], index: 4, kind: output, shape index: {2}]   ;;  %s2911_s2 = inlined_call_operand.vmem [shape: f32[128,128], index: 2, kind: output, shape index: {0}]  }
   0x1   :  { %v2087_v0 = vld [vmem:[%s2907_s1 + $0x78] sm:$0xff]   ;;  %v2091_v4 = vld [vmem:[%s2907_s1 + $0x70] sm:$0xff]   ;;  %v2095_v8 = vld [vmem:[%s2907_s1 + $0x68] sm:$0xff]  }
   0x2   :  { %v2088_v1 = vld [vmem:[%s2907_s1 + $0xf8] sm:$0xff]   ;;  %1766 = vmatprep.subr.bf16.mxu0 %v2087_v0  ;;  %v2092_v5 = vld [vmem:[%s2907_s1 + $0xf0] sm:$0xff]   ;;  %v2096_v9 = vld [vmem:[%s2907_s1 + $0xe8] sm:$0xff]  }
   0x3   :  { %v2089_v2 = vld [vmem:[%s2907_s1 + $0x38] sm:$0xff]   ;;  %1830 = vmatprep.subr.bf16.mxu1 %v2088_v1  ;;  %v2093_v6 = vld [vmem:[%s2907_s1 + $0x30] sm:$0xff]   ;;  %v2097_v10 = vld [vmem:[%s2907_s1 + $0x28] sm:$0xff]  }
   0x4   :  { %v2090_v3 = vld [vmem:[%s2907_s1 + $0xb8] sm:$0xff]   ;;  %1767 = vmatpush3.bf16.msra.mxu0 %v2089_v2  ;;  %v2094_v7 = vld [vmem:[%s2907_s1 + $0xb0] sm:$0xff]   ;;  %v2098_v11 = vld [vmem:[%s2907_s1 + $0xa8] sm:$0xff]  }
   0x5   :  { %1831 = vmatpush3.bf16.msra.mxu1 %v2090_v3  ;;  %1768 = vmatprep.subr.bf16.mxu0 %v2091_v4  ;;  %v2099_v12 = vld [vmem:[%s2907_s1 + $0x60] sm:$0xff]   ;;  %v2103_v16 = vld [vmem:[%s2907_s1 + $0x58] sm:$0xff]   ;;  %v2107_v20 = vld [vmem:[%s2907_s1 + $0x50] sm:$0xff]  }
   0x6   :  { %1832 = vmatprep.subr.bf16.mxu1 %v2092_v5  ;;  %v2100_v13 = vld [vmem:[%s2907_s1 + $0xe0] sm:$0xff]   ;;  %v2104_v17 = vld [vmem:[%s2907_s1 + $0xd8] sm:$0xff]   ;;  %v2108_v21 = vld [vmem:[%s2907_s1 + $0xd0] sm:$0xff]  }
   0x7   :  { %v2101_v14 = vld [vmem:[%s2907_s1 + $0x20] sm:$0xff]   ;;  %v2105_v18 = vld [vmem:[%s2907_s1 + $0x18] sm:$0xff]   ;;  %v2109_v22 = vld [vmem:[%s2907_s1 + $0x10] sm:$0xff]  }
   0x8   :  { %1769 = vmatpush3.bf16.msra.mxu0 %v2093_v6  ;;  %v2102_v15 = vld [vmem:[%s2907_s1 + $0xa0] sm:$0xff]   ;;  %v2106_v19 = vld [vmem:[%s2907_s1 + $0x98] sm:$0xff]   ;;  %v2110_v23 = vld [vmem:[%s2907_s1 + $0x90] sm:$0xff]  }
   0x9   :  { %1833 = vmatpush3.bf16.msra.mxu1 %v2094_v7  ;;  %1770 = vmatprep.subr.bf16.mxu0 %v2095_v8  ;;  %v2111_v24 = vld [vmem:[%s2907_s1 + $0x48] sm:$0xff]   ;;  %v2115_v28 = vld [vmem:[%s2907_s1 + $0x40] sm:$0xff]   ;;  %v2125_v36 = vld [vmem:[%s2907_s1 + $0x178] sm:$0xff]  }
   0xa   :  { %1834 = vmatprep.subr.bf16.mxu1 %v2096_v9  ;;  %v2112_v25 = vld [vmem:[%s2907_s1 + $0xc8] sm:$0xff]   ;;  %v2116_v29 = vld [vmem:[%s2907_s1 + $0xc0] sm:$0xff]   ;;  %v2126_v37 = vld [vmem:[%s2907_s1 + $0x138] sm:$0xff]  }
   0xb   :  { %v2113_v26 = vld [vmem:[%s2907_s1 + $0x8] sm:$0xff]   ;;  %v2117_v30 = vld [vmem:[%s2907_s1] sm:$0xff]   ;;  %v2129_v39 = vld [vmem:[%s2908_s0 + $0x54] ss:$36 sps:$4 sm:$0xff]  }
   0xc   :  { %1771 = vmatpush3.bf16.msra.mxu0 %v2097_v10  ;;  %v2114_v27 = vld [vmem:[%s2907_s1 + $0x88] sm:$0xff]   ;;  %v2118_v31 = vld [vmem:[%s2907_s1 + $0x80] sm:$0xff]   ;;  %v2132_v41 = vld [vmem:[%s2908_s0 + $0x50] ss:$36 sps:$4 sm:$0xff]  }
   0xd   :  { %1835 = vmatpush3.bf16.msra.mxu1 %v2098_v11  ;;  %1772 = vmatprep.subr.bf16.mxu0 %v2099_v12  ;;  %v2119_v32 = vld [vmem:[%s2908_s0] ss:$36 sps:$4 sm:$0xff]   ;;  %v2122_v34 = vld [vmem:[%s2908_s0 + $0x8] ss:$36 sps:$4 sm:$0xff]   ;;  %v2133_v42 = vld [vmem:[%s2907_s1 + $0x170] sm:$0xff]  }
   0xe   :  { %1836 = vmatprep.subr.bf16.mxu1 %v2100_v13  ;;  %v2121_v33 = vld [vmem:[%s2908_s0 + $0x4] ss:$36 sps:$4 sm:$0xff]   ;;  %v2124_v35 = vld [vmem:[%s2908_s0 + $0xc] ss:$36 sps:$4 sm:$0xff]   ;;  %v2135_v44 = vld [vmem:[%s2908_s0 + $0x94] ss:$36 sps:$4 sm:$0xff]  }
   0xf   :  { %1071 = vmatprep.mubr.bf16.mxu0 %v2121_v33  ;;  %1168 = vmatprep.mubr.bf16.mxu1 %v2124_v35  ;;  %v2127_v38 = vld [vmem:[%s2908_s0 + $0x4c] ss:$36 sps:$4 sm:$0xff]   ;;  %v2137_v45 = vld [vmem:[%s2908_s0 + $0x9c] ss:$36 sps:$4 sm:$0xff]   ;;  %v2147_v53 = vld [vmem:[%s2908_s0 + $0xe4] ss:$36 sps:$4 sm:$0xff]  }
  0x10   :  { %1773 = vmatpush3.bf16.msra.mxu0 %v2101_v14  ;;  %v2131_v40 = vld [vmem:[%s2908_s0 + $0x48] ss:$36 sps:$4 sm:$0xff]   ;;  %v2134_v43 = vld [vmem:[%s2907_s1 + $0x130] sm:$0xff]   ;;  %v2142_v47 = vld [vmem:[%s2907_s1 + $0x1f8] sm:$0xff]  }
  0x11   :  { %1837 = vmatpush3.bf16.msra.mxu1 %v2102_v15  ;;  %1774 = vmatprep.subr.bf16.mxu0 %v2103_v16  ;;  %v2141_v46 = vld [vmem:[%s2907_s1 + $0x168] sm:$0xff]   ;;  %v2139_v48 = vld [vmem:[%s2908_s0 + $0x90] ss:$36 sps:$4 sm:$0xff]   ;;  %v2144_v50 = vld [vmem:[%s2907_s1 + $0x1b8] sm:$0xff]  }
  0x12   :  { %1838 = vmatprep.subr.bf16.mxu1 %v2104_v17  ;;  %v2143_v49 = vld [vmem:[%s2907_s1 + $0x128] sm:$0xff]   ;;  %v2140_v51 = vld [vmem:[%s2908_s0 + $0x98] ss:$36 sps:$4 sm:$0xff]   ;;  %v2151_v54 = vld [vmem:[%s2907_s1 + $0x160] sm:$0xff]  }
  0x13   :  { %v2145_v52 = vld [vmem:[%s2908_s0 + $0xdc] ss:$36 sps:$4 sm:$0xff]   ;;  %v2152_v55 = vld [vmem:[%s2907_s1 + $0x1f0] sm:$0xff]   ;;  %v2155_v60 = vld [vmem:[%s2908_s0 + $0x124] ss:$36 sps:$4 sm:$0xff]  }
  0x14   :  { %1775 = vmatpush3.bf16.msra.mxu0 %v2105_v18  ;;  %v2153_v56 = vld [vmem:[%s2907_s1 + $0x120] sm:$0xff]   ;;  %v2154_v57 = vld [vmem:[%s2907_s1 + $0x1b0] sm:$0xff]   ;;  %v2149_v58 = vld [vmem:[%s2908_s0 + $0xd8] ss:$36 sps:$4 sm:$0xff]  }
  0x15   :  { %1839 = vmatpush3.bf16.msra.mxu1 %v2106_v19  ;;  %1776 = vmatprep.subr.bf16.mxu0 %v2107_v20  ;;  %v2150_v59 = vld [vmem:[%s2908_s0 + $0xe0] ss:$36 sps:$4 sm:$0xff]   ;;  %v2157_v61 = vld [vmem:[%s2908_s0 + $0x12c] ss:$36 sps:$4 sm:$0xff]   ;;  %v2161_v62 = vld [vmem:[%s2907_s1 + $0x158] sm:$0xff]  }
  0x16   :  { %1840 = vmatprep.subr.bf16.mxu1 %v2108_v21  ;;  %v2162_v63 = vld [vmem:[%s2907_s1 + $0x1e8] sm:$0xff]   ;;  %v2163_v0 = vld [vmem:[%s2907_s1 + $0x118] sm:$0xff]   ;;  %v2159_v2 = vld [vmem:[%s2908_s0 + $0x120] ss:$36 sps:$4 sm:$0xff]  }
  0x17   :  { %v2164_v1 = vld [vmem:[%s2907_s1 + $0x1a8] sm:$0xff]   ;;  %v2167_v5 = vld [vmem:[%s2908_s0 + $0x174] ss:$36 sps:$4 sm:$0xff]   ;;  %v2172_v7 = vld [vmem:[%s2907_s1 + $0x1e0] sm:$0xff]  }
  0x18   :  { %1777 = vmatpush3.bf16.msra.mxu0 %v2109_v22  ;;  %v2160_v3 = vld [vmem:[%s2908_s0 + $0x128] ss:$36 sps:$4 sm:$0xff]   ;;  %v2171_v6 = vld [vmem:[%s2907_s1 + $0x150] sm:$0xff]   ;;  %v2174_v9 = vld [vmem:[%s2907_s1 + $0x1a0] sm:$0xff]  }
  0x19   :  { %1841 = vmatpush3.bf16.msra.mxu1 %v2110_v23  ;;  %1778 = vmatprep.subr.bf16.mxu0 %v2111_v24  ;;  %v2165_v4 = vld [vmem:[%s2908_s0 + $0x16c] ss:$36 sps:$4 sm:$0xff]   ;;  %v2175_v12 = vld [vmem:[%s2908_s0 + $0x1b4] ss:$36 sps:$4 sm:$0xff]   ;;  %v2177_v14 = vld [vmem:[%s2908_s0 + $0x1bc] ss:$36 sps:$4 sm:$0xff]  }
  0x1a   :  { %1842 = vmatprep.subr.bf16.mxu1 %v2112_v25  ;;  %v2173_v8 = vld [vmem:[%s2907_s1 + $0x110] sm:$0xff]   ;;  %v2169_v10 = vld [vmem:[%s2908_s0 + $0x168] ss:$36 sps:$4 sm:$0xff]   ;;  %v2182_v15 = vld [vmem:[%s2907_s1 + $0x1d8] sm:$0xff]  }
  0x1b   :  { %v2170_v11 = vld [vmem:[%s2908_s0 + $0x170] ss:$36 sps:$4 sm:$0xff]   ;;  %v2181_v13 = vld [vmem:[%s2907_s1 + $0x148] sm:$0xff]   ;;  %v2184_v17 = vld [vmem:[%s2907_s1 + $0x198] sm:$0xff]  }
  0x1c   :  { %1779 = vmatpush3.bf16.msra.mxu0 %v2113_v26  ;;  %v2183_v16 = vld [vmem:[%s2907_s1 + $0x108] sm:$0xff]   ;;  %v2185_v18 = vld [vmem:[%s2907_s1 + $0x1d0] sm:$0xff]   ;;  %v2180_v21 = vld [vmem:[%s2908_s0 + $0x1b8] ss:$36 sps:$4 sm:$0xff]  }
  0x1d   :  { %1843 = vmatpush3.bf16.msra.mxu1 %v2114_v27  ;;  %1780 = vmatprep.subr.bf16.mxu0 %v2115_v28  ;;  %v2186_v19 = vld [vmem:[%s2907_s1 + $0x190] sm:$0xff]   ;;  %v2187_v22 = vld [vmem:[%s2908_s0 + $0x1fc] ss:$36 sps:$4 sm:$0xff]   ;;  %v2189_v23 = vld [vmem:[%s2908_s0 + $0x204] ss:$36 sps:$4 sm:$0xff]  }
  0x1e   :  { %1844 = vmatprep.subr.bf16.mxu1 %v2116_v29  ;;  %v2179_v20 = vld [vmem:[%s2908_s0 + $0x1b0] ss:$36 sps:$4 sm:$0xff]   ;;  %v2193_v24 = vld [vmem:[%s2907_s1 + $0x140] sm:$0xff]   ;;  %v2194_v25 = vld [vmem:[%s2907_s1 + $0x1c8] sm:$0xff]  }
  0x1f   :  { %v2195_v26 = vld [vmem:[%s2907_s1 + $0x100] sm:$0xff]   ;;  %v2196_v27 = vld [vmem:[%s2907_s1 + $0x188] sm:$0xff]   ;;  %v2191_v29 = vld [vmem:[%s2908_s0 + $0x1f8] ss:$36 sps:$4 sm:$0xff]  }
  0x20   :  { %1781 = vmatpush3.bf16.msra.mxu0 %v2117_v30  ;;  %v2197_v28 = vld [vmem:[%s2907_s1 + $0x1c0] sm:$0xff]   ;;  %v2201_v33 = vld [vmem:[%s2908_s0 + $0x14] ss:$36 sps:$4 sm:$0xff]  }
  0x21   :  { %1845 = vmatpush3.bf16.msra.mxu1 %v2118_v31  ;;  %1894 = vmatprep.subr.bf16.mxu0 %v2125_v36  ;;  %v2192_v30 = vld [vmem:[%s2908_s0 + $0x200] ss:$36 sps:$4 sm:$0xff]   ;;  %v2199_v35 = vld [vmem:[%s2908_s0 + $0x10] ss:$36 sps:$4 sm:$0xff]   ;;  %v2202_v36 = vld [vmem:[%s2908_s0 + $0x18] ss:$36 sps:$4 sm:$0xff]  }
  0x22   :  { %1958 = vmatprep.subr.bf16.mxu1 %v2142_v47  ;;  %v2198_v31 = vld [vmem:[%s2907_s1 + $0x180] sm:$0xff]  }
  0x23   :  { %1072 = vmatmul.mubr.bf16.vlgmr.msra.gmra.mxu0 %v2119_v32  ;;  %v2205_v32 = vld [vmem:[%s2907_s1 + $0x238] sm:$0xff]   ;;  %v2217_v47 = vld [vmem:[%s2908_s0 + $0xa0] ss:$36 sps:$4 sm:$0xff]  }
  0x24   :  { %1169 = vmatmul.mubr.bf16.vlgmr.msra.gmra.mxu1 %v2122_v34  ;;  %1895 = vmatpush3.bf16.msra.mxu0 %v2126_v37  ;;  %v2204_v34 = vld [vmem:[%s2908_s0 + $0x1c] ss:$36 sps:$4 sm:$0xff]  }
  0x25   :  { %1079 = vmatprep.mubr.bf16.mxu0 %v2127_v38  ;;  %1176 = vmatprep.mubr.bf16.mxu1 %v2129_v39  ;;  %v2206_v37 = vld [vmem:[%s2908_s0 + $0x5c] ss:$36 sps:$4 sm:$0xff]   ;;  %v2208_v38 = vld [vmem:[%s2908_s0 + $0x64] ss:$36 sps:$4 sm:$0xff]   ;;  %v2212_v39 = vld [vmem:[%s2907_s1 + $0x230] sm:$0xff]  }
  0x26   :  { %1896 = vmatprep.subr.bf16.mxu0 %v2133_v42  ;;  %1959 = vmatpush3.bf16.msra.mxu1 %v2144_v50  ;;  %v2211_v42 = vld [vmem:[%s2908_s0 + $0x60] ss:$36 sps:$4 sm:$0xff]   ;;  %v2222_v50 = vld [vmem:[%s2908_s0 + $0xf4] ss:$36 sps:$4 sm:$0xff]  }
  0x27   :  { %1960 = vmatprep.subr.bf16.mxu1 %v2152_v55  ;;  %v2227_v55 = vld [vmem:[%s2908_s0 + $0x134] ss:$36 sps:$4 sm:$0xff]  }
  0x28   :  { %1897 = vmatpush3.bf16.msra.mxu0 %v2134_v43  ;;  %v2213_v43 = vld [vmem:[%s2908_s0 + $0xa4] ss:$36 sps:$4 sm:$0xff]  }
  0x29   :  { %1898 = vmatprep.subr.bf16.mxu0 %v2141_v46  ;;  %v2233_v46 = vld [vmem:[%s2907_s1 + $0x218] sm:$0xff]  }
  0x2a   :  { %1961 = vmatpush3.bf16.msra.mxu1 %v2154_v57  ;;  %v2254_v57 = vld [vmem:[%s2907_s1 + $0x200] sm:$0xff]  }
  0x2b   :  { %1080 = vmatmul.mubr.bf16.gmra.mxu0 %v2131_v40  ;;  %1962 = vmatprep.subr.bf16.mxu1 %v2162_v63  ;;  %v2219_v40 = vld [vmem:[%s2907_s1 + $0x228] sm:$0xff]   ;;  %v2239_v63 = vld [vmem:[%s2908_s0 + $0x180] ss:$36 sps:$4 sm:$0xff]  }
  0x2c   :  { %1177 = vmatmul.mubr.bf16.gmra.mxu1 %v2132_v41  ;;  %1087 = vmatprep.mubr.bf16.mxu0 %v2135_v44  ;;  %v2210_v41 = vld [vmem:[%s2908_s0 + $0x58] ss:$36 sps:$4 sm:$0xff]   ;;  %v2215_v44 = vld [vmem:[%s2908_s0 + $0xac] ss:$36 sps:$4 sm:$0xff]  }
  0x2d   :  { %1184 = vmatprep.mubr.bf16.mxu1 %v2137_v45  ;;  %1899 = vmatpush3.bf16.msra.mxu0 %v2143_v49  ;;  %v2226_v45 = vld [vmem:[%s2907_s1 + $0x220] sm:$0xff]   ;;  %v2220_v49 = vld [vmem:[%s2908_s0 + $0xec] ss:$36 sps:$4 sm:$0xff]  }
  0x2e   :  { %1900 = vmatprep.subr.bf16.mxu0 %v2151_v54  ;;  %1963 = vmatpush3.bf16.msra.mxu1 %v2164_v1  ;;  %v2225_v54 = vld [vmem:[%s2908_s0 + $0xf0] ss:$36 sps:$4 sm:$0xff]  }
  0x2f   :  { %1964 = vmatprep.subr.bf16.mxu1 %v2172_v7  ;;  %v2243_v1 = vld [vmem:[%s2908_s0 + $0x1cc] ss:$36 sps:$4 sm:$0xff]  }
  0x30   :  { %v2253_v7 = vld [vmem:[%s2908_s0 + $0x210] ss:$36 sps:$4 sm:$0xff]  }
  0x31   :  { %1901 = vmatpush3.bf16.msra.mxu0 %v2153_v56  ;;  %v2229_v56 = vld [vmem:[%s2908_s0 + $0x13c] ss:$36 sps:$4 sm:$0xff]  }
  0x32   :  { %1902 = vmatprep.subr.bf16.mxu0 %v2161_v62  ;;  %1965 = vmatpush3.bf16.msra.mxu1 %v2174_v9  ;;  %v2238_v62 = vld [vmem:[%s2908_s0 + $0x178] ss:$36 sps:$4 sm:$0xff]   ;;  %v2256_v9 = vld [vmem:[%s2908_s0 + $0x140] ss:$36 sps:$4 sm:$0xff]  }
  0x33   :  { %1088 = vmatmul.mubr.bf16.gmra.mxu0 %v2139_v48  ;;  %1966 = vmatprep.subr.bf16.mxu1 %v2182_v15  ;;  %v2218_v48 = vld [vmem:[%s2908_s0 + $0xa8] ss:$36 sps:$4 sm:$0xff]   ;;  %v2262_v15 = vld [vmem:[%s2908_s0 + $0x218] ss:$36 sps:$4 sm:$0xff]  }
  0x34   :  { %1185 = vmatmul.mubr.bf16.gmra.mxu1 %v2140_v51  ;;  %1095 = vmatprep.mubr.bf16.mxu0 %v2145_v52  ;;  %v2240_v51 = vld [vmem:[%s2907_s1 + $0x210] sm:$0xff]   ;;  %v2224_v52 = vld [vmem:[%s2908_s0 + $0xe8] ss:$36 sps:$4 sm:$0xff]  }
  0x35   :  { %1192 = vmatprep.mubr.bf16.mxu1 %v2147_v53  ;;  %1903 = vmatpush3.bf16.msra.mxu0 %v2163_v0  ;;  %v2247_v53 = vld [vmem:[%s2907_s1 + $0x208] sm:$0xff]  }
  0x36   :  { %1904 = vmatprep.subr.bf16.mxu0 %v2171_v6  ;;  %1967 = vmatpush3.bf16.msra.mxu1 %v2184_v17  ;;  %v2241_v0 = vld [vmem:[%s2908_s0 + $0x1c4] ss:$36 sps:$4 sm:$0xff]  }
  0x37   :  { %1968 = vmatprep.subr.bf16.mxu1 %v2185_v18  ;;  %v2252_v6 = vld [vmem:[%s2908_s0 + $0x208] ss:$36 sps:$4 sm:$0xff]  }
  0x39   :  { %1905 = vmatpush3.bf16.msra.mxu0 %v2173_v8  ;;  %v2255_v8 = vld [vmem:[%s2908_s0 + $0x20] ss:$36 sps:$4 sm:$0xff]  }
  0x3a   :  { %1906 = vmatprep.subr.bf16.mxu0 %v2181_v13  ;;  %1969 = vmatpush3.bf16.msra.mxu1 %v2186_v19  ;;  %v2260_v13 = vld [vmem:[%s2908_s0 + $0x1d0] ss:$36 sps:$4 sm:$0xff]  }
  0x3b   :  { %1096 = vmatmul.mubr.bf16.gmra.mxu0 %v2149_v58  ;;  %1970 = vmatprep.subr.bf16.mxu1 %v2194_v25  ;;  %v2231_v58 = vld [vmem:[%s2908_s0 + $0x130] ss:$36 sps:$4 sm:$0xff]  }
  0x3c   :  { %1193 = vmatmul.mubr.bf16.gmra.mxu1 %v2150_v59  ;;  %1103 = vmatprep.mubr.bf16.mxu0 %v2155_v60  ;;  %v2232_v59 = vld [vmem:[%s2908_s0 + $0x138] ss:$36 sps:$4 sm:$0xff]  }
  0x3d   :  { %1200 = vmatprep.mubr.bf16.mxu1 %v2157_v61  ;;  %1907 = vmatpush3.bf16.msra.mxu0 %v2183_v16  ;;  %v2234_v60 = vld [vmem:[%s2908_s0 + $0x17c] ss:$36 sps:$4 sm:$0xff]   ;;  %v2236_v61 = vld [vmem:[%s2908_s0 + $0x184] ss:$36 sps:$4 sm:$0xff]  }
  0x3e   :  { %1908 = vmatprep.subr.bf16.mxu0 %v2193_v24  ;;  %1971 = vmatpush3.bf16.msra.mxu1 %v2196_v27 }
  0x3f   :  { %1972 = vmatprep.subr.bf16.mxu1 %v2197_v28 }
  0x41   :  { %1909 = vmatpush3.bf16.msra.mxu0 %v2195_v26 }
  0x42   :  { %2038 = vmatprep.subr.bf16.mxu0 %v2205_v32  ;;  %1973 = vmatpush3.bf16.msra.mxu1 %v2198_v31 }
  0x43   :  { %1104 = vmatmul.mubr.bf16.gmra.mxu0 %v2159_v2  ;;  %2070 = vmatprep.subr.bf16.mxu1 %v2205_v32  ;;  %v2245_v2 = vld [vmem:[%s2908_s0 + $0x1c0] ss:$36 sps:$4 sm:$0xff]  }
  0x44   :  { %1201 = vmatmul.mubr.bf16.gmra.mxu1 %v2160_v3  ;;  %1111 = vmatprep.mubr.bf16.mxu0 %v2165_v4  ;;  %v2246_v3 = vld [vmem:[%s2908_s0 + $0x1c8] ss:$36 sps:$4 sm:$0xff]  }
  0x45   :  { %1208 = vmatprep.mubr.bf16.mxu1 %v2167_v5  ;;  %v2248_v4 = vld [vmem:[%s2908_s0 + $0x20c] ss:$36 sps:$4 sm:$0xff]   ;;  %v2250_v5 = vld [vmem:[%s2908_s0 + $0x214] ss:$36 sps:$4 sm:$0xff]  }
  0x4b   :  { %1112 = vmatmul.mubr.bf16.gmra.mxu0 %v2169_v10  ;;  %v2257_v10 = vld [vmem:[%s2908_s0 + $0x68] ss:$36 sps:$4 sm:$0xff]  }
  0x4c   :  { %1209 = vmatmul.mubr.bf16.gmra.mxu1 %v2170_v11  ;;  %1119 = vmatprep.mubr.bf16.mxu0 %v2175_v12  ;;  %v2258_v11 = vld [vmem:[%s2908_s0 + $0x188] ss:$36 sps:$4 sm:$0xff]   ;;  %v2259_v12 = vld [vmem:[%s2908_s0 + $0xb0] ss:$36 sps:$4 sm:$0xff]  }
  0x4d   :  { %1216 = vmatprep.mubr.bf16.mxu1 %v2177_v14  ;;  %v2261_v14 = vld [vmem:[%s2908_s0 + $0xf8] ss:$36 sps:$4 sm:$0xff]  }
  0x53   :  { %1120 = vmatmul.mubr.bf16.gmra.mxu0 %v2179_v20 }
  0x54   :  { %1217 = vmatmul.mubr.bf16.gmra.mxu1 %v2180_v21  ;;  %1127 = vmatprep.mubr.bf16.mxu0 %v2187_v22 }
  0x55   :  { %1224 = vmatprep.mubr.bf16.mxu1 %v2189_v23 }
  0x5b   :  { %1128 = vmatmul.mubr.bf16.gmra.mxu0 %v2191_v29 }
  0x5c   :  { %1225 = vmatmul.mubr.bf16.gmra.mxu1 %v2192_v30  ;;  %1265 = vmatprep.mubr.bf16.mxu0 %v2201_v33 }
  0x5d   :  { %1362 = vmatprep.mubr.bf16.mxu1 %v2204_v34 }
  0x63   :  { %1266 = vmatmul.mubr.bf16.vlgmr.msra.gmra.mxu0 %v2199_v35 }
  0x64   :  { %1363 = vmatmul.mubr.bf16.vlgmr.msra.gmra.mxu1 %v2202_v36  ;;  %2039 = vmatpush3.bf16.msra.mxu0 %v2205_v32 }
  0x65   :  { %1273 = vmatprep.mubr.bf16.mxu0 %v2206_v37  ;;  %1370 = vmatprep.mubr.bf16.mxu1 %v2208_v38 }
  0x66   :  { %2040 = vmatprep.subr.bf16.mxu0 %v2212_v39  ;;  %2078 = vmatpush3.bf16.msra.mxu1 %v2205_v32 }
  0x67   :  { %2071 = vmatprep.subr.bf16.mxu1 %v2212_v39 }
  0x68   :  { %2041 = vmatpush3.bf16.msra.mxu0 %v2212_v39 }
  0x69   :  { %2042 = vmatprep.subr.bf16.mxu0 %v2219_v40 }
  0x6a   :  { %2079 = vmatpush3.bf16.msra.mxu1 %v2212_v39 }
  0x6b   :  { %1274 = vmatmul.mubr.bf16.gmra.mxu0 %v2210_v41  ;;  %2072 = vmatprep.subr.bf16.mxu1 %v2219_v40 }
  0x6c   :  { %1371 = vmatmul.mubr.bf16.gmra.mxu1 %v2211_v42  ;;  %1281 = vmatprep.mubr.bf16.mxu0 %v2213_v43 }
  0x6d   :  { %1378 = vmatprep.mubr.bf16.mxu1 %v2215_v44  ;;  %2043 = vmatpush3.bf16.msra.mxu0 %v2219_v40 }
  0x6e   :  { %2044 = vmatprep.subr.bf16.mxu0 %v2226_v45  ;;  %2080 = vmatpush3.bf16.msra.mxu1 %v2219_v40 }
  0x6f   :  { %2073 = vmatprep.subr.bf16.mxu1 %v2226_v45 }
  0x71   :  { %2045 = vmatpush3.bf16.msra.mxu0 %v2226_v45 }
  0x72   :  { %2046 = vmatprep.subr.bf16.mxu0 %v2233_v46  ;;  %2081 = vmatpush3.bf16.msra.mxu1 %v2226_v45 }
  0x73   :  { %1282 = vmatmul.mubr.bf16.gmra.mxu0 %v2217_v47  ;;  %2074 = vmatprep.subr.bf16.mxu1 %v2233_v46 }
  0x74   :  { %1379 = vmatmul.mubr.bf16.gmra.mxu1 %v2218_v48  ;;  %1289 = vmatprep.mubr.bf16.mxu0 %v2220_v49 }
  0x75   :  { %1386 = vmatprep.mubr.bf16.mxu1 %v2222_v50  ;;  %2047 = vmatpush3.bf16.msra.mxu0 %v2233_v46 }
  0x76   :  { %2048 = vmatprep.subr.bf16.mxu0 %v2240_v51  ;;  %2082 = vmatpush3.bf16.msra.mxu1 %v2233_v46 }
  0x77   :  { %2075 = vmatprep.subr.bf16.mxu1 %v2240_v51 }
  0x79   :  { %2049 = vmatpush3.bf16.msra.mxu0 %v2240_v51 }
  0x7a   :  { %2050 = vmatprep.subr.bf16.mxu0 %v2247_v53  ;;  %2083 = vmatpush3.bf16.msra.mxu1 %v2240_v51 }
  0x7b   :  { %1290 = vmatmul.mubr.bf16.gmra.mxu0 %v2224_v52  ;;  %2076 = vmatprep.subr.bf16.mxu1 %v2247_v53 }
  0x7c   :  { %1387 = vmatmul.mubr.bf16.gmra.mxu1 %v2225_v54  ;;  %1297 = vmatprep.mubr.bf16.mxu0 %v2227_v55 }
  0x7d   :  { %1394 = vmatprep.mubr.bf16.mxu1 %v2229_v56  ;;  %2051 = vmatpush3.bf16.msra.mxu0 %v2247_v53 }
  0x7e   :  { %2052 = vmatprep.subr.bf16.mxu0 %v2254_v57  ;;  %2084 = vmatpush3.bf16.msra.mxu1 %v2247_v53 }
  0x7f   :  { %2077 = vmatprep.subr.bf16.mxu1 %v2254_v57 }
  0x81   :  { %2053 = vmatpush3.bf16.msra.mxu0 %v2254_v57 }
  0x82   :  { %2085 = vmatpush3.bf16.msra.mxu1 %v2254_v57 }
  0x83   :  { %1298 = vmatmul.mubr.bf16.gmra.mxu0 %v2231_v58 }
  0x84   :  { %1395 = vmatmul.mubr.bf16.gmra.mxu1 %v2232_v59  ;;  %1305 = vmatprep.mubr.bf16.mxu0 %v2234_v60 }
  0x85   :  { %1402 = vmatprep.mubr.bf16.mxu1 %v2236_v61  ;;  %v2263_v61 = vmov 0.0  }
  0x86   :  { %1544 = vst [vmem:[%s2909_s3] sm:$0x1] %v2263_v61  ;;  %1545 = vst [vmem:[%s2910_s4] sm:$0x1] %v2263_v61 }
  0x8b   :  { %1306 = vmatmul.mubr.bf16.gmra.mxu0 %v2238_v62 }
  0x8c   :  { %1403 = vmatmul.mubr.bf16.gmra.mxu1 %v2239_v63  ;;  %1313 = vmatprep.mubr.bf16.mxu0 %v2241_v0 }
  0x8d   :  { %1410 = vmatprep.mubr.bf16.mxu1 %v2243_v1 }
  0x93   :  { %1314 = vmatmul.mubr.bf16.gmra.mxu0 %v2245_v2 }
  0x94   :  { %1411 = vmatmul.mubr.bf16.gmra.mxu1 %v2246_v3  ;;  %1321 = vmatprep.mubr.bf16.mxu0 %v2248_v4 }
  0x95   :  { %1418 = vmatprep.mubr.bf16.mxu1 %v2250_v5 }
  0x9b   :  { %1322 = vmatmul.mubr.bf16.gmra.mxu0 %v2252_v6 }
  0x9c   :  { %1419 = vmatmul.mubr.bf16.gmra.mxu1 %v2253_v7  ;;  %2054 = vmatprep.mubr.bf16.mxu0 %v2255_v8 }
  0x9d   :  { %2062 = vmatprep.mubr.bf16.mxu1 %v2256_v9 }
  0xa3   :  { %2055 = vmatmul.mubr.bf16.vlgmr.msra.gmra.mxu0 %v2257_v10 }
  0xa4   :  { %2063 = vmatmul.mubr.bf16.vlgmr.msra.gmra.mxu1 %v2258_v11  ;;  %2058 = vmatprep.mubr.bf16.mxu0 %v2259_v12 }
  0xa5   :  { %2066 = vmatprep.mubr.bf16.mxu1 %v2260_v13 }
  0xab   :  { %2059 = vmatmul.mubr.bf16.gmra.mxu0 %v2261_v14 }
  0xac   :  { %2067 = vmatmul.mubr.bf16.gmra.mxu1 %v2262_v15 }
  0xe3   :  { %v1782_v16 = vpop.f32.mrf.mxu0 }
  0xe4   :  { %v1846_v17 = vpop.f32.mrf.mxu1 }
  0xe5   :  { %v1783_v18 = vpop.f32.mrf.mxu0 }
  0xe6   :  { %v1784_v19 = vadd.f32 %v1783_v18, %v1782_v16  ;;  %v1847_v20 = vpop.f32.mrf.mxu1 }
  0xe7   :  { %v1848_v21 = vadd.f32 %v1847_v20, %v1846_v17  ;;  %v1785_v22 = vpop.f32.mrf.mxu0 }
  0xe8   :  { %v1849_v23 = vpop.f32.mrf.mxu1 }
  0xe9   :  { %v2721_v24 = vadd.f32 %v1848_v21, %v1784_v19  ;;  %v1786_v25 = vpop.f32.mrf.mxu0 }
  0xea   :  { %v1787_v26 = vadd.f32 %v1786_v25, %v1785_v22  ;;  %v1850_v27 = vpop.f32.mrf.mxu1 }
  0xeb   :  { %v1851_v28 = vadd.f32 %v1850_v27, %v1849_v23  ;;  %v1788_v29 = vpop.f32.mrf.mxu0 }
  0xec   :  { %v1852_v30 = vpop.f32.mrf.mxu1 }
  0xed   :  { %v2723_v31 = vadd.f32 %v1851_v28, %v1787_v26  ;;  %v1789_v32 = vpop.f32.mrf.mxu0 }
  0xee   :  { %v1790_v33 = vadd.f32 %v1789_v32, %v1788_v29  ;;  %v1853_v34 = vpop.f32.mrf.mxu1 }
  0xef   :  { %v1854_v35 = vadd.f32 %v1853_v34, %v1852_v30  ;;  %v1791_v36 = vpop.f32.mrf.mxu0 }
  0xf0   :  { %v1855_v37 = vpop.f32.mrf.mxu1 }
  0xf1   :  { %v2725_v38 = vadd.f32 %v1854_v35, %v1790_v33  ;;  %v1792_v39 = vpop.f32.mrf.mxu0 }
  0xf2   :  { %v1793_v40 = vadd.f32 %v1792_v39, %v1791_v36  ;;  %v1856_v41 = vpop.f32.mrf.mxu1 }
  0xf3   :  { %v1857_v42 = vadd.f32 %v1856_v41, %v1855_v37  ;;  %v1794_v43 = vpop.f32.mrf.mxu0 }
  0xf4   :  { %v1858_v44 = vpop.f32.mrf.mxu1 }
  0xf5   :  { %v2727_v45 = vadd.f32 %v1857_v42, %v1793_v40  ;;  %v1795_v46 = vpop.f32.mrf.mxu0 }
  0xf6   :  { %v1796_v47 = vadd.f32 %v1795_v46, %v1794_v43  ;;  %v1859_v48 = vpop.f32.mrf.mxu1 }
  0xf7   :  { %v1860_v49 = vadd.f32 %v1859_v48, %v1858_v44  ;;  %v1797_v50 = vpop.f32.mrf.mxu0 }
  0xf8   :  { %v1861_v51 = vpop.f32.mrf.mxu1 }
  0xf9   :  { %v2729_v52 = vadd.f32 %v1860_v49, %v1796_v47  ;;  %v1798_v53 = vpop.f32.mrf.mxu0 }
  0xfa   :  { %v1799_v54 = vadd.f32 %v1798_v53, %v1797_v50  ;;  %v1862_v55 = vpop.f32.mrf.mxu1 }
  0xfb   :  { %v1863_v56 = vadd.f32 %v1862_v55, %v1861_v51  ;;  %v1800_v57 = vpop.f32.mrf.mxu0 }
  0xfc   :  { %v1864_v58 = vpop.f32.mrf.mxu1 }
  0xfd   :  { %v2731_v59 = vadd.f32 %v1863_v56, %v1799_v54  ;;  %v1801_v60 = vpop.f32.mrf.mxu0 }
  0xfe   :  { %v1802_v62 = vadd.f32 %v1801_v60, %v1800_v57  ;;  %v1865_v63 = vpop.f32.mrf.mxu1 }
  0xff   :  { %2912 = vst [vmem:[#allocation2_spill] sm:$0xff] %v2731_v59  ;;  %v1866_v0 = vadd.f32 %v1865_v63, %v1864_v58  ;;  %v1803_v1 = vpop.f32.mrf.mxu0 }
 0x100   :  { %v1867_v2 = vpop.f32.mrf.mxu1 }
 0x101   :  { %v2739_v3 = vadd.f32 %v1866_v0, %v1802_v62  ;;  %v1804_v4 = vpop.f32.mrf.mxu0 }
 0x102   :  { %v1805_v5 = vadd.f32 %v1804_v4, %v1803_v1  ;;  %v1868_v6 = vpop.f32.mrf.mxu1 }
 0x103   :  { %2913 = vst [vmem:[#allocation3_spill] sm:$0xff] %v2739_v3  ;;  %v1869_v7 = vadd.f32 %v1868_v6, %v1867_v2  ;;  %v1806_v8 = vpop.f32.mrf.mxu0 }
 0x104   :  { %v1870_v9 = vpop.f32.mrf.mxu1 }
 0x105   :  { %v2741_v10 = vadd.f32 %v1869_v7, %v1805_v5  ;;  %v1807_v11 = vpop.f32.mrf.mxu0 }
 0x106   :  { %v1808_v12 = vadd.f32 %v1807_v11, %v1806_v8  ;;  %v1871_v13 = vpop.f32.mrf.mxu1 }
 0x107   :  { %2914 = vst [vmem:[#allocation4_spill] sm:$0xff] %v2741_v10  ;;  %v1872_v14 = vadd.f32 %v1871_v13, %v1870_v9  ;;  %v1809_v15 = vpop.f32.mrf.mxu0 }
 0x108   :  { %v1873_v16 = vpop.f32.mrf.mxu1 }
 0x109   :  { %v2743_v17 = vadd.f32 %v1872_v14, %v1808_v12  ;;  %v1810_v18 = vpop.f32.mrf.mxu0 }
 0x10a   :  { %v1811_v19 = vadd.f32 %v1810_v18, %v1809_v15  ;;  %v1874_v20 = vpop.f32.mrf.mxu1 }
 0x10b   :  { %v1875_v21 = vadd.f32 %v1874_v20, %v1873_v16  ;;  %v1812_v22 = vpop.f32.mrf.mxu0 }
 0x10c   :  { %v1876_v23 = vpop.f32.mrf.mxu1 }
 0x10d   :  { %v2745_v25 = vadd.f32 %v1875_v21, %v1811_v19  ;;  %v1813_v26 = vpop.f32.mrf.mxu0 }
 0x10e   :  { %v1814_v27 = vadd.f32 %v1813_v26, %v1812_v22  ;;  %v1877_v28 = vpop.f32.mrf.mxu1 }
 0x10f   :  { %2915 = vst [vmem:[#allocation5_spill] sm:$0xff] %v2745_v25  ;;  %v1878_v29 = vadd.f32 %v1877_v28, %v1876_v23  ;;  %v1815_v30 = vpop.f32.mrf.mxu0 }
 0x110   :  { %v1879_v32 = vpop.f32.mrf.mxu1 }
 0x111   :  { %v2747_v33 = vadd.f32 %v1878_v29, %v1814_v27  ;;  %v1816_v34 = vpop.f32.mrf.mxu0 }
 0x112   :  { %v1817_v35 = vadd.f32 %v1816_v34, %v1815_v30  ;;  %v1880_v36 = vpop.f32.mrf.mxu1 }
 0x113   :  { %v1881_v37 = vadd.f32 %v1880_v36, %v1879_v32  ;;  %v1818_v39 = vpop.f32.mrf.mxu0 }
 0x114   :  { %v1882_v40 = vpop.f32.mrf.mxu1 }
 0x115   :  { %v2749_v41 = vadd.f32 %v1881_v37, %v1817_v35  ;;  %v1819_v42 = vpop.f32.mrf.mxu0 }
 0x116   :  { %v1820_v43 = vadd.f32 %v1819_v42, %v1818_v39  ;;  %v1883_v44 = vpop.f32.mrf.mxu1 }
 0x117   :  { %v1884_v46 = vadd.f32 %v1883_v44, %v1882_v40  ;;  %v1821_v47 = vpop.f32.mrf.mxu0 }
 0x118   :  { %v1885_v48 = vpop.f32.mrf.mxu1 }
 0x119   :  { %v2751_v49 = vadd.f32 %v1884_v46, %v1820_v43  ;;  %v1822_v50 = vpop.f32.mrf.mxu0 }
 0x11a   :  { %v1823_v51 = vadd.f32 %v1822_v50, %v1821_v47  ;;  %v1886_v53 = vpop.f32.mrf.mxu1 }
 0x11b   :  { %2916 = vst [vmem:[#allocation6_spill] sm:$0xff] %v2751_v49  ;;  %v1887_v54 = vadd.f32 %v1886_v53, %v1885_v48  ;;  %v1824_v55 = vpop.f32.mrf.mxu0 }
 0x11c   :  { %v1888_v56 = vpop.f32.mrf.mxu1 }
 0x11d   :  { %v2753_v57 = vadd.f32 %v1887_v54, %v1823_v51  ;;  %v1825_v58 = vpop.f32.mrf.mxu0 }
 0x11e   :  { %v1826_v60 = vadd.f32 %v1825_v58, %v1824_v55  ;;  %v1889_v61 = vpop.f32.mrf.mxu1 }
 0x11f   :  { %2917 = vst [vmem:[#allocation7_spill] sm:$0xff] %v2753_v57  ;;  %v1890_v62 = vadd.f32 %v1889_v61, %v1888_v56  ;;  %v1827_v63 = vpop.f32.mrf.mxu0 }
 0x120   :  { %v1891_v0 = vpop.f32.mrf.mxu1 }
 0x121   :  { %v2755_v1 = vadd.f32 %v1890_v62, %v1826_v60  ;;  %v1828_v2 = vpop.f32.mrf.mxu0 }
 0x122   :  { %v1829_v4 = vadd.f32 %v1828_v2, %v1827_v63  ;;  %v1892_v5 = vpop.f32.mrf.mxu1 }
 0x123   :  { %2918 = vst [vmem:[#allocation8_spill] sm:$0xff] %v2755_v1  ;;  %v1893_v6 = vadd.f32 %v1892_v5, %v1891_v0  ;;  %v1910_v7 = vpop.f32.mrf.mxu0 }
 0x124   :  { %v1974_v8 = vpop.f32.mrf.mxu1 }
 0x125   :  { %v2757_v9 = vadd.f32 %v1893_v6, %v1829_v4  ;;  %v1911_v11 = vpop.f32.mrf.mxu0 }
 0x126   :  { %v1975_v12 = vpop.f32.mrf.mxu1 }
 0x127   :  { %2919 = vst [vmem:[#allocation9_spill] sm:$0xff] %v2757_v9  ;;  %v1913_v13 = vpop.f32.mrf.mxu0  ;;  %v1976_v25 = vadd.f32 %v1975_v12, %v1974_v8 }
 0x128   :  { %v1977_v14 = vpop.f32.mrf.mxu1 }
 0x129   :  { %v1914_v15 = vpop.f32.mrf.mxu0 }
 0x12a   :  { %v1978_v16 = vpop.f32.mrf.mxu1  ;;  %v1915_v1 = vadd.f32 %v1914_v15, %v1913_v13 }
 0x12b   :  { %v1916_v18 = vpop.f32.mrf.mxu0 }
 0x12c   :  { %v1980_v19 = vpop.f32.mrf.mxu1 }
 0x12d   :  { %v1917_v20 = vpop.f32.mrf.mxu0 }
 0x12e   :  { %v1981_v21 = vpop.f32.mrf.mxu1 }
 0x12f   :  { %v1919_v22 = vpop.f32.mrf.mxu0 }
 0x130   :  { %v1983_v23 = vpop.f32.mrf.mxu1 }
 0x131   :  { %v1920_v26 = vpop.f32.mrf.mxu0 }
 0x132   :  { %v1984_v27 = vpop.f32.mrf.mxu1  ;;  %v1921_v10 = vadd.f32 %v1920_v26, %v1919_v22 }
 0x133   :  { %v1922_v28 = vpop.f32.mrf.mxu0 }
 0x134   :  { %v2759_v29 = vpop.f32.mrf.mxu1  ;;  %v1279_v15 = vadd.f32 %v1921_v10, %v2727_v45 }
 0x135   :  { %v1923_v30 = vpop.f32.mrf.mxu0 }
 0x136   :  { %v2761_v32 = vpop.f32.mrf.mxu1 }
 0x137   :  { %v2763_v34 = vpop.f32.mrf.mxu0 }
 0x138   :  { %v2765_v35 = vpop.f32.mrf.mxu1 }
 0x139   :  { %2920 = vst [vmem:[#allocation10_spill] sm:$0xff] %v2765_v35  ;;  %v2767_v36 = vpop.f32.mrf.mxu0 }
 0x13a   :  { %v2769_v37 = vpop.f32.mrf.mxu1 }
 0x13b   :  { %2921 = vst [vmem:[#allocation11_spill] sm:$0xff] %v2769_v37  ;;  %v1928_v39 = vpop.f32.mrf.mxu0  ;;  %v1912_v37 = vadd.f32 %v1911_v11, %v1910_v7  ;;  %v1982_v11 = vadd.f32 %v1981_v21, %v1980_v19  ;;  %v1988_v21 = vadd.f32 %v2761_v32, %v2759_v29 }
 0x13c   :  { %v2771_v40 = vpop.f32.mrf.mxu1 }
 0x13d   :  { %2922 = vst [vmem:[#allocation12_spill] sm:$0xff] %v2771_v40  ;;  %v1929_v42 = vpop.f32.mrf.mxu0  ;;  %v1271_v40 = vadd.f32 %v1915_v1, %v2723_v31 }
 0x13e   :  { %v2773_v43 = vpop.f32.mrf.mxu1 }
 0x13f   :  { %2923 = vst [vmem:[#allocation13_spill] sm:$0xff] %v2773_v43  ;;  %v1931_v44 = vpop.f32.mrf.mxu0 }
 0x140   :  { %v2775_v46 = vpop.f32.mrf.mxu1 }
 0x141   :  { %2924 = vst [vmem:[#allocation14_spill] sm:$0xff] %v2775_v46  ;;  %v1932_v47 = vpop.f32.mrf.mxu0 }
 0x142   :  { %v2777_v48 = vpop.f32.mrf.mxu1 }
 0x143   :  { %2925 = vst [vmem:[#allocation15_spill] sm:$0xff] %v2777_v48  ;;  %v1934_v50 = vpop.f32.mrf.mxu0  ;;  %v1918_v48 = vadd.f32 %v1917_v20, %v1916_v18  ;;  %v1985_v18 = vadd.f32 %v1984_v27, %v1983_v23  ;;  %v1933_v23 = vadd.f32 %v1932_v47, %v1931_v44  ;;  %v2937_v47 = vld [vmem:[#allocation3_spill] sm:$0xff] }
 0x144   :  { %v1998_v51 = vpop.f32.mrf.mxu1 }
 0x145   :  { %v1935_v53 = vpop.f32.mrf.mxu0  ;;  %v1276_v7 = vadd.f32 %v1918_v48, %v2725_v38  ;;  %v1930_v38 = vadd.f32 %v1929_v42, %v1928_v39  ;;  %v1376_v10 = vadd.f32 %v1985_v18, %v1279_v15  ;;  %v2934_v48 = vld [vmem:[#allocation5_spill] sm:$0xff] }
 0x146   :  { %v1999_v54 = vpop.f32.mrf.mxu1  ;;  %v1936_v20 = vadd.f32 %v1935_v53, %v1934_v50  ;;  %v2933_v42 = vld [vmem:[#allocation13_spill] sm:$0xff] }
 0x147   :  { %v1937_v55 = vpop.f32.mrf.mxu0  ;;  %v1373_v31 = vadd.f32 %v1982_v11, %v1276_v7  ;;  %v2000_v19 = vadd.f32 %v1999_v54, %v1998_v51  ;;  %v1292_v53 = vadd.f32 %v1930_v38, %v2937_v47  ;;  %v2942_v7 = vld [vmem:[#allocation10_spill] sm:$0xff]  ;;  %v2943_v11 = vld [vmem:[#allocation11_spill] sm:$0xff] }
 0x148   :  { %v2779_v56 = vpop.f32.mrf.mxu1  ;;  %v1991_v15 = vadd.f32 %v2943_v11, %v2942_v7  ;;  %v2947_v38 = vld [vmem:[#allocation2_spill] sm:$0xff] }
 0x149   :  { %2926 = vst [vmem:[#allocation16_spill] sm:$0xff] %v2779_v56  ;;  %v1938_v58 = vpop.f32.mrf.mxu0  ;;  %v1268_v56 = vadd.f32 %v1912_v37, %v2721_v24 }
 0x14a   :  { %v2781_v60 = vpop.f32.mrf.mxu1  ;;  %v1939_v37 = vadd.f32 %v1938_v58, %v1937_v55  ;;  %v2940_v58 = vld [vmem:[#allocation15_spill] sm:$0xff] }
 0x14b   :  { %2927 = vst [vmem:[#allocation17_spill] sm:$0xff] %v2781_v60  ;;  %v1940_v61 = vpop.f32.mrf.mxu0  ;;  %v1365_v1 = vadd.f32 %v1976_v25, %v1268_v56  ;;  %v1927_v25 = vadd.f32 %v2767_v36, %v2763_v34  ;;  %v2939_v56 = vld [vmem:[#allocation14_spill] sm:$0xff] }
 0x14c   :  { %v2004_v62 = vpop.f32.mrf.mxu1  ;;  %v1303_v50 = vadd.f32 %v1939_v37, %v2934_v48 }
 0x14d   :  { %v1941_v63 = vpop.f32.mrf.mxu0 }
 0x14e   :  { %v2005_v0 = vpop.f32.mrf.mxu1  ;;  %v1942_v43 = vadd.f32 %v1941_v63, %v1940_v61 }
 0x14f   :  { %v1943_v2 = vpop.f32.mrf.mxu0  ;;  %v2006_v8 = vadd.f32 %v2005_v0, %v2004_v62 }
 0x150   :  { %v2007_v4 = vpop.f32.mrf.mxu1  ;;  %v1308_v24 = vadd.f32 %v1942_v43, %v2747_v33  ;;  %v2935_v51 = vld [vmem:[#allocation16_spill] sm:$0xff] }
 0x151   :  { %v1944_v5 = vpop.f32.mrf.mxu0 }
 0x152   :  { %v2008_v6 = vpop.f32.mrf.mxu1  ;;  %v1945_v26 = vadd.f32 %v1944_v5, %v1943_v2  ;;  %v2936_v29 = vld [vmem:[#allocation17_spill] sm:$0xff]  ;;  %v2941_v2 = vld [vmem:[#allocation8_spill] sm:$0xff] }
 0x153   :  { %v1946_v57 = vpop.f32.mrf.mxu0  ;;  %v2009_v33 = vadd.f32 %v2008_v6, %v2007_v4  ;;  %v2003_v32 = vadd.f32 %v2936_v29, %v2935_v51 }
 0x154   :  { %v2783_v9 = vpop.f32.mrf.mxu1  ;;  %v1311_v27 = vadd.f32 %v1945_v26, %v2749_v41 }
 0x155   :  { %2928 = vst [vmem:[#allocation18_spill] sm:$0xff] %v2783_v9  ;;  %v1947_v59 = vpop.f32.mrf.mxu0 }
 0x156   :  { %v2785_v49 = vpop.f32.mrf.mxu1  ;;  %v1948_v54 = vadd.f32 %v1947_v59, %v1946_v57  ;;  %v1408_v0 = vadd.f32 %v2009_v33, %v1311_v27 }
 0x157   :  { %2929 = vst [vmem:[#allocation19_spill] sm:$0xff] %v2785_v49  ;;  %v2787_v35 = vpop.f32.mrf.mxu0  ;;  %v1979_v49 = vadd.f32 %v1978_v16, %v1977_v14  ;;  %v1300_v16 = vadd.f32 %v1936_v20, %v2743_v17  ;;  %v2932_v17 = vld [vmem:[#allocation12_spill] sm:$0xff] }
 0x158   :  { %v2789_v46 = vpop.f32.mrf.mxu1  ;;  %v1994_v43 = vadd.f32 %v2933_v42, %v2932_v17  ;;  %v2949_v17 = vld [vmem:[#allocation7_spill] sm:$0xff] }
 0x159   :  { %2930 = vst [vmem:[#allocation20_spill] sm:$0xff] %v2789_v46  ;;  %v2791_v3 = vpop.f32.mrf.mxu0  ;;  %v1368_v14 = vadd.f32 %v1979_v49, %v1271_v40  ;;  %v1405_v40 = vadd.f32 %v2006_v8, %v1308_v24  ;;  %v1397_v34 = vadd.f32 %v2000_v19, %v1300_v16  ;;  %v1287_v16 = vadd.f32 %v1927_v25, %v2947_v38 }
 0x15a   :  { %v2793_v60 = vpop.f32.mrf.mxu1  ;;  %v1951_v37 = vadd.f32 %v2791_v3, %v2787_v35 }
 0x15b   :  { %2931 = vst [vmem:[#allocation21_spill] sm:$0xff] %v2793_v60  ;;  %v1952_v9 = vpop.f32.mrf.mxu0  ;;  %v1924_v60 = vadd.f32 %v1923_v30, %v1922_v28 }
 0x15c   :  { %v2016_v13 = vpop.f32.mrf.mxu1  ;;  %v2945_v24 = vld [vmem:[#allocation18_spill] sm:$0xff]  ;;  %v1319_v42 = vadd.f32 %v1951_v37, %v2949_v17 }
 0x15d   :  { %v1953_v22 = vpop.f32.mrf.mxu0  ;;  %v1284_v30 = vadd.f32 %v1924_v60, %v2729_v52  ;;  %v1997_v60 = vadd.f32 %v2940_v58, %v2939_v56 }
 0x15e   :  { %v2017_v46 = vpop.f32.mrf.mxu1  ;;  %v1954_v49 = vadd.f32 %v1953_v22, %v1952_v9  ;;  %v2938_v9 = vld [vmem:[#allocation4_spill] sm:$0xff]  ;;  %v1400_v22 = vadd.f32 %v2003_v32, %v1303_v50  ;;  %v2946_v8 = vld [vmem:[#allocation19_spill] sm:$0xff] }
 0x15f   :  { %v1955_v12 = vpop.f32.mrf.mxu0  ;;  %v1295_v36 = vadd.f32 %v1933_v23, %v2938_v9  ;;  %v2018_v5 = vadd.f32 %v2017_v46, %v2016_v13  ;;  %v1381_v46 = vadd.f32 %v1988_v21, %v1284_v30  ;;  %v2944_v13 = vld [vmem:[#allocation6_spill] sm:$0xff]  ;;  %v2948_v23 = vld [vmem:[#allocation9_spill] sm:$0xff]  ;;  %v1384_v9 = vadd.f32 %v1991_v15, %v1287_v16 }
 0x160   :  { %v2019_v61 = vpop.f32.mrf.mxu1  ;;  %v1324_v4 = vadd.f32 %v1954_v49, %v2941_v2  ;;  %v1316_v26 = vadd.f32 %v1948_v54, %v2944_v13 }
 0x161   :  { %v1956_v45 = vpop.f32.mrf.mxu0  ;;  %v1392_v21 = vadd.f32 %v1997_v60, %v1295_v36 }
 0x162   :  { %v2020_v28 = vpop.f32.mrf.mxu1  ;;  %v1957_v59 = vadd.f32 %v1956_v45, %v1955_v12  ;;  %v2012_v12 = vadd.f32 %v2946_v8, %v2945_v24  ;;  %v1421_v30 = vadd.f32 %v2018_v5, %v1324_v4 }
 0x163   :  { %v2056_v39 = vpop.f32.mrf.mxu0  ;;  %v2021_v35 = vadd.f32 %v2020_v28, %v2019_v61  ;;  %v2950_v61 = vld [vmem:[#allocation20_spill] sm:$0xff]  ;;  %v2951_v28 = vld [vmem:[#allocation21_spill] sm:$0xff] }
 0x164   :  { %v1470_v44 = vadd.f32 %v2056_v39, %v1373_v31  ;;  %v2064_v41 = vpop.f32.mrf.mxu1  ;;  %v1327_v3 = vadd.f32 %v1957_v59, %v2948_v23  ;;  %v1413_v51 = vadd.f32 %v2012_v12, %v1316_v26 }
 0x165   :  { %v2813_v52 = vadd.f32 %v2064_v41, %v1405_v40  ;;  %v1461_v55 = vpop.f32.mrf.mxu0 }
 0x166   :  { %1526 = vst [vmem:[%s2911_s2 + $0x10] sm:$0xff] %v1470_v44  ;;  %v1462_v62 = vadd.f32 %v1461_v55, %v1365_v1  ;;  %v1493_v63 = vpop.f32.mrf.mxu1  ;;  %v1573_v29 = vmul.f32 %v1470_v44, %v1470_v44 }
 0x167   :  { %1534 = vst [vmem:[%s2911_s2 + $0x50] sm:$0xff] %v2813_v52  ;;  %v2826_v57 = vadd.f32 %v1493_v63, %v1397_v34  ;;  %v2057_v6 = vpop.f32.mrf.mxu0  ;;  %v1424_v34 = vadd.f32 %v2021_v35, %v1327_v3 }
 0x168   :  { %1524 = vst [vmem:[%s2911_s2] sm:$0xff] %v1462_v62  ;;  %v1473_v18 = vadd.f32 %v2057_v6, %v1376_v10  ;;  %v2065_v20 = vpop.f32.mrf.mxu1  ;;  %v1389_v10 = vadd.f32 %v1994_v43, %v1292_v53  ;;  %v1571_v25 = vmul.f32 %v1462_v62, %v1462_v62  ;;  %v2015_v43 = vadd.f32 %v2951_v28, %v2950_v61 }
 0x169   :  { %1532 = vst [vmem:[%s2911_s2 + $0x40] sm:$0xff] %v2826_v57  ;;  %v2842_v31 = vadd.f32 %v2065_v20, %v1408_v0  ;;  %v1464_v1 = vpop.f32.mrf.mxu0  ;;  %v1579_v8 = vmul.f32 %v2826_v57, %v2826_v57 }
 0x16a   :  { %1527 = vst [vmem:[%s2911_s2 + $0x18] sm:$0xff] %v1473_v18  ;;  %v1465_v19 = vadd.f32 %v1464_v1, %v1368_v14  ;;  %v1496_v45 = vpop.f32.mrf.mxu1  ;;  %v1574_v36 = vmul.f32 %v1473_v18, %v1473_v18  ;;  %v1416_v0 = vadd.f32 %v2015_v43, %v1319_v42 }
 0x16b   :  { %1535 = vst [vmem:[%s2911_s2 + $0x58] sm:$0xff] %v2842_v31  ;;  %v1497_v27 = vadd.f32 %v1496_v45, %v1400_v22  ;;  %v2060_v33 = vpop.f32.mrf.mxu0 }
 0x16c   :  { %1525 = vst [vmem:[%s2911_s2 + $0x8] sm:$0xff] %v1465_v19  ;;  %v1547_v14 = vadd.f32 %v1465_v19, %v1462_v62  ;;  %v1572_v49 = vmul.f32 %v1465_v19, %v1465_v19  ;;  %v1486_v39 = vadd.f32 %v2060_v33, %v1389_v10  ;;  %v2068_v40 = vpop.f32.mrf.mxu1  ;;  %v1581_v19 = vmul.f32 %v2813_v52, %v2813_v52 }
 0x16d   :  { %1533 = vst [vmem:[%s2911_s2 + $0x48] sm:$0xff] %v1497_v27  ;;  %v1518_v48 = vadd.f32 %v2068_v40, %v1421_v30  ;;  %v1477_v50 = vpop.f32.mrf.mxu0  ;;  %v1580_v1 = vmul.f32 %v1497_v27, %v1497_v27 }
 0x16e   :  { %v1548_v32 = vadd.f32 %v1547_v14, %v1470_v44  ;;  %v1587_v41 = vadd.f32 %v1572_v49, %v1571_v25  ;;  %1530 = vst [vmem:[%s2911_s2 + $0x30] sm:$0xff] %v1486_v39  ;;  %v1478_v47 = vadd.f32 %v1477_v50, %v1381_v46  ;;  %v1509_v53 = vpop.f32.mrf.mxu1  ;;  %v1577_v20 = vmul.f32 %v1486_v39, %v1486_v39 }
 0x16f   :  { %1538 = vst [vmem:[%s2911_s2 + $0x70] sm:$0xff] %v1518_v48  ;;  %v1510_v54 = vadd.f32 %v1509_v53, %v1413_v51  ;;  %v2061_v55 = vpop.f32.mrf.mxu0  ;;  %v1585_v49 = vmul.f32 %v1518_v48, %v1518_v48 }
 0x170   :  { %v1588_v56 = vadd.f32 %v1587_v41, %v1573_v29  ;;  %1528 = vst [vmem:[%s2911_s2 + $0x20] sm:$0xff] %v1478_v47  ;;  %v1549_v44 = vadd.f32 %v1548_v32, %v1473_v18  ;;  %v1489_v58 = vadd.f32 %v2061_v55, %v1392_v21  ;;  %v2069_v60 = vpop.f32.mrf.mxu1  ;;  %v1575_v4 = vmul.f32 %v1478_v47, %v1478_v47 }
 0x171   :  { %1536 = vst [vmem:[%s2911_s2 + $0x60] sm:$0xff] %v1510_v54  ;;  %v1521_v62 = vadd.f32 %v2069_v60, %v1424_v34  ;;  %v1480_v63 = vpop.f32.mrf.mxu0  ;;  %v1582_v21 = vmul.f32 %v2842_v31, %v2842_v31  ;;  %v1583_v35 = vmul.f32 %v1510_v54, %v1510_v54 }
 0x172   :  { %v1550_v2 = vadd.f32 %v1549_v44, %v1478_v47  ;;  %v1589_v5 = vadd.f32 %v1588_v56, %v1574_v36  ;;  %1531 = vst [vmem:[%s2911_s2 + $0x38] sm:$0xff] %v1489_v58  ;;  %v1481_v59 = vadd.f32 %v1480_v63, %v1384_v9  ;;  %v1512_v6 = vpop.f32.mrf.mxu1  ;;  %v1578_v13 = vmul.f32 %v1489_v58, %v1489_v58  ;;  %v1546_v47 = vld [vmem:[%s2909_s3] sm:$0x1] }
 0x173   :  { %1539 = vst [vmem:[%s2911_s2 + $0x78] sm:$0xff] %v1521_v62  ;;  %v1513_v7 = vadd.f32 %v1512_v6, %v1416_v0  ;;  %v1586_v40 = vmul.f32 %v1521_v62, %v1521_v62 }
 0x174   :  { %v1590_v11 = vadd.f32 %v1589_v5, %v1575_v4  ;;  %1529 = vst [vmem:[%s2911_s2 + $0x28] sm:$0xff] %v1481_v59  ;;  %v1551_v15 = vadd.f32 %v1550_v2, %v1481_v59  ;;  %v1576_v18 = vmul.f32 %v1481_v59, %v1481_v59 }
 0x175   :  { %1537 = vst [vmem:[%s2911_s2 + $0x68] sm:$0xff] %v1513_v7  ;;  %v1584_v25 = vmul.f32 %v1513_v7, %v1513_v7 }
 0x176   :  { %v1552_v22 = vadd.f32 %v1551_v15, %v1486_v39  ;;  %v1591_v46 = vadd.f32 %v1590_v11, %v1576_v18 }
 0x178   :  { %v1553_v26 = vadd.f32 %v1552_v22, %v1489_v58  ;;  %v1592_v24 = vadd.f32 %v1591_v46, %v1577_v20 }
 0x17a   :  { %v1554_v12 = vadd.f32 %v1553_v26, %v2826_v57  ;;  %v1593_v37 = vadd.f32 %v1592_v24, %v1578_v13 }
 0x17c   :  { %v1594_v38 = vadd.f32 %v1593_v37, %v1579_v8  ;;  %v1555_v16 = vadd.f32 %v1554_v12, %v1497_v27 }
 0x17e   :  { %v1556_v45 = vadd.f32 %v1555_v16, %v2813_v52  ;;  %v1595_v10 = vadd.f32 %v1594_v38, %v1580_v1 }
 0x180   :  { %v1557_v23 = vadd.f32 %v1556_v45, %v2842_v31  ;;  %v1596_v3 = vadd.f32 %v1595_v10, %v1581_v19 }
 0x182   :  { %v1558_v33 = vadd.f32 %v1557_v23, %v1510_v54  ;;  %v1597_v30 = vadd.f32 %v1596_v3, %v1582_v21  ;;  %v1570_v54 = vld [vmem:[%s2910_s4] sm:$0x1] }
 0x184   :  { %v1559_v57 = vadd.f32 %v1558_v33, %v1513_v7  ;;  %v1598_v14 = vadd.f32 %v1597_v30, %v1583_v35 }
 0x186   :  { %v1560_v27 = vadd.f32 %v1559_v57, %v1518_v48  ;;  %v1599_v39 = vadd.f32 %v1598_v14, %v1584_v25 }
 0x188   :  { %v1561_v17 = vadd.f32 %v1560_v27, %v1521_v62  ;;  %v1600_v42 = vadd.f32 %v1599_v39, %v1585_v49 }
 0x18a   :  { %v1562_v52 = vrot.slane %v1561_v17, 4  ;;  %v1601_v61 = vadd.f32 %v1600_v42, %v1586_v40 }
 0x18c   :  { %v1563_v28 = vadd.f32 %v1562_v52, %v1561_v17  ;;  %v1602_v43 = vrot.slane %v1601_v61, 4 }
 0x18e   :  { %v1564_v50 = vrot.slane %v1563_v28, 2  ;;  %v1603_v51 = vadd.f32 %v1602_v43, %v1601_v61 }
 0x190   :  { %v1565_v31 = vadd.f32 %v1564_v50, %v1563_v28  ;;  %v1604_v29 = vrot.slane %v1603_v51, 2 }
 0x192   :  { %v1566_v32 = vrot.slane %v1565_v31, 1  ;;  %v1605_v41 = vadd.f32 %v1604_v29, %v1603_v51 }
 0x194   :  { %v1567_v53 = vadd.f32 %v1566_v32, %v1565_v31  ;;  %v1606_v48 = vrot.slane %v1605_v41, 1 }
 0x196   :  { %v1568_v55 = vadd.f32 %v1567_v53, %v1546_v47  ;;  %v1607_v34 = vadd.f32 %v1606_v48, %v1605_v41 }
 0x198   :  { %1569 = vst [vmem:[%s2909_s3] sm:$0x1] %v1568_v55  ;;  %v1608_v9 = vadd.f32 %v1607_v34, %v1570_v54 }
 0x19a   :  { %1609 = vst [vmem:[%s2910_s4] sm:$0x1] %v1608_v9 }

</bundles_post_ra>
